<compile_context>
chip_gen: v7x
topology: tpu7x:2x2x1
jax: 0.10.0
libtpu: 0.0.40
codegen_flags: <defaults>
</compile_context>

<pallas_src>
import functools

import jax
import jax.numpy as jnp
from jax.experimental import pallas as pl
from jax.experimental.pallas import tpu as pltpu


# ---------------------------------------------------------------------------
# Shared in-kernel helpers
# ---------------------------------------------------------------------------
def _c3_pointwise(x, w_eff, bias):
    """Cin=3 pointwise conv as 3 broadcast FMAs on the VPU.

    A (., 3) @ (3, C) matmul only uses 3/256 of the MXU K axis, so do it on the
    VPU instead.
      x     : (Bt, N, 3)      bf16
      w_eff : (Bt or 1, 3, C) f32
      bias  : (1, C)          f32
    returns (Bt, N, C) f32.
    """
    xf = x.astype(jnp.float32)
    acc = xf[:, :, 0:1] * w_eff[:, 0:1, :]
    acc = acc + xf[:, :, 1:2] * w_eff[:, 1:2, :]
    acc = acc + xf[:, :, 2:3] * w_eff[:, 2:3, :]
    return acc + bias.reshape(1, 1, -1)


# ---------------------------------------------------------------------------
# Kernels
# ---------------------------------------------------------------------------
def stn_trunk_kernel(x_ref, w1, b1, w2, b2, w3, b3, out_ref):
    """STN3d conv1/2/3 + ReLUs + global max for one batch tile -> (Bt, 1, 1024)."""
    bt, n, _ = x_ref.shape
    x = x_ref[...]                                                  # (Bt, N, 3) bf16
    h = _c3_pointwise(x, w1[...].astype(jnp.float32).reshape(1, 3, -1), b1[...])
    h = jnp.maximum(h, 0.0).astype(jnp.bfloat16).reshape(bt * n, -1)     # (Bt*N, 64)
    h = jnp.dot(h, w2[...], preferred_element_type=jnp.float32) + b2[...]
    h = jnp.maximum(h, 0.0).astype(jnp.bfloat16)
    h = jnp.dot(h, w3[...], preferred_element_type=jnp.float32) + b3[...]
    h = jnp.maximum(h, 0.0)                                 # STN has ReLU before the max
    out_ref[...] = jnp.max(h.reshape(bt, n, -1), axis=1, keepdims=True)


def stn_fc_kernel(g_ref, wf1, bf1, wf2, bf2, wf3, bf3, out_ref):
    """STN3d fc1/fc2/fc3 batched over all B rows.  fc3 is padded to 16 lanes and
    the flattened identity is pre-folded into its bias."""
    g = g_ref[...].astype(jnp.bfloat16)                             # (B, 1024)
    f = jnp.dot(g, wf1[...], preferred_element_type=jnp.float32) + bf1[...]
    f = jnp.maximum(f, 0.0).astype(jnp.bfloat16)
    f = jnp.dot(f, wf2[...], preferred_element_type=jnp.float32) + bf2[...]
    f = jnp.maximum(f, 0.0).astype(jnp.bfloat16)
    out_ref[...] = jnp.dot(f, wf3[...], preferred_element_type=jnp.float32) + bf3[...]


def feat_trunk_kernel(x_ref, t_ref, w1, b1, w2, b2, w3, b3, out_ref):
    """PointNetfeat trunk (bmm with trans + conv1/2/3 with folded eval-mode BN +
    global max) for one batch tile -> (Bt, 1, 1024)."""
    bt, n, _ = x_ref.shape
    x = x_ref[...]                                                  # (Bt, N, 3) bf16
    t = t_ref[...]                                                  # (Bt, 3, 3) f32
    # Fold the learned 3x3 transform into conv1: x @ t @ W1 == x @ (t @ W1).
    w1_eff = jnp.dot(t.reshape(bt * 3, 3), w1[...].astype(jnp.float32),
                     preferred_element_type=jnp.float32).reshape(bt, 3, -1)
    h = _c3_pointwise(x, w1_eff, b1[...])
    h = jnp.maximum(h, 0.0).astype(jnp.bfloat16).reshape(bt * n, -1)     # (Bt*N, 64)
    h = jnp.dot(h, w2[...], preferred_element_type=jnp.float32) + b2[...]
    h = jnp.maximum(h, 0.0).astype(jnp.bfloat16)
    h = jnp.dot(h, w3[...], preferred_element_type=jnp.float32) + b3[...]
    # conv3 has folded BN but no ReLU before the global max (matches PyTorch).
    out_ref[...] = jnp.max(h.reshape(bt, n, -1), axis=1, keepdims=True)


# ---------------------------------------------------------------------------
# pallas_call wrappers
# ---------------------------------------------------------------------------
def _const_spec(arr):
    n = arr.ndim
    return pl.BlockSpec(arr.shape, lambda i, n=n: (0,) * n)


def _batch_tile(B, N):
    """Batch elements per grid step.

    Grow the matmul M dim (Bt*N rows) toward the 256-wide MXU (v6e/v7x) while
    keeping >= 2 grid steps when possible so the "parallel" batch axis can be
    sharded across v7x's two TensorCores."""
    for bt in (8, 4, 2):
        if B % bt == 0 and B // bt >= 2 and bt * N <= 2048:
            return bt
    return 1


def _stn_trunk(x_bf16, stn_conv_params, bt):
    B, N, _ = x_bf16.shape
    operands = (x_bf16,) + tuple(stn_conv_params)
    in_specs = [pl.BlockSpec((bt, N, 3), lambda i: (i, 0, 0))] + \
               [_const_spec(a) for a in stn_conv_params]
    out = pl.pallas_call(
        stn_trunk_kernel,
        out_shape=jax.ShapeDtypeStruct((B, 1, 1024), jnp.float32),
        grid=(B // bt,),
        in_specs=in_specs,
        out_specs=pl.BlockSpec((bt, 1, 1024), lambda i: (i, 0, 0)),
        compiler_params=pltpu.CompilerParams(dimension_semantics=("parallel",)),
    )(*operands)
    return out.reshape(B, 1024)


def _stn_fc(stn_max, stn_fc_params):
    B = stn_max.shape[0]
    operands = (stn_max,) + tuple(stn_fc_params)
    out16 = pl.pallas_call(
        stn_fc_kernel,
        out_shape=jax.ShapeDtypeStruct((B, 16), jnp.float32),
        grid=(1,),
        in_specs=[_const_spec(a) for a in operands],
        out_specs=pl.BlockSpec((B, 16), lambda i: (0, 0)),
        compiler_params=pltpu.CompilerParams(dimension_semantics=("arbitrary",)),
    )(*operands)
    # Drop the 7 zero-padded lanes, x.view(-1, 3, 3).
    return out16[:, :9].reshape(B, 3, 3)


def _feat_trunk(x_bf16, trans, feat_params, bt):
    B, N, _ = x_bf16.shape
    operands = (x_bf16, trans) + tuple(feat_params)
    in_specs = [pl.BlockSpec((bt, N, 3), lambda i: (i, 0, 0)),
                pl.BlockSpec((bt, 3, 3), lambda i: (i, 0, 0))] + \
               [_const_spec(a) for a in feat_params]
    out = pl.pallas_call(
        feat_trunk_kernel,
        out_shape=jax.ShapeDtypeStruct((B, 1, 1024), jnp.float32),
        grid=(B // bt,),
        in_specs=in_specs,
        out_specs=pl.BlockSpec((bt, 1, 1024), lambda i: (i, 0, 0)),
        compiler_params=pltpu.CompilerParams(dimension_semantics=("parallel",)),
    )(*operands)
    return out.reshape(B, 1024)


def pointnetfeat_forward(x, stn_params, feat_params):
    """Returns (global_feat (B, 1024) f32, trans (B, 3, 3) f32)."""
    B, N, _ = x.shape
    stn_conv_params, stn_fc_params = stn_params
    bt = _batch_tile(B, N)
    x_bf16 = x.astype(jnp.bfloat16)                  # halve x DMA; MXU is bf16-native
    g_stn = _stn_trunk(x_bf16, stn_conv_params, bt)  # (B, 1024)
    trans = _stn_fc(g_stn, stn_fc_params)            # (B, 3, 3)
    gfeat = _feat_trunk(x_bf16, trans, feat_params, bt)
    return gfeat, trans


# ---------------------------------------------------------------------------
# Deterministic parameter construction (glue, plain JAX)
# ---------------------------------------------------------------------------
def _make_params(key):
    ks = iter(jax.random.split(key, 40))

    def w(cin, cout, scale=0.1):
        # stored as (Cin, Cout) = PyTorch weight.T, bf16 for the MXU
        return (scale * jax.random.normal(next(ks), (cin, cout), jnp.float32)
                ).astype(jnp.bfloat16)

    def b(cout, scale=0.05):
        return scale * jax.random.normal(next(ks), (1, cout), jnp.float32)

    # --- STN3d conv trunk (this STN3d variant has no BatchNorm) ---
    stn_conv = (w(3, 64), b(64), w(64, 128), b(128), w(128, 1024), b(1024))

    # --- STN3d FC tail: fc3 padded 9 -> 16 output lanes, identity folded in ---
    wf3 = 0.1 * jax.random.normal(next(ks), (256, 9), jnp.float32)
    bf3 = 0.05 * jax.random.normal(next(ks), (1, 9), jnp.float32)
    iden = jnp.array([[1., 0., 0., 0., 1., 0., 0., 0., 1.]], jnp.float32)
    wf3p = jnp.pad(wf3, ((0, 0), (0, 7))).astype(jnp.bfloat16)    # (256, 16)
    bf3p = jnp.pad(bf3 + iden, ((0, 0), (0, 7)))                  # (1, 16) f32
    stn_fc = (w(1024, 512), b(512), w(512, 256), b(256), wf3p, bf3p)

    # --- PointNetfeat trunk: conv1/2/3 with eval-mode BatchNorm folded in ---
    def conv_bn(cin, cout):
        wf = 0.1 * jax.random.normal(next(ks), (cin, cout), jnp.float32)
        bb = 0.05 * jax.random.normal(next(ks), (1, cout), jnp.float32)
        gamma = 1.0 + 0.1 * jax.random.normal(next(ks), (1, cout), jnp.float32)
        beta = 0.05 * jax.random.normal(next(ks), (1, cout), jnp.float32)
        mean = 0.05 * jax.random.normal(next(ks), (1, cout), jnp.float32)
        var = jax.random.uniform(next(ks), (1, cout), jnp.float32,
                                 minval=0.5, maxval=1.5)
        s = gamma / jnp.sqrt(var + 1e-5)      # y = (xW + b - mean)*s + beta
        return (wf * s).astype(jnp.bfloat16), (bb - mean) * s + beta

    feat = []
    for cin, cout in ((3, 64), (64, 128), (128, 1024)):
        w_f, b_f = conv_bn(cin, cout)
        feat += [w_f, b_f]

    return (stn_conv, stn_fc), tuple(feat)


# ---------------------------------------------------------------------------
if __name__ == "__main__":
    B, N = 2, 128  # batch of 2 point clouds with 128 points each, 3 coords
    key = jax.random.PRNGKey(0)
    kx, kp = jax.random.split(key)
    x = jax.random.normal(kx, (B, N, 3), jnp.float32)

    stn_params, feat_params = _make_params(kp)

    fwd = jax.jit(functools.partial(pointnetfeat_forward,
                                    stn_params=stn_params,
                                    feat_params=feat_params))
    global_feat, trans = fwd(x)
    jax.block_until_ready((global_feat, trans))

    assert global_feat.shape == (B, 1024) and global_feat.dtype == jnp.float32
    assert trans.shape == (B, 3, 3) and trans.dtype == jnp.float32
    print("KERNEL_OK")
</pallas_src>

<mosaic_0001>
module attributes {stable_mosaic.version = 11 : i64} {
  func.func @stn_trunk_kernel(%arg0: i32, %arg1: memref<1x128x3xbf16, #tpu.memory_space<vmem>>, %arg2: memref<3x64xbf16, #tpu.memory_space<vmem>>, %arg3: memref<1x64xf32, #tpu.memory_space<vmem>>, %arg4: memref<64x128xbf16, #tpu.memory_space<vmem>>, %arg5: memref<1x128xf32, #tpu.memory_space<vmem>>, %arg6: memref<128x1024xbf16, #tpu.memory_space<vmem>>, %arg7: memref<1x1024xf32, #tpu.memory_space<vmem>>, %arg8: memref<1x1x1024xf32, #tpu.memory_space<vmem>>) attributes {dimension_semantics = [#tpu.dimension_semantics<parallel>], iteration_bounds = array<i64: 2>, scalar_prefetch = 0 : i64, scratch_operands = 0 : i64, tpu.core_type = #tpu.core_type<tc>, window_params = [{transform_indices = @transform_0, window_bounds = array<i64: 1, 128, 3>}, {pipeline_mode = #tpu.pipeline_mode<synchronous>, transform_indices = @transform_1, window_bounds = array<i64: 3, 64>}, {pipeline_mode = #tpu.pipeline_mode<synchronous>, transform_indices = @transform_2, window_bounds = array<i64: 1, 64>}, {pipeline_mode = #tpu.pipeline_mode<synchronous>, transform_indices = @transform_3, window_bounds = array<i64: 64, 128>}, {pipeline_mode = #tpu.pipeline_mode<synchronous>, transform_indices = @transform_4, window_bounds = array<i64: 1, 128>}, {pipeline_mode = #tpu.pipeline_mode<synchronous>, transform_indices = @transform_5, window_bounds = array<i64: 128, 1024>}, {pipeline_mode = #tpu.pipeline_mode<synchronous>, transform_indices = @transform_6, window_bounds = array<i64: 1, 1024>}, {transform_indices = @transform_7, window_bounds = array<i64: 1, 1, 1024>}]} {
    %c0 = arith.constant 0 : index
    %c0_0 = arith.constant 0 : index
    %c0_1 = arith.constant 0 : index
    %0 = vector.load %arg1[%c0, %c0_0, %c0_1] : memref<1x128x3xbf16, #tpu.memory_space<vmem>>, vector<1x128x3xbf16>
    %c0_2 = arith.constant 0 : index
    %c0_3 = arith.constant 0 : index
    %1 = vector.load %arg2[%c0_2, %c0_3] : memref<3x64xbf16, #tpu.memory_space<vmem>>, vector<3x64xbf16>
    %2 = arith.extf %1 : vector<3x64xbf16> to vector<3x64xf32>
    %3 = vector.shape_cast %2 : vector<3x64xf32> to vector<1x3x64xf32>
    %c0_4 = arith.constant 0 : index
    %c0_5 = arith.constant 0 : index
    %4 = vector.load %arg3[%c0_4, %c0_5] : memref<1x64xf32, #tpu.memory_space<vmem>>, vector<1x64xf32>
    %5 = arith.extf %0 : vector<1x128x3xbf16> to vector<1x128x3xf32>
    %6 = vector.extract_strided_slice %5 {offsets = [0, 0, 0], sizes = [1, 128, 1], strides = [1, 1, 1]} : vector<1x128x3xf32> to vector<1x128x1xf32>
    %7 = vector.extract_strided_slice %3 {offsets = [0, 0, 0], sizes = [1, 1, 64], strides = [1, 1, 1]} : vector<1x3x64xf32> to vector<1x1x64xf32>
    %8 = vector.broadcast %6 : vector<1x128x1xf32> to vector<1x128x64xf32>
    %9 = vector.broadcast %7 : vector<1x1x64xf32> to vector<1x128x64xf32>
    %10 = arith.mulf %8, %9 : vector<1x128x64xf32>
    %11 = vector.extract_strided_slice %5 {offsets = [0, 0, 1], sizes = [1, 128, 1], strides = [1, 1, 1]} : vector<1x128x3xf32> to vector<1x128x1xf32>
    %12 = vector.extract_strided_slice %3 {offsets = [0, 1, 0], sizes = [1, 1, 64], strides = [1, 1, 1]} : vector<1x3x64xf32> to vector<1x1x64xf32>
    %13 = vector.broadcast %11 : vector<1x128x1xf32> to vector<1x128x64xf32>
    %14 = vector.broadcast %12 : vector<1x1x64xf32> to vector<1x128x64xf32>
    %15 = arith.mulf %13, %14 : vector<1x128x64xf32>
    %16 = arith.addf %10, %15 : vector<1x128x64xf32>
    %17 = vector.extract_strided_slice %5 {offsets = [0, 0, 2], sizes = [1, 128, 1], strides = [1, 1, 1]} : vector<1x128x3xf32> to vector<1x128x1xf32>
    %18 = vector.extract_strided_slice %3 {offsets = [0, 2, 0], sizes = [1, 1, 64], strides = [1, 1, 1]} : vector<1x3x64xf32> to vector<1x1x64xf32>
    %19 = vector.broadcast %17 : vector<1x128x1xf32> to vector<1x128x64xf32>
    %20 = vector.broadcast %18 : vector<1x1x64xf32> to vector<1x128x64xf32>
    %21 = arith.mulf %19, %20 : vector<1x128x64xf32>
    %22 = arith.addf %16, %21 : vector<1x128x64xf32>
    %23 = vector.shape_cast %4 : vector<1x64xf32> to vector<1x1x64xf32>
    %24 = vector.broadcast %23 : vector<1x1x64xf32> to vector<1x128x64xf32>
    %25 = arith.addf %22, %24 : vector<1x128x64xf32>
    %cst = arith.constant 0.000000e+00 : f32
    %26 = vector.broadcast %cst : f32 to vector<1x128x64xf32>
    %27 = arith.maximumf %25, %26 : vector<1x128x64xf32>
    %28 = arith.truncf %27 : vector<1x128x64xf32> to vector<1x128x64xbf16>
    %29 = vector.shape_cast %28 : vector<1x128x64xbf16> to vector<128x64xbf16>
    %c0_6 = arith.constant 0 : index
    %c0_7 = arith.constant 0 : index
    %30 = vector.load %arg4[%c0_6, %c0_7] : memref<64x128xbf16, #tpu.memory_space<vmem>>, vector<64x128xbf16>
    %cst_8 = arith.constant dense<0.000000e+00> : vector<128x128xf32>
    %31 = tpu.matmul %29, %30, %cst_8 {dimension_numbers = #tpu.dot_dimension_numbers<[1], [0], [0], [1], [0, 0, 1, 1], [], []>} : vector<128x64xbf16>, vector<64x128xbf16>, vector<128x128xf32> -> vector<128x128xf32>
    %c0_9 = arith.constant 0 : index
    %c0_10 = arith.constant 0 : index
    %32 = vector.load %arg5[%c0_9, %c0_10] : memref<1x128xf32, #tpu.memory_space<vmem>>, vector<1x128xf32>
    %33 = vector.broadcast %32 : vector<1x128xf32> to vector<128x128xf32>
    %34 = arith.addf %31, %33 : vector<128x128xf32>
    %cst_11 = arith.constant 0.000000e+00 : f32
    %35 = vector.broadcast %cst_11 : f32 to vector<128x128xf32>
    %36 = arith.maximumf %34, %35 : vector<128x128xf32>
    %37 = arith.truncf %36 : vector<128x128xf32> to vector<128x128xbf16>
    %c0_12 = arith.constant 0 : index
    %c0_13 = arith.constant 0 : index
    %38 = vector.load %arg6[%c0_12, %c0_13] : memref<128x1024xbf16, #tpu.memory_space<vmem>>, vector<128x1024xbf16>
    %cst_14 = arith.constant dense<0.000000e+00> : vector<128x1024xf32>
    %39 = tpu.matmul %37, %38, %cst_14 {dimension_numbers = #tpu.dot_dimension_numbers<[1], [0], [0], [1], [0, 0, 1, 1], [], []>} : vector<128x128xbf16>, vector<128x1024xbf16>, vector<128x1024xf32> -> vector<128x1024xf32>
    %c0_15 = arith.constant 0 : index
    %c0_16 = arith.constant 0 : index
    %40 = vector.load %arg7[%c0_15, %c0_16] : memref<1x1024xf32, #tpu.memory_space<vmem>>, vector<1x1024xf32>
    %41 = vector.broadcast %40 : vector<1x1024xf32> to vector<128x1024xf32>
    %42 = arith.addf %39, %41 : vector<128x1024xf32>
    %cst_17 = arith.constant 0.000000e+00 : f32
    %43 = vector.broadcast %cst_17 : f32 to vector<128x1024xf32>
    %44 = arith.maximumf %42, %43 : vector<128x1024xf32>
    %45 = vector.shape_cast %44 : vector<128x1024xf32> to vector<1x128x1024xf32>
    %cst_18 = arith.constant dense<0xFF800000> : vector<1x1024xf32>
    %46 = vector.multi_reduction <maximumf>, %45, %cst_18 [1] : vector<1x128x1024xf32> to vector<1x1024xf32>
    %47 = vector.shape_cast %46 : vector<1x1024xf32> to vector<1x1x1024xf32>
    %c0_19 = arith.constant 0 : index
    %c0_20 = arith.constant 0 : index
    %c0_21 = arith.constant 0 : index
    %48 = vector.load %arg8[%c0_19, %c0_20, %c0_21] : memref<1x1x1024xf32, #tpu.memory_space<vmem>>, vector<1x1x1024xf32>
    tpu.vector_store %arg8[%c0_19, %c0_20, %c0_21], %47 {strides = array<i32>} : memref<1x1x1024xf32, #tpu.memory_space<vmem>>, vector<1x1x1024xf32>,
    return
  }
  func.func @transform_0(%arg0: i32) -> (i32, i32, i32) {
    %c0_i32 = arith.constant 0 : i32
    %c0_i32_0 = arith.constant 0 : i32
    %c0_i32_1 = arith.constant 0 : i32
    return %arg0, %c0_i32, %c0_i32_0 : i32, i32, i32
  }
  func.func @transform_1(%arg0: i32) -> (i32, i32) {
    %c0_i32 = arith.constant 0 : i32
    %c0_i32_0 = arith.constant 0 : i32
    %c0_i32_1 = arith.constant 0 : i32
    return %c0_i32, %c0_i32_0 : i32, i32
  }
  func.func @transform_2(%arg0: i32) -> (i32, i32) {
    %c0_i32 = arith.constant 0 : i32
    %c0_i32_0 = arith.constant 0 : i32
    %c0_i32_1 = arith.constant 0 : i32
    return %c0_i32, %c0_i32_0 : i32, i32
  }
  func.func @transform_3(%arg0: i32) -> (i32, i32) {
    %c0_i32 = arith.constant 0 : i32
    %c0_i32_0 = arith.constant 0 : i32
    %c0_i32_1 = arith.constant 0 : i32
    return %c0_i32, %c0_i32_0 : i32, i32
  }
  func.func @transform_4(%arg0: i32) -> (i32, i32) {
    %c0_i32 = arith.constant 0 : i32
    %c0_i32_0 = arith.constant 0 : i32
    %c0_i32_1 = arith.constant 0 : i32
    return %c0_i32, %c0_i32_0 : i32, i32
  }
  func.func @transform_5(%arg0: i32) -> (i32, i32) {
    %c0_i32 = arith.constant 0 : i32
    %c0_i32_0 = arith.constant 0 : i32
    %c0_i32_1 = arith.constant 0 : i32
    return %c0_i32, %c0_i32_0 : i32, i32
  }
  func.func @transform_6(%arg0: i32) -> (i32, i32) {
    %c0_i32 = arith.constant 0 : i32
    %c0_i32_0 = arith.constant 0 : i32
    %c0_i32_1 = arith.constant 0 : i32
    return %c0_i32, %c0_i32_0 : i32, i32
  }
  func.func @transform_7(%arg0: i32) -> (i32, i32, i32) {
    %c0_i32 = arith.constant 0 : i32
    %c0_i32_0 = arith.constant 0 : i32
    %c0_i32_1 = arith.constant 0 : i32
    return %arg0, %c0_i32, %c0_i32_0 : i32, i32, i32
  }
}

module attributes {stable_mosaic.version = 11 : i64} {
  func.func @stn_fc_kernel(%arg0: i32, %arg1: memref<2x1024xf32, #tpu.memory_space<vmem>>, %arg2: memref<1024x512xbf16, #tpu.memory_space<vmem>>, %arg3: memref<1x512xf32, #tpu.memory_space<vmem>>, %arg4: memref<512x256xbf16, #tpu.memory_space<vmem>>, %arg5: memref<1x256xf32, #tpu.memory_space<vmem>>, %arg6: memref<256x16xbf16, #tpu.memory_space<vmem>>, %arg7: memref<1x16xf32, #tpu.memory_space<vmem>>, %arg8: memref<2x16xf32, #tpu.memory_space<vmem>>) attributes {dimension_semantics = [#tpu.dimension_semantics<arbitrary>], iteration_bounds = array<i64: 1>, scalar_prefetch = 0 : i64, scratch_operands = 0 : i64, tpu.core_type = #tpu.core_type<tc>, window_params = [{pipeline_mode = #tpu.pipeline_mode<synchronous>, transform_indices = @transform_0, window_bounds = array<i64: 2, 1024>}, {pipeline_mode = #tpu.pipeline_mode<synchronous>, transform_indices = @transform_1, window_bounds = array<i64: 1024, 512>}, {pipeline_mode = #tpu.pipeline_mode<synchronous>, transform_indices = @transform_2, window_bounds = array<i64: 1, 512>}, {pipeline_mode = #tpu.pipeline_mode<synchronous>, transform_indices = @transform_3, window_bounds = array<i64: 512, 256>}, {pipeline_mode = #tpu.pipeline_mode<synchronous>, transform_indices = @transform_4, window_bounds = array<i64: 1, 256>}, {pipeline_mode = #tpu.pipeline_mode<synchronous>, transform_indices = @transform_5, window_bounds = array<i64: 256, 16>}, {pipeline_mode = #tpu.pipeline_mode<synchronous>, transform_indices = @transform_6, window_bounds = array<i64: 1, 16>}, {pipeline_mode = #tpu.pipeline_mode<synchronous>, transform_indices = @transform_7, window_bounds = array<i64: 2, 16>}]} {
    %c0 = arith.constant 0 : index
    %c0_0 = arith.constant 0 : index
    %0 = vector.load %arg1[%c0, %c0_0] : memref<2x1024xf32, #tpu.memory_space<vmem>>, vector<2x1024xf32>
    %1 = arith.truncf %0 : vector<2x1024xf32> to vector<2x1024xbf16>
    %c0_1 = arith.constant 0 : index
    %c0_2 = arith.constant 0 : index
    %2 = vector.load %arg2[%c0_1, %c0_2] : memref<1024x512xbf16, #tpu.memory_space<vmem>>, vector<1024x512xbf16>
    %cst = arith.constant dense<0.000000e+00> : vector<2x512xf32>
    %3 = tpu.matmul %1, %2, %cst {dimension_numbers = #tpu.dot_dimension_numbers<[1], [0], [0], [1], [0, 0, 1, 1], [], []>} : vector<2x1024xbf16>, vector<1024x512xbf16>, vector<2x512xf32> -> vector<2x512xf32>
    %c0_3 = arith.constant 0 : index
    %c0_4 = arith.constant 0 : index
    %4 = vector.load %arg3[%c0_3, %c0_4] : memref<1x512xf32, #tpu.memory_space<vmem>>, vector<1x512xf32>
    %5 = vector.broadcast %4 : vector<1x512xf32> to vector<2x512xf32>
    %6 = arith.addf %3, %5 : vector<2x512xf32>
    %cst_5 = arith.constant 0.000000e+00 : f32
    %7 = vector.broadcast %cst_5 : f32 to vector<2x512xf32>
    %8 = arith.maximumf %6, %7 : vector<2x512xf32>
    %9 = arith.truncf %8 : vector<2x512xf32> to vector<2x512xbf16>
    %c0_6 = arith.constant 0 : index
    %c0_7 = arith.constant 0 : index
    %10 = vector.load %arg4[%c0_6, %c0_7] : memref<512x256xbf16, #tpu.memory_space<vmem>>, vector<512x256xbf16>
    %cst_8 = arith.constant dense<0.000000e+00> : vector<2x256xf32>
    %11 = tpu.matmul %9, %10, %cst_8 {dimension_numbers = #tpu.dot_dimension_numbers<[1], [0], [0], [1], [0, 0, 1, 1], [], []>} : vector<2x512xbf16>, vector<512x256xbf16>, vector<2x256xf32> -> vector<2x256xf32>
    %c0_9 = arith.constant 0 : index
    %c0_10 = arith.constant 0 : index
    %12 = vector.load %arg5[%c0_9, %c0_10] : memref<1x256xf32, #tpu.memory_space<vmem>>, vector<1x256xf32>
    %13 = vector.broadcast %12 : vector<1x256xf32> to vector<2x256xf32>
    %14 = arith.addf %11, %13 : vector<2x256xf32>
    %cst_11 = arith.constant 0.000000e+00 : f32
    %15 = vector.broadcast %cst_11 : f32 to vector<2x256xf32>
    %16 = arith.maximumf %14, %15 : vector<2x256xf32>
    %17 = arith.truncf %16 : vector<2x256xf32> to vector<2x256xbf16>
    %c0_12 = arith.constant 0 : index
    %c0_13 = arith.constant 0 : index
    %18 = vector.load %arg6[%c0_12, %c0_13] : memref<256x16xbf16, #tpu.memory_space<vmem>>, vector<256x16xbf16>
    %cst_14 = arith.constant dense<0.000000e+00> : vector<2x16xf32>
    %19 = tpu.matmul %17, %18, %cst_14 {dimension_numbers = #tpu.dot_dimension_numbers<[1], [0], [0], [1], [0, 0, 1, 1], [], []>} : vector<2x256xbf16>, vector<256x16xbf16>, vector<2x16xf32> -> vector<2x16xf32>
    %c0_15 = arith.constant 0 : index
    %c0_16 = arith.constant 0 : index
    %20 = vector.load %arg7[%c0_15, %c0_16] : memref<1x16xf32, #tpu.memory_space<vmem>>, vector<1x16xf32>
    %21 = vector.broadcast %20 : vector<1x16xf32> to vector<2x16xf32>
    %22 = arith.addf %19, %21 : vector<2x16xf32>
    %c0_17 = arith.constant 0 : index
    %c0_18 = arith.constant 0 : index
    %23 = vector.load %arg8[%c0_17, %c0_18] : memref<2x16xf32, #tpu.memory_space<vmem>>, vector<2x16xf32>
    tpu.vector_store %arg8[%c0_17, %c0_18], %22 {strides = array<i32>} : memref<2x16xf32, #tpu.memory_space<vmem>>, vector<2x16xf32>,
    return
  }
  func.func @transform_0(%arg0: i32) -> (i32, i32) {
    %c0_i32 = arith.constant 0 : i32
    %c0_i32_0 = arith.constant 0 : i32
    %c0_i32_1 = arith.constant 0 : i32
    return %c0_i32, %c0_i32_0 : i32, i32
  }
  func.func @transform_1(%arg0: i32) -> (i32, i32) {
    %c0_i32 = arith.constant 0 : i32
    %c0_i32_0 = arith.constant 0 : i32
    %c0_i32_1 = arith.constant 0 : i32
    return %c0_i32, %c0_i32_0 : i32, i32
  }
  func.func @transform_2(%arg0: i32) -> (i32, i32) {
    %c0_i32 = arith.constant 0 : i32
    %c0_i32_0 = arith.constant 0 : i32
    %c0_i32_1 = arith.constant 0 : i32
    return %c0_i32, %c0_i32_0 : i32, i32
  }
  func.func @transform_3(%arg0: i32) -> (i32, i32) {
    %c0_i32 = arith.constant 0 : i32
    %c0_i32_0 = arith.constant 0 : i32
    %c0_i32_1 = arith.constant 0 : i32
    return %c0_i32, %c0_i32_0 : i32, i32
  }
  func.func @transform_4(%arg0: i32) -> (i32, i32) {
    %c0_i32 = arith.constant 0 : i32
    %c0_i32_0 = arith.constant 0 : i32
    %c0_i32_1 = arith.constant 0 : i32
    return %c0_i32, %c0_i32_0 : i32, i32
  }
  func.func @transform_5(%arg0: i32) -> (i32, i32) {
    %c0_i32 = arith.constant 0 : i32
    %c0_i32_0 = arith.constant 0 : i32
    %c0_i32_1 = arith.constant 0 : i32
    return %c0_i32, %c0_i32_0 : i32, i32
  }
  func.func @transform_6(%arg0: i32) -> (i32, i32) {
    %c0_i32 = arith.constant 0 : i32
    %c0_i32_0 = arith.constant 0 : i32
    %c0_i32_1 = arith.constant 0 : i32
    return %c0_i32, %c0_i32_0 : i32, i32
  }
  func.func @transform_7(%arg0: i32) -> (i32, i32) {
    %c0_i32 = arith.constant 0 : i32
    %c0_i32_0 = arith.constant 0 : i32
    %c0_i32_1 = arith.constant 0 : i32
    return %c0_i32, %c0_i32_0 : i32, i32
  }
}

module attributes {stable_mosaic.version = 11 : i64} {
  func.func @feat_trunk_kernel(%arg0: i32, %arg1: memref<1x128x3xbf16, #tpu.memory_space<vmem>>, %arg2: memref<1x3x3xf32, #tpu.memory_space<vmem>>, %arg3: memref<3x64xbf16, #tpu.memory_space<vmem>>, %arg4: memref<1x64xf32, #tpu.memory_space<vmem>>, %arg5: memref<64x128xbf16, #tpu.memory_space<vmem>>, %arg6: memref<1x128xf32, #tpu.memory_space<vmem>>, %arg7: memref<128x1024xbf16, #tpu.memory_space<vmem>>, %arg8: memref<1x1024xf32, #tpu.memory_space<vmem>>, %arg9: memref<1x1x1024xf32, #tpu.memory_space<vmem>>) attributes {dimension_semantics = [#tpu.dimension_semantics<parallel>], iteration_bounds = array<i64: 2>, scalar_prefetch = 0 : i64, scratch_operands = 0 : i64, tpu.core_type = #tpu.core_type<tc>, window_params = [{transform_indices = @transform_0, window_bounds = array<i64: 1, 128, 3>}, {transform_indices = @transform_1, window_bounds = array<i64: 1, 3, 3>}, {pipeline_mode = #tpu.pipeline_mode<synchronous>, transform_indices = @transform_2, window_bounds = array<i64: 3, 64>}, {pipeline_mode = #tpu.pipeline_mode<synchronous>, transform_indices = @transform_3, window_bounds = array<i64: 1, 64>}, {pipeline_mode = #tpu.pipeline_mode<synchronous>, transform_indices = @transform_4, window_bounds = array<i64: 64, 128>}, {pipeline_mode = #tpu.pipeline_mode<synchronous>, transform_indices = @transform_5, window_bounds = array<i64: 1, 128>}, {pipeline_mode = #tpu.pipeline_mode<synchronous>, transform_indices = @transform_6, window_bounds = array<i64: 128, 1024>}, {pipeline_mode = #tpu.pipeline_mode<synchronous>, transform_indices = @transform_7, window_bounds = array<i64: 1, 1024>}, {transform_indices = @transform_8, window_bounds = array<i64: 1, 1, 1024>}]} {
    %c0 = arith.constant 0 : index
    %c0_0 = arith.constant 0 : index
    %c0_1 = arith.constant 0 : index
    %0 = vector.load %arg1[%c0, %c0_0, %c0_1] : memref<1x128x3xbf16, #tpu.memory_space<vmem>>, vector<1x128x3xbf16>
    %c0_2 = arith.constant 0 : index
    %c0_3 = arith.constant 0 : index
    %c0_4 = arith.constant 0 : index
    %1 = vector.load %arg2[%c0_2, %c0_3, %c0_4] : memref<1x3x3xf32, #tpu.memory_space<vmem>>, vector<1x3x3xf32>
    %2 = vector.shape_cast %1 : vector<1x3x3xf32> to vector<3x3xf32>
    %c0_5 = arith.constant 0 : index
    %c0_6 = arith.constant 0 : index
    %3 = vector.load %arg3[%c0_5, %c0_6] : memref<3x64xbf16, #tpu.memory_space<vmem>>, vector<3x64xbf16>
    %4 = arith.extf %3 : vector<3x64xbf16> to vector<3x64xf32>
    %cst = arith.constant dense<0.000000e+00> : vector<3x64xf32>
    %5 = tpu.matmul %2, %4, %cst {dimension_numbers = #tpu.dot_dimension_numbers<[1], [0], [0], [1], [0, 0, 1, 1], [], []>} : vector<3x3xf32>, vector<3x64xf32>, vector<3x64xf32> -> vector<3x64xf32>
    %6 = vector.shape_cast %5 : vector<3x64xf32> to vector<1x3x64xf32>
    %c0_7 = arith.constant 0 : index
    %c0_8 = arith.constant 0 : index
    %7 = vector.load %arg4[%c0_7, %c0_8] : memref<1x64xf32, #tpu.memory_space<vmem>>, vector<1x64xf32>
    %8 = arith.extf %0 : vector<1x128x3xbf16> to vector<1x128x3xf32>
    %9 = vector.extract_strided_slice %8 {offsets = [0, 0, 0], sizes = [1, 128, 1], strides = [1, 1, 1]} : vector<1x128x3xf32> to vector<1x128x1xf32>
    %10 = vector.extract_strided_slice %6 {offsets = [0, 0, 0], sizes = [1, 1, 64], strides = [1, 1, 1]} : vector<1x3x64xf32> to vector<1x1x64xf32>
    %11 = vector.broadcast %9 : vector<1x128x1xf32> to vector<1x128x64xf32>
    %12 = vector.broadcast %10 : vector<1x1x64xf32> to vector<1x128x64xf32>
    %13 = arith.mulf %11, %12 : vector<1x128x64xf32>
    %14 = vector.extract_strided_slice %8 {offsets = [0, 0, 1], sizes = [1, 128, 1], strides = [1, 1, 1]} : vector<1x128x3xf32> to vector<1x128x1xf32>
    %15 = vector.extract_strided_slice %6 {offsets = [0, 1, 0], sizes = [1, 1, 64], strides = [1, 1, 1]} : vector<1x3x64xf32> to vector<1x1x64xf32>
    %16 = vector.broadcast %14 : vector<1x128x1xf32> to vector<1x128x64xf32>
    %17 = vector.broadcast %15 : vector<1x1x64xf32> to vector<1x128x64xf32>
    %18 = arith.mulf %16, %17 : vector<1x128x64xf32>
    %19 = arith.addf %13, %18 : vector<1x128x64xf32>
    %20 = vector.extract_strided_slice %8 {offsets = [0, 0, 2], sizes = [1, 128, 1], strides = [1, 1, 1]} : vector<1x128x3xf32> to vector<1x128x1xf32>
    %21 = vector.extract_strided_slice %6 {offsets = [0, 2, 0], sizes = [1, 1, 64], strides = [1, 1, 1]} : vector<1x3x64xf32> to vector<1x1x64xf32>
    %22 = vector.broadcast %20 : vector<1x128x1xf32> to vector<1x128x64xf32>
    %23 = vector.broadcast %21 : vector<1x1x64xf32> to vector<1x128x64xf32>
    %24 = arith.mulf %22, %23 : vector<1x128x64xf32>
    %25 = arith.addf %19, %24 : vector<1x128x64xf32>
    %26 = vector.shape_cast %7 : vector<1x64xf32> to vector<1x1x64xf32>
    %27 = vector.broadcast %26 : vector<1x1x64xf32> to vector<1x128x64xf32>
    %28 = arith.addf %25, %27 : vector<1x128x64xf32>
    %cst_9 = arith.constant 0.000000e+00 : f32
    %29 = vector.broadcast %cst_9 : f32 to vector<1x128x64xf32>
    %30 = arith.maximumf %28, %29 : vector<1x128x64xf32>
    %31 = arith.truncf %30 : vector<1x128x64xf32> to vector<1x128x64xbf16>
    %32 = vector.shape_cast %31 : vector<1x128x64xbf16> to vector<128x64xbf16>
    %c0_10 = arith.constant 0 : index
    %c0_11 = arith.constant 0 : index
    %33 = vector.load %arg5[%c0_10, %c0_11] : memref<64x128xbf16, #tpu.memory_space<vmem>>, vector<64x128xbf16>
    %cst_12 = arith.constant dense<0.000000e+00> : vector<128x128xf32>
    %34 = tpu.matmul %32, %33, %cst_12 {dimension_numbers = #tpu.dot_dimension_numbers<[1], [0], [0], [1], [0, 0, 1, 1], [], []>} : vector<128x64xbf16>, vector<64x128xbf16>, vector<128x128xf32> -> vector<128x128xf32>
    %c0_13 = arith.constant 0 : index
    %c0_14 = arith.constant 0 : index
    %35 = vector.load %arg6[%c0_13, %c0_14] : memref<1x128xf32, #tpu.memory_space<vmem>>, vector<1x128xf32>
    %36 = vector.broadcast %35 : vector<1x128xf32> to vector<128x128xf32>
    %37 = arith.addf %34, %36 : vector<128x128xf32>
    %cst_15 = arith.constant 0.000000e+00 : f32
    %38 = vector.broadcast %cst_15 : f32 to vector<128x128xf32>
    %39 = arith.maximumf %37, %38 : vector<128x128xf32>
    %40 = arith.truncf %39 : vector<128x128xf32> to vector<128x128xbf16>
    %c0_16 = arith.constant 0 : index
    %c0_17 = arith.constant 0 : index
    %41 = vector.load %arg7[%c0_16, %c0_17] : memref<128x1024xbf16, #tpu.memory_space<vmem>>, vector<128x1024xbf16>
    %cst_18 = arith.constant dense<0.000000e+00> : vector<128x1024xf32>
    %42 = tpu.matmul %40, %41, %cst_18 {dimension_numbers = #tpu.dot_dimension_numbers<[1], [0], [0], [1], [0, 0, 1, 1], [], []>} : vector<128x128xbf16>, vector<128x1024xbf16>, vector<128x1024xf32> -> vector<128x1024xf32>
    %c0_19 = arith.constant 0 : index
    %c0_20 = arith.constant 0 : index
    %43 = vector.load %arg8[%c0_19, %c0_20] : memref<1x1024xf32, #tpu.memory_space<vmem>>, vector<1x1024xf32>
    %44 = vector.broadcast %43 : vector<1x1024xf32> to vector<128x1024xf32>
    %45 = arith.addf %42, %44 : vector<128x1024xf32>
    %46 = vector.shape_cast %45 : vector<128x1024xf32> to vector<1x128x1024xf32>
    %cst_21 = arith.constant dense<0xFF800000> : vector<1x1024xf32>
    %47 = vector.multi_reduction <maximumf>, %46, %cst_21 [1] : vector<1x128x1024xf32> to vector<1x1024xf32>
    %48 = vector.shape_cast %47 : vector<1x1024xf32> to vector<1x1x1024xf32>
    %c0_22 = arith.constant 0 : index
    %c0_23 = arith.constant 0 : index
    %c0_24 = arith.constant 0 : index
    %49 = vector.load %arg9[%c0_22, %c0_23, %c0_24] : memref<1x1x1024xf32, #tpu.memory_space<vmem>>, vector<1x1x1024xf32>
    tpu.vector_store %arg9[%c0_22, %c0_23, %c0_24], %48 {strides = array<i32>} : memref<1x1x1024xf32, #tpu.memory_space<vmem>>, vector<1x1x1024xf32>,
    return
  }
  func.func @transform_0(%arg0: i32) -> (i32, i32, i32) {
    %c0_i32 = arith.constant 0 : i32
    %c0_i32_0 = arith.constant 0 : i32
    %c0_i32_1 = arith.constant 0 : i32
    return %arg0, %c0_i32, %c0_i32_0 : i32, i32, i32
  }
  func.func @transform_1(%arg0: i32) -> (i32, i32, i32) {
    %c0_i32 = arith.constant 0 : i32
    %c0_i32_0 = arith.constant 0 : i32
    %c0_i32_1 = arith.constant 0 : i32
    return %arg0, %c0_i32, %c0_i32_0 : i32, i32, i32
  }
  func.func @transform_2(%arg0: i32) -> (i32, i32) {
    %c0_i32 = arith.constant 0 : i32
    %c0_i32_0 = arith.constant 0 : i32
    %c0_i32_1 = arith.constant 0 : i32
    return %c0_i32, %c0_i32_0 : i32, i32
  }
  func.func @transform_3(%arg0: i32) -> (i32, i32) {
    %c0_i32 = arith.constant 0 : i32
    %c0_i32_0 = arith.constant 0 : i32
    %c0_i32_1 = arith.constant 0 : i32
    return %c0_i32, %c0_i32_0 : i32, i32
  }
  func.func @transform_4(%arg0: i32) -> (i32, i32) {
    %c0_i32 = arith.constant 0 : i32
    %c0_i32_0 = arith.constant 0 : i32
    %c0_i32_1 = arith.constant 0 : i32
    return %c0_i32, %c0_i32_0 : i32, i32
  }
  func.func @transform_5(%arg0: i32) -> (i32, i32) {
    %c0_i32 = arith.constant 0 : i32
    %c0_i32_0 = arith.constant 0 : i32
    %c0_i32_1 = arith.constant 0 : i32
    return %c0_i32, %c0_i32_0 : i32, i32
  }
  func.func @transform_6(%arg0: i32) -> (i32, i32) {
    %c0_i32 = arith.constant 0 : i32
    %c0_i32_0 = arith.constant 0 : i32
    %c0_i32_1 = arith.constant 0 : i32
    return %c0_i32, %c0_i32_0 : i32, i32
  }
  func.func @transform_7(%arg0: i32) -> (i32, i32) {
    %c0_i32 = arith.constant 0 : i32
    %c0_i32_0 = arith.constant 0 : i32
    %c0_i32_1 = arith.constant 0 : i32
    return %c0_i32, %c0_i32_0 : i32, i32
  }
  func.func @transform_8(%arg0: i32) -> (i32, i32, i32) {
    %c0_i32 = arith.constant 0 : i32
    %c0_i32_0 = arith.constant 0 : i32
    %c0_i32_1 = arith.constant 0 : i32
    return %arg0, %c0_i32, %c0_i32_0 : i32, i32, i32
  }
}

</mosaic_0001>

<bundles_post_ra>
// kernel: pointnetfeat_forward.3
= control target key start
LH: loop header
LB: loop body
LE: loop exit
PB: predicated region body
PF: predicated region fallthrough
CT: control target
= control target key end

     0   :  { %s2519_s24 = smov 0   ;;  %s3208_s0 = inlined_call_operand.vmem [shape: bf16[2,128,3], index: 0, kind: input, shape index: {}]   ;;  %s3209_s1 = inlined_call_operand.vmem [shape: bf16[3,64], index: 1, kind: input, shape index: {}]   ;;  %s3210_s2 = inlined_call_operand.vmem [shape: f32[1,64], index: 2, kind: input, shape index: {}]   ;;  %s3211_s3 = inlined_call_operand.vmem [shape: bf16[64,128], index: 3, kind: input, shape index: {}]   ;;  %s3212_s4 = inlined_call_operand.vmem [shape: f32[1,128], index: 4, kind: input, shape index: {}]   ;;  %s3213_s5 = inlined_call_operand.vmem [shape: bf16[128,1024], index: 5, kind: input, shape index: {}]   ;;  %s3214_s6 = inlined_call_operand.vmem [shape: f32[1,1024], index: 6, kind: input, shape index: {}]   ;;  %s3215_s7 = inlined_call_operand.vmem [shape: f32[2,1,1024], index: 7, kind: output, shape index: {}]  }
   0x1 LB: > { %s2130_s25 = sadd.s32 4294967295, %s2473_s24   ;;  %p2134_p0 = scmp.ge.s32.totalorder %s2473_s24, 1  ;;  %s2473_s24 = sphi %s2519_s24, %s17_s24  }
   0x2   : > { %p237_p1 = scmp.lt.s32.totalorder %s2473_s24, 3 }
   0x4   : > { %p238_p2 = pnand %p2134_p0, %p237_p1 }
   0x5   : > { %p268_p3 = scmp.lt.s32.totalorder (!%p238_p2), %s2130_s25, 1  ;;  %v2475_v0 = vmov (!%p238_p2), 0   ;;  %v2476_v9 = vmov (!%p238_p2), 1   ;;  %v2463_v12 = vld [vmem:[%s3211_s3] sm:$0xff] (!%p238_p2)   ;;  %v2477_v17 = vmov (!%p238_p2), 2   ;;  %v2464_v18 = vld [vmem:[%s3211_s3 + $0x8] sm:$0xff] (!%p238_p2)  }
   0x6   : > { %241 = sbr.rel (%p238_p2) target bundleno = 774 (0x306), region = 48  ;;  %2334 = vset.pattern.permute.xlu1 (!%p238_p2), %v2475_v0  ;;  %2322 = vset.pattern.permute.xlu0 (!%p238_p2), %v2475_v0  ;;  %v2465_v21 = vld [vmem:[%s3211_s3 + $0x10] sm:$0xff] (!%p238_p2)   ;;  %v2466_v25 = vld [vmem:[%s3211_s3 + $0x18] sm:$0xff] (!%p238_p2)   ;;  %v844_v39 = vld [vmem:[%s3213_s5] sm:$0xff] (!%p238_p2)  ;;  %vm698_vm0 = vcmask (!%p238_p2), 523264  }
   0x7   : > { %1302 = vmatprep.mubr.bf16.mxu1 (!%p238_p2), %v2475_v0  ;;  %2270 = vmatprep.subr.bf16.mxu0 (!%p238_p2), %v2463_v12  ;;  %v848_v40 = vld [vmem:[%s3213_s5 + $0x20] sm:$0xff] (!%p238_p2)  ;;  %v2578_v41 = vld [vmem:[%s3213_s5 + $0x8] sm:$0xff] (!%p238_p2) }
   0x8   : > { %2271 = vmatpush3.bf16.msra.mxu0 (!%p238_p2), %v2463_v12  ;;  %v2153_v42 = vcombine.high (!%p238_p2), %v844_v39, %v848_v40  ;;  %v2583_v43 = vld [vmem:[%s3213_s5 + $0x28] sm:$0xff] (!%p238_p2)  ;;  %v2152_v44 = vcombine.low (!%p238_p2), %v844_v39, %v848_v40  ;;  %v852_v45 = vld [vmem:[%s3213_s5 + $0x40] sm:$0xff] (!%p238_p2) }
   0x9   : > { %2272 = vmatprep.subr.bf16.mxu0 (!%p238_p2), %v2464_v18  ;;  %v856_v46 = vld [vmem:[%s3213_s5 + $0x60] sm:$0xff] (!%p238_p2)  ;;  %v2154_v47 = vcombine.low (!%p238_p2), %v2578_v41, %v2583_v43  ;;  %v2155_v48 = vcombine.high (!%p238_p2), %v2578_v41, %v2583_v43 }
   0xa   : > { %v2161_v49 = vcombine.high (!%p238_p2), %v852_v45, %v856_v46  ;;  %v860_v50 = vld [vmem:[%s3213_s5 + $0x80] sm:$0xff] (!%p238_p2)  ;;  %1270 = vmatprep.subr.bf16.mxu1 (!%p238_p2), %v2153_v42  ;;  %v2160_v52 = vcombine.low (!%p238_p2), %v852_v45, %v856_v46 }
   0xb   : > { %v864_v51 = vld [vmem:[%s3213_s5 + $0xa0] sm:$0xff] (!%p238_p2)  ;;  %1271 = vmatpush1.bf16.msra.mxu1 (!%p238_p2), %v2152_v44 }
   0xc   : > { %2273 = vmatpush3.bf16.msra.mxu0 (!%p238_p2), %v2464_v18  ;;  %1272 = vmatprep.subr.bf16.mxu1 (!%p238_p2), %v2161_v49  ;;  %v2169_v53 = vcombine.high (!%p238_p2), %v860_v50, %v864_v51  ;;  %v868_v54 = vld [vmem:[%s3213_s5 + $0xc0] sm:$0xff] (!%p238_p2)  ;;  %v2168_v56 = vcombine.low (!%p238_p2), %v860_v50, %v864_v51 }
   0xd   : > { %s3217_s25 = smov (!%p268_p3, %s2130_s25), 1  ;;  %2274 = vmatprep.subr.bf16.mxu0 %v2465_v21  ;;  %v872_v55 = vld [vmem:[%s3213_s5 + $0xe0] sm:$0xff] }
   0xe   : > { %s2218_s26 = sshll.u32 %s3217_s25, 6  ;;  %v2177_v57 = vcombine.high %v868_v54, %v872_v55  ;;  %v876_v58 = vld [vmem:[%s3213_s5 + $0x100] sm:$0xff]  ;;  %v2176_v60 = vcombine.low %v868_v54, %v872_v55  ;;  %s2137_s27 = sshll.u32 %s3217_s25, 3 }
   0xf   : > { %s2536_s29 = scalar_lea.vmem %s3208_s0, %s2218_s26  ;;  %1273 = vmatpush1.bf16.msra.mxu1 %v2160_v52  ;;  %v880_v59 = vld [vmem:[%s3213_s5 + $0x120] sm:$0xff]  ;;  %s276_s30 = scalar_lea.vmem %s3215_s7, %s2137_s27 }
  0x10   : > { %v2251_v1 = vld [vmem:[%s2536_s29 + $0x8] sm:$0xff]   ;;  %v2220_v2 = vld [vmem:[%s2536_s29] sm:$0xff]   ;;  %v2252_v10 = vld [vmem:[%s2536_s29 + $0x10] sm:$0xff]   ;;  %2275 = vmatpush3.bf16.msra.mxu0 %v2465_v21  ;;  %1274 = vmatprep.subr.bf16.mxu1 %v2169_v53  ;;  %v2185_v61 = vcombine.high %v876_v58, %v880_v59 }
  0x11   : > { %v2225_v3 = vunpack.c.l.bf16 %v2251_v1  ;;  %v2226_v4 = vunpack.c.h.bf16 %v2251_v1  ;;  %v2221_v5 = vunpack.c.l.bf16 %v2220_v2  ;;  %v2222_v6 = vunpack.c.h.bf16 %v2220_v2  ;;  %v2253_v11 = vld [vmem:[%s2536_s29 + $0x18] sm:$0xff]   ;;  %v2255_v22 = vld [vmem:[%s2536_s29 + $0x28] sm:$0xff]   ;;  %2276 = vmatprep.subr.bf16.mxu0 %v2466_v25  ;;  %v2254_v27 = vld [vmem:[%s2536_s29 + $0x20] sm:$0xff]  }
  0x12   : > { %v2229_v13 = vunpack.c.l.bf16 %v2252_v10  ;;  %v2230_v14 = vunpack.c.h.bf16 %v2252_v10  ;;  %v2233_v15 = vunpack.c.l.bf16 %v2253_v11  ;;  %v2234_v16 = vunpack.c.h.bf16 %v2253_v11  ;;  %v2257_v28 = vld [vmem:[%s2536_s29 + $0x38] sm:$0xff]   ;;  %v2256_v35 = vld [vmem:[%s2536_s29 + $0x30] sm:$0xff]   ;;  %v884_v62 = vld [vmem:[%s3213_s5 + $0x140] sm:$0xff] }
  0x13   : > { %v2335_v7 = vpack.i.bf16 %v2226_v4, %v2225_v3  ;;  %v2323_v8 = vpack.i.bf16 %v2222_v6, %v2221_v5  ;;  %v2241_v23 = vunpack.c.l.bf16 %v2255_v22  ;;  %v2242_v24 = vunpack.c.h.bf16 %v2255_v22  ;;  %1275 = vmatpush1.bf16.msra.mxu1 %v2168_v56  ;;  %v888_v63 = vld [vmem:[%s3213_s5 + $0x160] sm:$0xff] }
  0x14   : > { %v2359_v19 = vpack.i.bf16 %v2230_v14, %v2229_v13  ;;  %v2371_v20 = vpack.i.bf16 %v2234_v16, %v2233_v15  ;;  %2277 = vmatpush3.bf16.msra.mxu0 %v2466_v25  ;;  %v2237_v29 = vunpack.c.l.bf16 %v2254_v27  ;;  %v2238_v30 = vunpack.c.h.bf16 %v2254_v27  ;;  %1276 = vmatprep.subr.bf16.mxu1 %v2177_v57  ;;  %v294_v6 = vld [vmem:[%s3209_s1] sm:$0x3] }
  0x15   : > { %2336 = vperm.xlu1 %2334, %v2335_v7   ;;  %2324 = vperm.xlu0 %2322, %v2323_v8   ;;  %v2406_v26 = vpack.i.bf16 %v2242_v24, %v2241_v23  ;;  %v2249_v31 = vunpack.c.l.bf16 %v2257_v28  ;;  %v2250_v32 = vunpack.c.h.bf16 %v2257_v28  ;;  %v2245_v36 = vunpack.c.l.bf16 %v2256_v35  ;;  %v2654_v51 = vld [vmem:[%s3210_s2] ss:$0 sm:$0xff] }
  0x16   : > { %v2394_v33 = vpack.i.bf16 %v2238_v30, %v2237_v29  ;;  %v2246_v37 = vunpack.c.h.bf16 %v2256_v35  ;;  %1383 = vmatprep.subr.bf16.mxu0 %v2155_v48  ;;  %v2184_v1 = vcombine.low %v876_v58, %v880_v59  ;;  %v2193_v2 = vcombine.high %v884_v62, %v888_v63 }
  0x17   : > { %v2441_v34 = vpack.i.bf16 %v2250_v32, %v2249_v31  ;;  %1277 = vmatpush1.bf16.msra.mxu1 %v2176_v60  ;;  %v2192_v3 = vcombine.low %v884_v62, %v888_v63  ;;  %v393_v4 = vlaneseq }
  0x18   : > { %v2429_v38 = vpack.i.bf16 %v2246_v37, %v2245_v36  ;;  %1278 = vmatprep.subr.bf16.mxu1 %v2185_v61 }
  0x19   : > { %2340 = vset.pattern.permute.xlu1 %v2476_v9  ;;  %2328 = vset.pattern.permute.xlu0 %v2476_v9  ;;  %v2619_v5 = vshrl.u32 %v393_v4, 7  ;;  %v857_v4 = vld [vmem:[%s3213_s5 + $0x68] sm:$0xff] }
  0x1a   : > { %2342 = vperm.xlu1 %2340, %v2335_v7   ;;  %2330 = vperm.xlu0 %2328, %v2323_v8  }
  0x1b   : > { %1279 = vmatpush1.bf16.msra.mxu1 %v2184_v1  ;;  %v479_v11 = vsub.s32 1, %v2619_v5  ;;  %v579_v16 = vsub.s32 2, %v2619_v5 }
  0x1c   : > { %1280 = vmatprep.subr.bf16.mxu1 %v2193_v2 }
  0x1e   : > { %2346 = vset.pattern.permute.xlu1 %v2477_v17  ;;  %2352 = vset.pattern.permute.xlu0 %v2477_v17 }
  0x1f   : > { %2348 = vperm.xlu1 %2346, %v2323_v8   ;;  %2354 = vperm.xlu0 %2352, %v2335_v7   ;;  %v295_v7 = vunpack.c.l.bf16 %v294_v6  ;;  %v395_v8 = vsub.s32 0, %v2619_v5 }
  0x20   : > { %1281 = vmatpush1.bf16.msra.mxu1 %v2192_v3  ;;  %v853_v3 = vld [vmem:[%s3213_s5 + $0x48] sm:$0xff] }
  0x21   : > { %v2628_v14 = vrot.slane %v295_v7, %v395_v8  ;;  %v2632_v15 = vrot.slane %v295_v7, %v479_v11  ;;  %v2643_v31 = vrot.slane %v295_v7, %v579_v16 }
  0x23   : > { %2358 = vset.pattern.permute.xlu1 %v2475_v0  ;;  %2370 = vset.pattern.permute.xlu0 %v2475_v0 }
  0x24   : > { %2360 = vperm.xlu1 %2358, %v2359_v19   ;;  %2372 = vperm.xlu0 %2370, %v2371_v20  }
  0x28   : > { %2364 = vset.pattern.permute.xlu1 %v2476_v9  ;;  %2387 = vset.pattern.permute.xlu0 %v2477_v17 }
  0x29   : > { %2366 = vperm.xlu1 %2364, %v2359_v19   ;;  %2389 = vperm.xlu0 %2387, %v2371_v20  }
  0x2d   : > { %2377 = vperm.xlu1 %2364, %v2371_v20   ;;  %2405 = vset.pattern.permute.xlu0 %v2475_v0 }
  0x2e   : > { %2407 = vperm.xlu0 %2405, %v2406_v26  }
  0x31   : > { %2381 = vset.pattern.permute.xlu1 %v2477_v17 }
  0x32   : > { %2383 = vperm.xlu1 %2381, %v2359_v19   ;;  %2422 = vset.pattern.permute.xlu0 %v2477_v17 }
  0x33   : > { %2424 = vperm.xlu0 %2422, %v2406_v26  }
  0x36   : > { %2393 = vset.pattern.permute.xlu1 %v2475_v0 }
  0x37   : > { %2395 = vperm.xlu1 %2393, %v2394_v33   ;;  %2440 = vset.pattern.permute.xlu0 %v2475_v0 }
  0x38   : > { %2442 = vperm.xlu0 %2440, %v2441_v34  }
  0x3b   : > { %2399 = vset.pattern.permute.xlu1 %v2476_v9 }
  0x3c   : > { %2401 = vperm.xlu1 %2399, %v2394_v33   ;;  %2457 = vset.pattern.permute.xlu0 %v2477_v17 }
  0x3d   : > { %2459 = vperm.xlu0 %2457, %v2441_v34  }
  0x40   : > { %2412 = vperm.xlu1 %2399, %v2406_v26  }
  0x44   : > { %2416 = vset.pattern.permute.xlu1 %v2477_v17 }
  0x45   : > { %2418 = vperm.xlu1 %2416, %v2394_v33  }
  0x49   : > { %2428 = vset.pattern.permute.xlu1 %v2475_v0 }
  0x4a   : > { %2430 = vperm.xlu1 %2428, %v2429_v38  }
  0x4e   : > { %2434 = vset.pattern.permute.xlu1 %v2476_v9 }
  0x4f   : > { %2436 = vperm.xlu1 %2434, %v2429_v38  }
  0x53   : > { %2447 = vperm.xlu1 %2434, %v2441_v34  }
  0x57   : > { %2451 = vset.pattern.permute.xlu1 %v2477_v17 }
  0x58   : > { %2453 = vperm.xlu1 %2451, %v2429_v38  }
  0x94   : > { %v2337_v9 = vpop.permute.xlu1 %2336  ;;  %v2325_v10 = vpop.permute.xlu0 %2324 }
  0x95   : > { %v2327_v12 = vunpack.i.h.bf16 %v2325_v10  ;;  %v2326_v13 = vunpack.i.l.bf16 %v2325_v10  ;;  %v2339_v17 = vunpack.i.h.bf16 %v2337_v9  ;;  %v2338_v18 = vunpack.i.l.bf16 %v2337_v9 }
  0x97   : > { %v398_v19 = vmul.f32 %v2327_v12, %v2628_v14  ;;  %v397_v20 = vmul.f32 %v2326_v13, %v2628_v14  ;;  %v400_v32 = vmul.f32 %v2339_v17, %v2628_v14  ;;  %v399_v33 = vmul.f32 %v2338_v18, %v2628_v14 }
  0x98   : > { %v2163_v17 = vcombine.high %v853_v3, %v857_v4 }
  0x99   : > { %v2343_v21 = vpop.permute.xlu1 %2342  ;;  %v2331_v22 = vpop.permute.xlu0 %2330 }
  0x9a   : > { %v2345_v23 = vunpack.i.h.bf16 %v2343_v21  ;;  %v2344_v24 = vunpack.i.l.bf16 %v2343_v21  ;;  %v2333_v25 = vunpack.i.h.bf16 %v2331_v22  ;;  %v2332_v26 = vunpack.i.l.bf16 %v2331_v22  ;;  %v865_v21 = vld [vmem:[%s3213_s5 + $0xa8] sm:$0xff] }
  0x9c   : > { %v484_v27 = vmul.f32 %v2345_v23, %v2632_v15  ;;  %v483_v28 = vmul.f32 %v2344_v24, %v2632_v15  ;;  %v482_v29 = vmul.f32 %v2333_v25, %v2632_v15  ;;  %v481_v30 = vmul.f32 %v2332_v26, %v2632_v15 }
  0x9d   : > { %v2162_v25 = vcombine.low %v853_v3, %v857_v4 }
  0x9e   : > { %v497_v34 = vadd.f32 %v481_v30, %v397_v20  ;;  %v498_v35 = vadd.f32 %v482_v29, %v398_v19  ;;  %v2349_v36 = vpop.permute.xlu1 %2348  ;;  %v2355_v37 = vpop.permute.xlu0 %2354  ;;  %v499_v44 = vadd.f32 %v483_v28, %v399_v33  ;;  %v500_v45 = vadd.f32 %v484_v27, %v400_v32  ;;  %v861_v20 = vld [vmem:[%s3213_s5 + $0x88] sm:$0xff] }
  0x9f   : > { %v2351_v38 = vunpack.i.h.bf16 %v2349_v36  ;;  %v2350_v39 = vunpack.i.l.bf16 %v2349_v36  ;;  %v2357_v40 = vunpack.i.h.bf16 %v2355_v37  ;;  %v2356_v42 = vunpack.i.l.bf16 %v2355_v37 }
  0xa0   : > { %v2171_v33 = vcombine.high %v861_v20, %v865_v21 }
  0xa1   : > { %v582_v46 = vmul.f32 %v2351_v38, %v2643_v31  ;;  %v581_v48 = vmul.f32 %v2350_v39, %v2643_v31  ;;  %v584_v49 = vmul.f32 %v2357_v40, %v2643_v31  ;;  %v583_v50 = vmul.f32 %v2356_v42, %v2643_v31 }
  0xa3   : > { %v597_v52 = vadd.f32 %v581_v48, %v497_v34  ;;  %v598_v53 = vadd.f32 %v582_v46, %v498_v35  ;;  %v600_v54 = vadd.f32 %v584_v49, %v500_v45  ;;  %v599_v55 = vadd.f32 %v583_v50, %v499_v44  ;;  %v2361_v56 = vpop.permute.xlu1 %2360  ;;  %v2373_v57 = vpop.permute.xlu0 %2372  ;;  %v869_v34 = vld [vmem:[%s3213_s5 + $0xc8] sm:$0xff] }
  0xa4   : > { %v2375_v9 = vunpack.i.h.bf16 %v2373_v57  ;;  %v2374_v10 = vunpack.i.l.bf16 %v2373_v57  ;;  %v2363_v30 = vunpack.i.h.bf16 %v2361_v56  ;;  %v2362_v32 = vunpack.i.l.bf16 %v2361_v56  ;;  %v873_v35 = vld [vmem:[%s3213_s5 + $0xe8] sm:$0xff] }
  0xa5   : > { %v622_v58 = vadd.f32 %v2654_v51, %v600_v54  ;;  %v621_v59 = vadd.f32 %v2654_v51, %v599_v55  ;;  %v619_v60 = vadd.f32 %v2654_v51, %v597_v52  ;;  %v620_v61 = vadd.f32 %v2654_v51, %v598_v53  ;;  %v877_v54 = vld [vmem:[%s3213_s5 + $0x108] sm:$0xff] }
  0xa6   : > { %v404_v26 = vmul.f32 %v2375_v9, %v2628_v14  ;;  %v403_v27 = vmul.f32 %v2374_v10, %v2628_v14  ;;  %v2170_v44 = vcombine.low %v861_v20, %v865_v21  ;;  %v2179_v45 = vcombine.high %v869_v34, %v873_v35  ;;  %v881_v55 = vld [vmem:[%s3213_s5 + $0x128] sm:$0xff] }
  0xa7   : > { %v638_v62 = vmax.f32 %v622_v58, 0.0  ;;  %v637_v63 = vmax.f32 %v621_v59, 0.0  ;;  %v635_v1 = vmax.f32 %v619_v60, 0.0  ;;  %v636_v2 = vmax.f32 %v620_v61, 0.0 }
  0xa8   : > { %v2367_v6 = vpop.permute.xlu1 %2366  ;;  %v2390_v7 = vpop.permute.xlu0 %2389  ;;  %v402_v46 = vmul.f32 %v2363_v30, %v2628_v14  ;;  %v401_v48 = vmul.f32 %v2362_v32, %v2628_v14  ;;  %v2187_v4 = vcombine.high %v877_v54, %v881_v55 }
  0xa9   : > { %v651_v12 = vpack.c.bf16 %v636_v2, %v635_v1  ;;  %v652_v13 = vpack.c.bf16 %v638_v62, %v637_v63  ;;  %v2392_v18 = vunpack.i.h.bf16 %v2390_v7  ;;  %v2391_v19 = vunpack.i.l.bf16 %v2390_v7  ;;  %v889_v7 = vld [vmem:[%s3213_s5 + $0x168] sm:$0xff] }
  0xaa   : > { %v2369_v22 = vunpack.i.h.bf16 %v2367_v6  ;;  %v2368_v23 = vunpack.i.l.bf16 %v2367_v6  ;;  %v2178_v63 = vcombine.low %v869_v34, %v873_v35  ;;  %v885_v6 = vld [vmem:[%s3213_s5 + $0x148] sm:$0xff] }
  0xab   : > { %2278 = vmatprep.mubr.msk.bf16.mxu0 %vm698_vm0, %v651_v12  ;;  %v588_v38 = vmul.f32 %v2392_v18, %v2643_v31  ;;  %v587_v41 = vmul.f32 %v2391_v19, %v2643_v31  ;;  %v2195_v20 = vcombine.high %v885_v6, %v889_v7 }
  0xac   : > { %v2378_v24 = vpop.permute.xlu1 %2377  ;;  %2279 = vmatmul.mubr.msk.bf16.vlgmr.msra.gmra.mrb[0].mxu0 %vm698_vm0, %v652_v13  ;;  %v486_v43 = vmul.f32 %v2369_v22, %v2632_v15 }
  0xad   : > { %v2380_v28 = vunpack.i.h.bf16 %v2378_v24  ;;  %v2379_v29 = vunpack.i.l.bf16 %v2378_v24  ;;  %1384 = vmatpush1.bf16.msra.mxu0 %v2154_v47  ;;  %v485_v47 = vmul.f32 %v2368_v23, %v2632_v15  ;;  %v2408_v62 = vpop.permute.xlu0 %2407 }
  0xae   : > { %1385 = vmatprep.subr.bf16.mxu0 %v2163_v17  ;;  %v502_v57 = vadd.f32 %v486_v43, %v402_v46  ;;  %v2186_v17 = vcombine.low %v877_v54, %v881_v55  ;;  %v2410_v23 = vunpack.i.h.bf16 %v2408_v62  ;;  %v2409_v24 = vunpack.i.l.bf16 %v2408_v62 }
  0xaf   : > { %v488_v36 = vmul.f32 %v2380_v28, %v2632_v15  ;;  %v487_v37 = vmul.f32 %v2379_v29, %v2632_v15  ;;  %v501_v56 = vadd.f32 %v485_v47, %v401_v48 }
  0xb0   : > { %v408_v34 = vmul.f32 %v2410_v23, %v2628_v14  ;;  %v407_v35 = vmul.f32 %v2409_v24, %v2628_v14 }
  0xb1   : > { %v503_v39 = vadd.f32 %v487_v37, %v403_v27  ;;  %v504_v40 = vadd.f32 %v488_v36, %v404_v26  ;;  %v2384_v42 = vpop.permute.xlu1 %2383  ;;  %1386 = vmatpush1.bf16.msra.mxu0 %v2162_v25  ;;  %v2194_v27 = vcombine.low %v885_v6, %v889_v7 }
  0xb2   : > { %v2386_v49 = vunpack.i.h.bf16 %v2384_v42  ;;  %v2385_v50 = vunpack.i.l.bf16 %v2384_v42  ;;  %1387 = vmatprep.subr.bf16.mxu0 %v2171_v33  ;;  %v2425_v22 = vpop.permute.xlu0 %2424 }
  0xb3   : > { %v603_v52 = vadd.f32 %v587_v41, %v503_v39  ;;  %v604_v53 = vadd.f32 %v588_v38, %v504_v40  ;;  %v2427_v28 = vunpack.i.h.bf16 %v2425_v22  ;;  %v2426_v29 = vunpack.i.l.bf16 %v2425_v22 }
  0xb4   : > { %v586_v58 = vmul.f32 %v2386_v49, %v2643_v31  ;;  %v585_v59 = vmul.f32 %v2385_v50, %v2643_v31 }
  0xb5   : > { %v625_v60 = vadd.f32 %v2654_v51, %v603_v52  ;;  %v626_v61 = vadd.f32 %v2654_v51, %v604_v53  ;;  %1388 = vmatpush1.bf16.msra.mxu0 %v2170_v44  ;;  %v592_v39 = vmul.f32 %v2427_v28, %v2643_v31  ;;  %v591_v40 = vmul.f32 %v2426_v29, %v2643_v31 }
  0xb6   : > { %v601_v1 = vadd.f32 %v585_v59, %v501_v56  ;;  %v602_v2 = vadd.f32 %v586_v58, %v502_v57  ;;  %v2396_v3 = vpop.permute.xlu1 %2395  ;;  %1389 = vmatprep.subr.bf16.mxu0 %v2179_v45 }
  0xb7   : > { %v641_v12 = vmax.f32 %v625_v60, 0.0  ;;  %v642_v13 = vmax.f32 %v626_v61, 0.0  ;;  %v2398_v38 = vunpack.i.h.bf16 %v2396_v3  ;;  %v2397_v41 = vunpack.i.l.bf16 %v2396_v3  ;;  %v2443_v62 = vpop.permute.xlu0 %2442 }
  0xb8   : > { %v623_v9 = vadd.f32 %v2654_v51, %v601_v1  ;;  %v624_v10 = vadd.f32 %v2654_v51, %v602_v2 }
  0xb9   : > { %1390 = vmatpush1.bf16.msra.mxu0 %v2178_v63  ;;  %v654_v26 = vpack.c.bf16 %v642_v13, %v641_v12  ;;  %v406_v49 = vmul.f32 %v2398_v38, %v2628_v14  ;;  %v405_v50 = vmul.f32 %v2397_v41, %v2628_v14 }
  0xba   : > { %v639_v18 = vmax.f32 %v623_v9, 0.0  ;;  %v640_v19 = vmax.f32 %v624_v10, 0.0  ;;  %1391 = vmatprep.subr.bf16.mxu0 %v2187_v4 }
  0xbb   : > { %v2402_v21 = vpop.permute.xlu1 %2401 }
  0xbc   : > { %v653_v25 = vpack.c.bf16 %v640_v19, %v639_v18  ;;  %v2404_v30 = vunpack.i.h.bf16 %v2402_v21  ;;  %v2403_v32 = vunpack.i.l.bf16 %v2402_v21  ;;  %v2460_v13 = vpop.permute.xlu0 %2459  ;;  %v2444_v18 = vunpack.i.l.bf16 %v2443_v62 }
  0xbd   : > { %1392 = vmatpush1.bf16.msra.mxu0 %v2186_v17  ;;  %v2445_v17 = vunpack.i.h.bf16 %v2443_v62  ;;  %v2462_v21 = vunpack.i.h.bf16 %v2460_v13  ;;  %v2461_v22 = vunpack.i.l.bf16 %v2460_v13  ;;  %v905_v13 = vld [vmem:[%s3213_s5 + $0x1e8] sm:$0xff] }
  0xbe   : > { %2282 = vmatprep.mubr.msk.bf16.mxu0 %vm698_vm0, %v653_v25  ;;  %1393 = vmatprep.subr.bf16.mxu0 %v2195_v20  ;;  %v490_v42 = vmul.f32 %v2404_v30, %v2632_v15  ;;  %v489_v44 = vmul.f32 %v2403_v32, %v2632_v15 }
  0xbf   : > { %v2413_v33 = vpop.permute.xlu1 %2412  ;;  %2283 = vmatmul.mubr.msk.bf16.gmra.mrb[4].mxu0 %vm698_vm0, %v654_v26  ;;  %v412_v26 = vmul.f32 %v2445_v17, %v2628_v14 }
  0xc0   : > { %v2415_v36 = vunpack.i.h.bf16 %v2413_v33  ;;  %v2414_v37 = vunpack.i.l.bf16 %v2413_v33  ;;  %v505_v56 = vadd.f32 %v489_v44, %v405_v50  ;;  %v506_v57 = vadd.f32 %v490_v42, %v406_v49 }
  0xc1   : > { %1394 = vmatpush1.bf16.msra.mxu0 %v2194_v27  ;;  %v411_v27 = vmul.f32 %v2444_v18, %v2628_v14 }
  0xc2   : > { %v492_v43 = vmul.f32 %v2415_v36, %v2632_v15  ;;  %v491_v47 = vmul.f32 %v2414_v37, %v2632_v15  ;;  %v595_v36 = vmul.f32 %v2461_v22, %v2643_v31 }
  0xc4   : > { %v507_v45 = vadd.f32 %v491_v47, %v407_v35  ;;  %v508_v46 = vadd.f32 %v492_v43, %v408_v34  ;;  %v2419_v48 = vpop.permute.xlu1 %2418  ;;  %v596_v35 = vmul.f32 %v2462_v21, %v2643_v31  ;;  %v850_v21 = vld [vmem:[%s3213_s5 + $0x30] sm:$0xff] }
  0xc5   : > { %v2421_v52 = vunpack.i.h.bf16 %v2419_v48  ;;  %v2420_v53 = vunpack.i.l.bf16 %v2419_v48 }
  0xc6   : > { %v607_v54 = vadd.f32 %v591_v40, %v507_v45  ;;  %v608_v55 = vadd.f32 %v592_v39, %v508_v46 }
  0xc7   : > { %v590_v58 = vmul.f32 %v2421_v52, %v2643_v31  ;;  %v589_v59 = vmul.f32 %v2420_v53, %v2643_v31 }
  0xc8   : > { %v629_v60 = vadd.f32 %v2654_v51, %v607_v54  ;;  %v630_v61 = vadd.f32 %v2654_v51, %v608_v55 }
  0xc9   : > { %v605_v63 = vadd.f32 %v589_v59, %v505_v56  ;;  %v606_v1 = vadd.f32 %v590_v58, %v506_v57  ;;  %v2431_v2 = vpop.permute.xlu1 %2430 }
  0xca   : > { %v645_v6 = vmax.f32 %v629_v60, 0.0  ;;  %v646_v7 = vmax.f32 %v630_v61, 0.0  ;;  %v2433_v30 = vunpack.i.h.bf16 %v2431_v2  ;;  %v2432_v32 = vunpack.i.l.bf16 %v2431_v2  ;;  %v897_v2 = vld [vmem:[%s3213_s5 + $0x1a8] sm:$0xff] }
  0xcb   : > { %v627_v3 = vadd.f32 %v2654_v51, %v605_v63  ;;  %v628_v4 = vadd.f32 %v2654_v51, %v606_v1  ;;  %v893_v63 = vld [vmem:[%s3213_s5 + $0x188] sm:$0xff] }
  0xcc   : > { %v656_v20 = vpack.c.bf16 %v646_v7, %v645_v6  ;;  %v410_v39 = vmul.f32 %v2433_v30, %v2628_v14  ;;  %v409_v40 = vmul.f32 %v2432_v32, %v2628_v14  ;;  %v900_v7 = vld [vmem:[%s3213_s5 + $0x1c0] sm:$0xff] }
  0xcd   : > { %v643_v9 = vmax.f32 %v627_v3, 0.0  ;;  %v644_v10 = vmax.f32 %v628_v4, 0.0  ;;  %v2202_v3 = vcombine.low %v893_v63, %v897_v2  ;;  %v2203_v4 = vcombine.high %v893_v63, %v897_v2  ;;  %v879_v2 = vld [vmem:[%s3213_s5 + $0x118] sm:$0xff] }
  0xce   : > { %v2437_v12 = vpop.permute.xlu1 %2436 }
  0xcf   : > { %v655_v19 = vpack.c.bf16 %v644_v10, %v643_v9  ;;  %v2439_v23 = vunpack.i.h.bf16 %v2437_v12  ;;  %v2438_v24 = vunpack.i.l.bf16 %v2437_v12  ;;  %1395 = vmatprep.subr.bf16.mxu0 %v2203_v4  ;;  %v904_v9 = vld [vmem:[%s3213_s5 + $0x1e0] sm:$0xff]  ;;  %v901_v10 = vld [vmem:[%s3213_s5 + $0x1c8] sm:$0xff] }
  0xd0   : > { %1396 = vmatpush1.bf16.msra.mxu0 %v2202_v3  ;;  %v2209_v12 = vcombine.high %v900_v7, %v904_v9  ;;  %v2210_v17 = vcombine.low %v901_v10, %v905_v13  ;;  %v2211_v18 = vcombine.high %v901_v10, %v905_v13  ;;  %v883_v3 = vld [vmem:[%s3213_s5 + $0x138] sm:$0xff] }
  0xd1   : > { %2286 = vmatprep.mubr.msk.bf16.mxu0 %vm698_vm0, %v655_v19  ;;  %v494_v37 = vmul.f32 %v2439_v23, %v2632_v15  ;;  %v493_v38 = vmul.f32 %v2438_v24, %v2632_v15  ;;  %v2208_v19 = vcombine.low %v900_v7, %v904_v9  ;;  %v847_v24 = vld [vmem:[%s3213_s5 + $0x18] sm:$0xff] }
  0xd2   : > { %v2448_v25 = vpop.permute.xlu1 %2447  ;;  %2287 = vmatmul.mubr.msk.bf16.gmra.mrb[8].mxu0 %vm698_vm0, %v656_v20  ;;  %1397 = vmatprep.subr.bf16.mxu0 %v2211_v18  ;;  %v846_v20 = vld [vmem:[%s3213_s5 + $0x10] sm:$0xff]  ;;  %v2880_v18 = vcombine.high %v879_v2, %v883_v3 }
  0xd3   : > { %v2450_v28 = vunpack.i.h.bf16 %v2448_v25  ;;  %v2449_v29 = vunpack.i.l.bf16 %v2448_v25  ;;  %v509_v48 = vadd.f32 %v493_v38, %v409_v40  ;;  %v510_v49 = vadd.f32 %v494_v37, %v410_v39  ;;  %v851_v25 = vld [vmem:[%s3213_s5 + $0x38] sm:$0xff]  ;;  %v858_v40 = vld [vmem:[%s3213_s5 + $0x70] sm:$0xff] }
  0xd4   : > { %1398 = vmatpush1.bf16.msra.mxu0 %v2210_v17  ;;  %v2156_v22 = vcombine.low %v846_v20, %v850_v21  ;;  %v2157_v23 = vcombine.high %v846_v20, %v850_v21 }
  0xd5   : > { %v496_v33 = vmul.f32 %v2450_v28, %v2632_v15  ;;  %v495_v34 = vmul.f32 %v2449_v29, %v2632_v15  ;;  %v2794_v28 = vld [vmem:[%s3212_s4] ss:$0 sm:$0xff] }
  0xd7   : > { %v511_v41 = vadd.f32 %v495_v34, %v411_v27  ;;  %v512_v43 = vadd.f32 %v496_v33, %v412_v26  ;;  %v2454_v47 = vpop.permute.xlu1 %2453  ;;  %v2786_v26 = vcombine.low %v847_v24, %v851_v25  ;;  %v2788_v27 = vcombine.high %v847_v24, %v851_v25 }
  0xd8   : > { %v2456_v42 = vunpack.i.h.bf16 %v2454_v47  ;;  %v2455_v44 = vunpack.i.l.bf16 %v2454_v47 }
  0xd9   : > { %v611_v45 = vadd.f32 %v595_v36, %v511_v41  ;;  %v612_v46 = vadd.f32 %v596_v35, %v512_v43  ;;  %1609 = vmatprep.subr.bf16.mxu0 %v2788_v27  ;;  %v854_v43 = vld [vmem:[%s3213_s5 + $0x50] sm:$0xff] }
  0xda   : > { %v594_v50 = vmul.f32 %v2456_v42, %v2643_v31  ;;  %v593_v52 = vmul.f32 %v2455_v44, %v2643_v31  ;;  %v892_v31 = vld [vmem:[%s3213_s5 + $0x180] sm:$0xff]  ;;  %v855_v42 = vld [vmem:[%s3213_s5 + $0x58] sm:$0xff] }
  0xdb   : > { %v633_v53 = vadd.f32 %v2654_v51, %v611_v45  ;;  %v634_v15 = vadd.f32 %v2654_v51, %v612_v46  ;;  %v859_v44 = vld [vmem:[%s3213_s5 + $0x78] sm:$0xff] }
  0xdc   : > { %v609_v54 = vadd.f32 %v593_v52, %v509_v48  ;;  %v610_v55 = vadd.f32 %v594_v50, %v510_v49  ;;  %v2165_v48 = vcombine.high %v854_v43, %v858_v40  ;;  %v862_v49 = vld [vmem:[%s3213_s5 + $0x90] sm:$0xff]  ;;  %v2819_v50 = vcombine.high %v855_v42, %v859_v44 }
  0xdd   : > { %v649_v57 = vmax.f32 %v633_v53, 0.0  ;;  %v650_v58 = vmax.f32 %v634_v15, 0.0  ;;  %v866_v52 = vld [vmem:[%s3213_s5 + $0xb0] sm:$0xff]  ;;  %v863_v53 = vld [vmem:[%s3213_s5 + $0x98] sm:$0xff] }
  0xde   : > { %v631_v56 = vadd.f32 %v2654_v51, %v609_v54  ;;  %v632_v14 = vadd.f32 %v2654_v51, %v610_v55  ;;  %v896_v51 = vld [vmem:[%s3213_s5 + $0x1a0] sm:$0xff]  ;;  %v867_v15 = vld [vmem:[%s3213_s5 + $0xb8] sm:$0xff]  ;;  %v2164_v54 = vcombine.low %v854_v43, %v858_v40  ;;  %v2835_v55 = vcombine.low %v855_v42, %v859_v44 }
  0xdf   : > { %v658_v62 = vpack.c.bf16 %v650_v58, %v649_v57  ;;  %v2201_v1 = vcombine.high %v892_v31, %v896_v51  ;;  %v2200_v6 = vcombine.low %v892_v31, %v896_v51  ;;  %v2841_v57 = vcombine.high %v863_v53, %v867_v15  ;;  %v874_v58 = vld [vmem:[%s3213_s5 + $0xf0] sm:$0xff]  ;;  %v899_v43 = vld [vmem:[%s3213_s5 + $0x1b8] sm:$0xff] }
  0xe0   : > { %v647_v59 = vmax.f32 %v631_v56, 0.0  ;;  %v648_v60 = vmax.f32 %v632_v14, 0.0  ;;  %v2173_v56 = vcombine.high %v862_v49, %v866_v52  ;;  %v870_v14 = vld [vmem:[%s3213_s5 + $0xd0] sm:$0xff] }
  0xe1   : > { %1282 = vmatprep.subr.bf16.mxu1 %v2201_v1  ;;  %v2181_v31 = vcombine.high %v870_v14, %v874_v58  ;;  %v878_v51 = vld [vmem:[%s3213_s5 + $0x110] sm:$0xff]  ;;  %v2180_v9 = vcombine.low %v870_v14, %v874_v58  ;;  %v907_v14 = vld [vmem:[%s3213_s5 + $0x1f8] sm:$0xff] }
  0xe2   : > { %v657_v61 = vpack.c.bf16 %v648_v60, %v647_v59  ;;  %1283 = vmatpush1.bf16.msra.mxu1 %v2200_v6  ;;  %v871_v59 = vld [vmem:[%s3213_s5 + $0xd8] sm:$0xff]  ;;  %v882_v1 = vld [vmem:[%s3213_s5 + $0x130] sm:$0xff] }
  0xe3   : > { %1284 = vmatprep.subr.bf16.mxu1 %v2209_v12  ;;  %v875_v60 = vld [vmem:[%s3213_s5 + $0xf8] sm:$0xff]  ;;  %v2189_v17 = vcombine.high %v878_v51, %v882_v1  ;;  %v2188_v25 = vcombine.low %v878_v51, %v882_v1 }
  0xe4   : > { %2290 = vmatprep.mubr.msk.bf16.mxu0 %vm698_vm0, %v657_v61  ;;  %v2172_v61 = vcombine.low %v862_v49, %v866_v52  ;;  %v2859_v63 = vcombine.high %v871_v59, %v875_v60  ;;  %v2876_v10 = vcombine.low %v871_v59, %v875_v60  ;;  %v902_v52 = vld [vmem:[%s3213_s5 + $0x1d0] sm:$0xff] }
  0xe5   : > { %2291 = vmatmul.mubr.msk.bf16.gmra.mrb[12].mxu0 %vm698_vm0, %v658_v62  ;;  %v2853_v62 = vcombine.low %v863_v53, %v867_v15  ;;  %v906_v15 = vld [vmem:[%s3213_s5 + $0x1f0] sm:$0xff] }
  0xe6   : > { %1415 = vmatprep.mubr.bf16.mxu0 %v2475_v0  ;;  %1285 = vmatpush1.bf16.msra.mxu1 %v2208_v19  ;;  %v2213_v58 = vcombine.high %v902_v52, %v906_v15  ;;  %v2212_v60 = vcombine.low %v902_v52, %v906_v15 }
  0xe7   : > { %1496 = vmatprep.subr.bf16.mxu1 %v2157_v23 }
 0x17f   : > { %v2280_v29 = vpop.f32.mrb[0].mxu0 }
 0x180   : > { %v766_v30 = vadd.f32 %v2280_v29, %v2794_v28  ;;  %v757_v32 = vpop.f32.mrb[1].mxu0  ;;  %v890_v29 = vld [vmem:[%s3213_s5 + $0x170] sm:$0xff] }
 0x181   : > { %v758_v33 = vadd.f32 %v2794_v28, %v757_v32  ;;  %v2281_v34 = vpop.f32.mrb[2].mxu0  ;;  %v887_v32 = vld [vmem:[%s3213_s5 + $0x158] sm:$0xff] }
 0x182   : > { %v769_v35 = vadd.f32 %v2281_v34, %v2794_v28  ;;  %v760_v36 = vpop.f32.mrb[3].mxu0  ;;  %v822_v38 = vmax.f32 %v766_v30, 0.0  ;;  %v2891_v30 = vcombine.low %v879_v2, %v883_v3 }
 0x183   : > { %v761_v37 = vadd.f32 %v2794_v28, %v760_v36  ;;  %v820_v47 = vmax.f32 %v758_v33, 0.0  ;;  %v891_v33 = vld [vmem:[%s3213_s5 + $0x178] sm:$0xff]  ;;  %v894_v36 = vld [vmem:[%s3213_s5 + $0x190] sm:$0xff] }
 0x184   : > { %v823_v41 = vmax.f32 %v769_v35, 0.0  ;;  %v2916_v40 = vcombine.high %v887_v32, %v891_v33  ;;  %v2919_v44 = vcombine.low %v887_v32, %v891_v33 }
 0x185   : > { %v821_v39 = vmax.f32 %v761_v37, 0.0 }
 0x186   : > { %v2812_v45 = vpack.c.bf16 %v823_v41, %v822_v38  ;;  %v898_v38 = vld [vmem:[%s3213_s5 + $0x1b0] sm:$0xff]  ;;  %v895_v41 = vld [vmem:[%s3213_s5 + $0x198] sm:$0xff] }
 0x187   : > { %v2814_v46 = vpack.c.bf16 %v821_v39, %v820_v47  ;;  %v2923_v49 = vcombine.high %v895_v41, %v899_v43  ;;  %v2204_v53 = vcombine.low %v894_v36, %v898_v38 }
 0x189   : > { %1303 = vmatmul.mubr.bf16.vlgmr.msra.gmra.mrb[0].mxu1 %v2814_v46  ;;  %1416 = vmatmul.mubr.bf16.vlgmr.msra.gmra.mrb[16].mxu0 %v2814_v46 }
 0x18a   : > { %1312 = vmatprep.mubr.bf16.mxu1 %v2475_v0  ;;  %1425 = vmatprep.mubr.bf16.mxu0 %v2475_v0 }
 0x18b   : > { %1497 = vmatpush1.bf16.msra.mxu1 %v2156_v22  ;;  %1610 = vmatpush1.bf16.msra.mxu0 %v2786_v26  ;;  %v886_v22 = vld [vmem:[%s3213_s5 + $0x150] sm:$0xff] }
 0x18c   : > { %1498 = vmatprep.subr.bf16.mxu1 %v2165_v48  ;;  %1611 = vmatprep.subr.bf16.mxu0 %v2819_v50  ;;  %v2197_v39 = vcombine.high %v886_v22, %v890_v29  ;;  %v2196_v42 = vcombine.low %v886_v22, %v890_v29  ;;  %v2205_v48 = vcombine.high %v894_v36, %v898_v38 }
 0x18f   : > { %1499 = vmatpush1.bf16.msra.mxu1 %v2164_v54  ;;  %1612 = vmatpush1.bf16.msra.mxu0 %v2835_v55  ;;  %v2935_v54 = vcombine.low %v895_v41, %v899_v43 }
 0x190   : > { %1500 = vmatprep.subr.bf16.mxu1 %v2173_v56  ;;  %1613 = vmatprep.subr.bf16.mxu0 %v2841_v57  ;;  %v903_v56 = vld [vmem:[%s3213_s5 + $0x1d8] sm:$0xff] }
 0x191   : > { %1313 = vmatmul.mubr.bf16.gmra.mrb[4].mxu1 %v2812_v45  ;;  %1426 = vmatmul.mubr.bf16.gmra.mrb[20].mxu0 %v2812_v45  ;;  %v2944_v59 = vcombine.high %v903_v56, %v907_v14 }
 0x192   : > { %v2284_v4 = vpop.f32.mrb[4].mxu0  ;;  %1322 = vmatprep.mubr.bf16.mxu1 %v2475_v0  ;;  %1435 = vmatprep.mubr.bf16.mxu0 %v2475_v0 }
 0x193   : > { %v782_v6 = vadd.f32 %v2284_v4, %v2794_v28  ;;  %v773_v7 = vpop.f32.mrb[5].mxu0  ;;  %1501 = vmatpush1.bf16.msra.mxu1 %v2172_v61  ;;  %1614 = vmatpush1.bf16.msra.mxu0 %v2853_v62  ;;  %v2947_v61 = vcombine.low %v903_v56, %v907_v14 }
 0x194   : > { %v774_v12 = vadd.f32 %v2794_v28, %v773_v7  ;;  %v2285_v13 = vpop.f32.mrb[6].mxu0  ;;  %1502 = vmatprep.subr.bf16.mxu1 %v2181_v31  ;;  %1615 = vmatprep.subr.bf16.mxu0 %v2859_v63 }
 0x195   : > { %v785_v19 = vadd.f32 %v2285_v13, %v2794_v28  ;;  %v776_v20 = vpop.f32.mrb[7].mxu0  ;;  %v826_v23 = vmax.f32 %v782_v6, 0.0 }
 0x196   : > { %v777_v21 = vadd.f32 %v2794_v28, %v776_v20  ;;  %v824_v34 = vmax.f32 %v774_v12, 0.0 }
 0x197   : > { %v827_v24 = vmax.f32 %v785_v19, 0.0  ;;  %1503 = vmatpush1.bf16.msra.mxu1 %v2180_v9  ;;  %1616 = vmatpush1.bf16.msra.mxu0 %v2876_v10 }
 0x198   : > { %v825_v35 = vmax.f32 %v777_v21, 0.0  ;;  %1504 = vmatprep.subr.bf16.mxu1 %v2189_v17  ;;  %1617 = vmatprep.subr.bf16.mxu0 %v2880_v18 }
 0x199   : > { %v2903_v37 = vpack.c.bf16 %v827_v24, %v826_v23 }
 0x19a   : > { %v2914_v47 = vpack.c.bf16 %v825_v35, %v824_v34 }
 0x19b   : > { %1505 = vmatpush1.bf16.msra.mxu1 %v2188_v25  ;;  %1618 = vmatpush1.bf16.msra.mxu0 %v2891_v30 }
 0x19c   : > { %1323 = vmatmul.mubr.bf16.gmra.mrb[8].mxu1 %v2914_v47  ;;  %1436 = vmatmul.mubr.bf16.gmra.mrb[24].mxu0 %v2914_v47 }
 0x19d   : > { %1332 = vmatprep.mubr.bf16.mxu1 %v2475_v0  ;;  %1445 = vmatprep.mubr.bf16.mxu0 %v2475_v0 }
 0x19e   : > { %1506 = vmatprep.subr.bf16.mxu1 %v2197_v39  ;;  %1619 = vmatprep.subr.bf16.mxu0 %v2916_v40 }
 0x19f   : > { %1507 = vmatpush1.bf16.msra.mxu1 %v2196_v42  ;;  %1620 = vmatpush1.bf16.msra.mxu0 %v2919_v44 }
 0x1a0   : > { %1508 = vmatprep.subr.bf16.mxu1 %v2205_v48  ;;  %1621 = vmatprep.subr.bf16.mxu0 %v2923_v49 }
 0x1a3   : > { %1509 = vmatpush1.bf16.msra.mxu1 %v2204_v53  ;;  %1622 = vmatpush1.bf16.msra.mxu0 %v2935_v54 }
 0x1a4   : > { %1333 = vmatmul.mubr.bf16.gmra.mrb[12].mxu1 %v2903_v37  ;;  %1446 = vmatmul.mubr.bf16.gmra.mrb[28].mxu0 %v2903_v37 }
 0x1a5   : > { %v2288_v31 = vpop.f32.mrb[8].mxu0  ;;  %1342 = vmatprep.mubr.bf16.mxu1 %v2475_v0  ;;  %1455 = vmatprep.mubr.bf16.mxu0 %v2475_v0 }
 0x1a6   : > { %v798_v51 = vadd.f32 %v2288_v31, %v2794_v28  ;;  %v789_v1 = vpop.f32.mrb[9].mxu0  ;;  %1510 = vmatprep.subr.bf16.mxu1 %v2213_v58  ;;  %1623 = vmatprep.subr.bf16.mxu0 %v2944_v59 }
 0x1a7   : > { %v790_v2 = vadd.f32 %v2794_v28, %v789_v1  ;;  %v2289_v3 = vpop.f32.mrb[10].mxu0  ;;  %1511 = vmatpush1.bf16.msra.mxu1 %v2212_v60  ;;  %1624 = vmatpush1.bf16.msra.mxu0 %v2947_v61 }
 0x1a8   : > { %v801_v4 = vadd.f32 %v2289_v3, %v2794_v28  ;;  %v792_v6 = vpop.f32.mrb[11].mxu0  ;;  %2294 = vmatprep.subr.bf16.mxu1 %v2788_v27  ;;  %v830_v9 = vmax.f32 %v798_v51, 0.0 }
 0x1a9   : > { %v793_v7 = vadd.f32 %v2794_v28, %v792_v6  ;;  %v828_v13 = vmax.f32 %v790_v2, 0.0 }
 0x1aa   : > { %v831_v12 = vmax.f32 %v801_v4, 0.0 }
 0x1ab   : > { %v829_v17 = vmax.f32 %v793_v7, 0.0 }
 0x1ac   : > { %v2960_v19 = vpack.c.bf16 %v831_v12, %v830_v9 }
 0x1ad   : > { %v840_v20 = vpack.c.bf16 %v829_v17, %v828_v13 }
 0x1af   : > { %1343 = vmatmul.mubr.bf16.gmra.mrb[16].mxu1 %v840_v20  ;;  %1456 = vmatmul.mubr.bf16.gmra.mrb[32].mxu0 %v840_v20 }
 0x1b0   : > { %1352 = vmatprep.mubr.bf16.mxu1 %v2475_v0  ;;  %1465 = vmatprep.mubr.bf16.mxu0 %v2475_v0 }
 0x1b7   : > { %1353 = vmatmul.mubr.bf16.gmra.mrb[20].mxu1 %v2960_v19  ;;  %1466 = vmatmul.mubr.bf16.gmra.mrb[36].mxu0 %v2960_v19 }
 0x1b8   : > { %v2292_v27 = vpop.f32.mrb[12].mxu0  ;;  %1362 = vmatprep.mubr.bf16.mxu1 %v2475_v0  ;;  %1475 = vmatprep.mubr.bf16.mxu0 %v2475_v0 }
 0x1b9   : > { %v814_v21 = vadd.f32 %v2292_v27, %v2794_v28  ;;  %v805_v22 = vpop.f32.mrb[13].mxu0 }
 0x1ba   : > { %v806_v23 = vadd.f32 %v2794_v28, %v805_v22  ;;  %v2293_v24 = vpop.f32.mrb[14].mxu0 }
 0x1bb   : > { %v817_v25 = vadd.f32 %v2293_v24, %v2794_v28  ;;  %v808_v29 = vpop.f32.mrb[15].mxu0  ;;  %v834_v33 = vmax.f32 %v814_v21, 0.0 }
 0x1bc   : > { %v809_v32 = vadd.f32 %v2794_v28, %v808_v29  ;;  %v832_v35 = vmax.f32 %v806_v23, 0.0  ;;  %v924_v28 = vsub.s32 3, %v2619_v5 }
 0x1bd   : > { %v835_v34 = vmax.f32 %v817_v25, 0.0 }
 0x1be   : > { %v833_v36 = vmax.f32 %v809_v32, 0.0 }
 0x1bf   : > { %v843_v38 = vpack.c.bf16 %v835_v34, %v834_v33 }
 0x1c0   : > { %v842_v41 = vpack.c.bf16 %v833_v36, %v832_v35 }
 0x1c2   : > { %1363 = vmatmul.mubr.bf16.gmra.mrb[24].mxu1 %v842_v41  ;;  %1476 = vmatmul.mubr.bf16.gmra.mrb[40].mxu0 %v842_v41 }
 0x1c3   : > { %1372 = vmatprep.mubr.bf16.mxu1 %v2475_v0  ;;  %1485 = vmatprep.mubr.bf16.mxu0 %v2475_v0 }
 0x1ca   : > { %1373 = vmatmul.mubr.bf16.gmra.mrb[28].mxu1 %v843_v38  ;;  %1486 = vmatmul.mubr.bf16.gmra.mrb[44].mxu0 %v843_v38 }
 0x1cb   : > { %1528 = vmatprep.mubr.bf16.mxu1 %v2475_v0  ;;  %1641 = vmatprep.mubr.bf16.mxu0 %v2475_v0 }
 0x1d2   : > { %1529 = vmatmul.mubr.bf16.vlgmr.msra.gmra.mrb[32].mxu1 %v2814_v46  ;;  %1642 = vmatmul.mubr.bf16.vlgmr.msra.gmra.mrb[48].mxu0 %v2814_v46 }
 0x1d3   : > { %2302 = vmatpush1.bf16.msra.mxu1 %v2786_v26  ;;  %1538 = vmatprep.mubr.bf16.mxu1 %v2475_v0  ;;  %v3018_v26 = vld [vmem:[%s3214_s6] sm:$0xff] }
 0x1d4   : > { %2295 = vmatprep.subr.bf16.mxu1 %v2819_v50  ;;  %1651 = vmatprep.mubr.bf16.mxu0 %v2475_v0  ;;  %v3029_v46 = vrot.slane %v3018_v26, %v579_v16  ;;  %v3037_v50 = vrot.slane %v3018_v26, %v924_v28 }
 0x1d7   : > { %2303 = vmatpush1.bf16.msra.mxu1 %v2835_v55 }
 0x1d8   : > { %2296 = vmatprep.subr.bf16.mxu1 %v2841_v57 }
 0x1da   : > { %1539 = vmatmul.mubr.bf16.gmra.mrb[36].mxu1 %v2812_v45  ;;  %1652 = vmatmul.mubr.bf16.gmra.mrb[52].mxu0 %v2812_v45  ;;  %v3024_v45 = vrot.slane %v3018_v26, %v395_v8 }
 0x1db   : > { %1548 = vmatprep.mubr.bf16.mxu1 %v2475_v0  ;;  %1661 = vmatprep.mubr.bf16.mxu0 %v2475_v0 }
 0x1dc   : > { %2304 = vmatpush1.bf16.msra.mxu1 %v2853_v62 }
 0x1dd   : > { %2297 = vmatprep.subr.bf16.mxu1 %v2859_v63 }
 0x1e0   : > { %2305 = vmatpush1.bf16.msra.mxu1 %v2876_v10 }
 0x1e1   : > { %2298 = vmatprep.subr.bf16.mxu1 %v2880_v18 }
 0x1e2   : > { %1549 = vmatmul.mubr.bf16.gmra.mrb[40].mxu1 %v2914_v47  ;;  %1662 = vmatmul.mubr.bf16.gmra.mrb[56].mxu0 %v2914_v47 }
 0x1e3   : > { %1558 = vmatprep.mubr.bf16.mxu1 %v2475_v0  ;;  %1671 = vmatprep.mubr.bf16.mxu0 %v2475_v0 }
 0x1e4   : > { %2306 = vmatpush1.bf16.msra.mxu1 %v2891_v30 }
 0x1e5   : > { %2299 = vmatprep.subr.bf16.mxu1 %v2916_v40 }
 0x1e8   : > { %2307 = vmatpush1.bf16.msra.mxu1 %v2919_v44 }
 0x1e9   : > { %2300 = vmatprep.subr.bf16.mxu1 %v2923_v49 }
 0x1ea   : > { %1559 = vmatmul.mubr.bf16.gmra.mrb[44].mxu1 %v2903_v37  ;;  %1672 = vmatmul.mubr.bf16.gmra.mrb[60].mxu0 %v2903_v37 }
 0x1eb   : > { %1568 = vmatprep.mubr.bf16.mxu1 %v2475_v0  ;;  %1681 = vmatprep.mubr.bf16.mxu0 %v2475_v0 }
 0x1ec   : > { %2308 = vmatpush1.bf16.msra.mxu1 %v2935_v54 }
 0x1ed   : > { %2301 = vmatprep.subr.bf16.mxu1 %v2944_v59 }
 0x1f0   : > { %2309 = vmatpush1.bf16.msra.mxu1 %v2947_v61 }
 0x1f2   : > { %1569 = vmatmul.mubr.bf16.gmra.mrb[48].mxu1 %v840_v20  ;;  %1682 = vmatmul.mubr.bf16.gmra.mrb[64].mxu0 %v840_v20 }
 0x1f3   : > { %1578 = vmatprep.mubr.bf16.mxu1 %v2475_v0  ;;  %1691 = vmatprep.mubr.bf16.mxu0 %v2475_v0 }
 0x1fa   : > { %1579 = vmatmul.mubr.bf16.gmra.mrb[52].mxu1 %v2960_v19  ;;  %1692 = vmatmul.mubr.bf16.gmra.mrb[68].mxu0 %v2960_v19 }
 0x1fb   : > { %1588 = vmatprep.mubr.bf16.mxu1 %v2475_v0  ;;  %1701 = vmatprep.mubr.bf16.mxu0 %v2475_v0 }
 0x202   : > { %1589 = vmatmul.mubr.bf16.gmra.mrb[56].mxu1 %v842_v41  ;;  %1702 = vmatmul.mubr.bf16.gmra.mrb[72].mxu0 %v842_v41 }
 0x203   : > { %1598 = vmatprep.mubr.bf16.mxu1 %v2475_v0 }
 0x20a   : > { %1599 = vmatmul.mubr.bf16.gmra.mrb[60].mxu1 %v843_v38 }
 0x20b   : > { %1711 = vmatprep.mubr.bf16.mxu1 %v2475_v0  ;;  %v3034_v0 = vrot.slane %v3018_v26, %v479_v11 }
 0x212   : > { %1712 = vmatmul.mubr.bf16.vlgmr.msra.gmra.mrb[64].mxu1 %v843_v38 }
 0x25c   : > { %v1304_v55 = vpop.f32.mrb[0].mxu1  ;;  %v1417_v57 = vpop.f32.mrb[16].mxu0 }
 0x25d   : > { %v1305_v62 = vadd.f32 %v1304_v55, %v3024_v45  ;;  %v1418_v8 = vadd.f32 %v1417_v57, %v3029_v46  ;;  %v1306_v63 = vpop.f32.mrb[1].mxu1  ;;  %v1419_v10 = vpop.f32.mrb[17].mxu0 }
 0x25e   : > { %v1307_v18 = vadd.f32 %v1306_v63, %v3034_v0  ;;  %v1420_v16 = vadd.f32 %v1419_v10, %v3037_v50  ;;  %v1308_v30 = vpop.f32.mrb[2].mxu1  ;;  %v1421_v37 = vpop.f32.mrb[18].mxu0 }
 0x25f   : > { %v1309_v11 = vadd.f32 %v1308_v30, %v3024_v45  ;;  %v1422_v43 = vadd.f32 %v1421_v37, %v3029_v46  ;;  %v1310_v47 = vpop.f32.mrb[3].mxu1  ;;  %v1423_v39 = vpop.f32.mrb[19].mxu0  ;;  %v1722_v44 = vmax.f32 %v1305_v62, 0.0  ;;  %v1724_v48 = vmax.f32 %v1418_v8, 0.0 }
 0x260   : > { %v1311_v40 = vadd.f32 %v1310_v47, %v3034_v0  ;;  %v1424_v42 = vadd.f32 %v1423_v39, %v3037_v50  ;;  %v1723_v53 = vmax.f32 %v1307_v18, 0.0  ;;  %v1725_v15 = vmax.f32 %v1420_v16, 0.0 }
 0x261   : > { %v1730_v49 = vmax.f32 %v1309_v11, 0.0  ;;  %v1732_v52 = vmax.f32 %v1422_v43, 0.0 }
 0x262   : > { %v1731_v54 = vmax.f32 %v1311_v40, 0.0  ;;  %v1733_v56 = vmax.f32 %v1424_v42, 0.0 }
 0x263   : > { %v1850_v14 = vmax.f32 %v1722_v44, %v1730_v49  ;;  %v1892_v58 = vmax.f32 %v1724_v48, %v1732_v52 }
 0x264   : > { %v1871_v59 = vmax.f32 %v1723_v53, %v1731_v54  ;;  %v1913_v60 = vmax.f32 %v1725_v15, %v1733_v56  ;;  %v1314_v61 = vpop.f32.mrb[4].mxu1  ;;  %v1427_v31 = vpop.f32.mrb[20].mxu0 }
 0x265   : > { %v1315_v51 = vadd.f32 %v1314_v61, %v3024_v45  ;;  %v1428_v1 = vadd.f32 %v1427_v31, %v3029_v46  ;;  %v1316_v2 = vpop.f32.mrb[5].mxu1  ;;  %v1429_v3 = vpop.f32.mrb[21].mxu0 }
 0x266   : > { %v1317_v4 = vadd.f32 %v1316_v2, %v3034_v0  ;;  %v1430_v6 = vadd.f32 %v1429_v3, %v3037_v50  ;;  %v1318_v7 = vpop.f32.mrb[6].mxu1  ;;  %v1431_v9 = vpop.f32.mrb[22].mxu0 }
 0x267   : > { %v1738_v12 = vmax.f32 %v1315_v51, 0.0  ;;  %v1740_v13 = vmax.f32 %v1428_v1, 0.0  ;;  %v1319_v17 = vadd.f32 %v1318_v7, %v3024_v45  ;;  %v1432_v19 = vadd.f32 %v1431_v9, %v3029_v46  ;;  %v1320_v20 = vpop.f32.mrb[7].mxu1  ;;  %v1433_v27 = vpop.f32.mrb[23].mxu0 }
 0x268   : > { %v1739_v21 = vmax.f32 %v1317_v4, 0.0  ;;  %v1741_v22 = vmax.f32 %v1430_v6, 0.0  ;;  %v1321_v23 = vadd.f32 %v1320_v20, %v3034_v0  ;;  %v1434_v24 = vadd.f32 %v1433_v27, %v3037_v50 }
 0x269   : > { %v1851_v25 = vmax.f32 %v1850_v14, %v1738_v12  ;;  %v1893_v29 = vmax.f32 %v1892_v58, %v1740_v13  ;;  %v1746_v32 = vmax.f32 %v1319_v17, 0.0  ;;  %v1748_v33 = vmax.f32 %v1432_v19, 0.0 }
 0x26a   : > { %v1872_v34 = vmax.f32 %v1871_v59, %v1739_v21  ;;  %v1914_v35 = vmax.f32 %v1913_v60, %v1741_v22  ;;  %v1747_v36 = vmax.f32 %v1321_v23, 0.0  ;;  %v1749_v38 = vmax.f32 %v1434_v24, 0.0 }
 0x26b   : > { %v1852_v41 = vmax.f32 %v1851_v25, %v1746_v32  ;;  %v1894_v28 = vmax.f32 %v1893_v29, %v1748_v33 }
 0x26c   : > { %v1873_v55 = vmax.f32 %v1872_v34, %v1747_v36  ;;  %v1915_v57 = vmax.f32 %v1914_v35, %v1749_v38 }
 0x26f   : > { %v1324_v62 = vpop.f32.mrb[8].mxu1  ;;  %v1437_v8 = vpop.f32.mrb[24].mxu0 }
 0x270   : > { %v1325_v63 = vadd.f32 %v1324_v62, %v3024_v45  ;;  %v1438_v10 = vadd.f32 %v1437_v8, %v3029_v46  ;;  %v1326_v18 = vpop.f32.mrb[9].mxu1  ;;  %v1439_v16 = vpop.f32.mrb[25].mxu0 }
 0x271   : > { %v1327_v30 = vadd.f32 %v1326_v18, %v3034_v0  ;;  %v1440_v37 = vadd.f32 %v1439_v16, %v3037_v50  ;;  %v1328_v11 = vpop.f32.mrb[10].mxu1  ;;  %v1441_v43 = vpop.f32.mrb[26].mxu0 }
 0x272   : > { %v1754_v47 = vmax.f32 %v1325_v63, 0.0  ;;  %v1756_v39 = vmax.f32 %v1438_v10, 0.0  ;;  %v1329_v40 = vadd.f32 %v1328_v11, %v3024_v45  ;;  %v1442_v42 = vadd.f32 %v1441_v43, %v3029_v46  ;;  %v1330_v44 = vpop.f32.mrb[11].mxu1  ;;  %v1443_v48 = vpop.f32.mrb[27].mxu0 }
 0x273   : > { %v1755_v49 = vmax.f32 %v1327_v30, 0.0  ;;  %v1757_v52 = vmax.f32 %v1440_v37, 0.0  ;;  %v1331_v53 = vadd.f32 %v1330_v44, %v3034_v0  ;;  %v1444_v15 = vadd.f32 %v1443_v48, %v3037_v50 }
 0x274   : > { %v1853_v54 = vmax.f32 %v1852_v41, %v1754_v47  ;;  %v1895_v56 = vmax.f32 %v1894_v28, %v1756_v39  ;;  %v1762_v14 = vmax.f32 %v1329_v40, 0.0  ;;  %v1764_v58 = vmax.f32 %v1442_v42, 0.0 }
 0x275   : > { %v1874_v59 = vmax.f32 %v1873_v55, %v1755_v49  ;;  %v1916_v60 = vmax.f32 %v1915_v57, %v1757_v52  ;;  %v1763_v61 = vmax.f32 %v1331_v53, 0.0  ;;  %v1765_v31 = vmax.f32 %v1444_v15, 0.0 }
 0x276   : > { %v1854_v51 = vmax.f32 %v1853_v54, %v1762_v14  ;;  %v1896_v1 = vmax.f32 %v1895_v56, %v1764_v58 }
 0x277   : > { %v1875_v2 = vmax.f32 %v1874_v59, %v1763_v61  ;;  %v1917_v3 = vmax.f32 %v1916_v60, %v1765_v31  ;;  %v1334_v4 = vpop.f32.mrb[12].mxu1  ;;  %v1447_v6 = vpop.f32.mrb[28].mxu0 }
 0x278   : > { %v1335_v7 = vadd.f32 %v1334_v4, %v3024_v45  ;;  %v1448_v9 = vadd.f32 %v1447_v6, %v3029_v46  ;;  %v1336_v12 = vpop.f32.mrb[13].mxu1  ;;  %v1449_v13 = vpop.f32.mrb[29].mxu0 }
 0x279   : > { %v1337_v17 = vadd.f32 %v1336_v12, %v3034_v0  ;;  %v1450_v19 = vadd.f32 %v1449_v13, %v3037_v50  ;;  %v1338_v20 = vpop.f32.mrb[14].mxu1  ;;  %v1451_v27 = vpop.f32.mrb[30].mxu0 }
 0x27a   : > { %v1770_v21 = vmax.f32 %v1335_v7, 0.0  ;;  %v1772_v22 = vmax.f32 %v1448_v9, 0.0  ;;  %v1339_v23 = vadd.f32 %v1338_v20, %v3024_v45  ;;  %v1452_v24 = vadd.f32 %v1451_v27, %v3029_v46  ;;  %v1340_v25 = vpop.f32.mrb[15].mxu1  ;;  %v1453_v29 = vpop.f32.mrb[31].mxu0 }
 0x27b   : > { %v1771_v32 = vmax.f32 %v1337_v17, 0.0  ;;  %v1773_v33 = vmax.f32 %v1450_v19, 0.0  ;;  %v1341_v34 = vadd.f32 %v1340_v25, %v3034_v0  ;;  %v1454_v35 = vadd.f32 %v1453_v29, %v3037_v50 }
 0x27c   : > { %v1855_v36 = vmax.f32 %v1854_v51, %v1770_v21  ;;  %v1897_v38 = vmax.f32 %v1896_v1, %v1772_v22  ;;  %v1778_v41 = vmax.f32 %v1339_v23, 0.0  ;;  %v1780_v28 = vmax.f32 %v1452_v24, 0.0 }
 0x27d   : > { %v1876_v55 = vmax.f32 %v1875_v2, %v1771_v32  ;;  %v1918_v57 = vmax.f32 %v1917_v3, %v1773_v33  ;;  %v1779_v62 = vmax.f32 %v1341_v34, 0.0  ;;  %v1781_v8 = vmax.f32 %v1454_v35, 0.0 }
 0x27e   : > { %v1856_v63 = vmax.f32 %v1855_v36, %v1778_v41  ;;  %v1898_v10 = vmax.f32 %v1897_v38, %v1780_v28 }
 0x27f   : > { %v1877_v18 = vmax.f32 %v1876_v55, %v1779_v62  ;;  %v1919_v16 = vmax.f32 %v1918_v57, %v1781_v8 }
 0x282   : > { %v1344_v30 = vpop.f32.mrb[16].mxu1  ;;  %v1457_v37 = vpop.f32.mrb[32].mxu0 }
 0x283   : > { %v1345_v11 = vadd.f32 %v1344_v30, %v3024_v45  ;;  %v1458_v43 = vadd.f32 %v1457_v37, %v3029_v46  ;;  %v1346_v47 = vpop.f32.mrb[17].mxu1  ;;  %v1459_v39 = vpop.f32.mrb[33].mxu0 }
 0x284   : > { %v1347_v40 = vadd.f32 %v1346_v47, %v3034_v0  ;;  %v1460_v42 = vadd.f32 %v1459_v39, %v3037_v50  ;;  %v1348_v44 = vpop.f32.mrb[18].mxu1  ;;  %v1461_v48 = vpop.f32.mrb[34].mxu0 }
 0x285   : > { %v1786_v49 = vmax.f32 %v1345_v11, 0.0  ;;  %v1788_v52 = vmax.f32 %v1458_v43, 0.0  ;;  %v1349_v53 = vadd.f32 %v1348_v44, %v3024_v45  ;;  %v1462_v15 = vadd.f32 %v1461_v48, %v3029_v46  ;;  %v1350_v54 = vpop.f32.mrb[19].mxu1  ;;  %v1463_v56 = vpop.f32.mrb[35].mxu0 }
 0x286   : > { %v1787_v14 = vmax.f32 %v1347_v40, 0.0  ;;  %v1789_v58 = vmax.f32 %v1460_v42, 0.0  ;;  %v1351_v59 = vadd.f32 %v1350_v54, %v3034_v0  ;;  %v1464_v60 = vadd.f32 %v1463_v56, %v3037_v50 }
 0x287   : > { %v1857_v61 = vmax.f32 %v1856_v63, %v1786_v49  ;;  %v1899_v31 = vmax.f32 %v1898_v10, %v1788_v52  ;;  %v1794_v51 = vmax.f32 %v1349_v53, 0.0  ;;  %v1796_v1 = vmax.f32 %v1462_v15, 0.0 }
 0x288   : > { %v1878_v2 = vmax.f32 %v1877_v18, %v1787_v14  ;;  %v1920_v3 = vmax.f32 %v1919_v16, %v1789_v58  ;;  %v1795_v4 = vmax.f32 %v1351_v59, 0.0  ;;  %v1797_v6 = vmax.f32 %v1464_v60, 0.0 }
 0x289   : > { %v1858_v7 = vmax.f32 %v1857_v61, %v1794_v51  ;;  %v1900_v9 = vmax.f32 %v1899_v31, %v1796_v1  ;;  %v928_v44 = vsub.s32 4, %v2619_v5  ;;  %v936_v15 = vsub.s32 6, %v2619_v5 }
 0x28a   : > { %v1879_v12 = vmax.f32 %v1878_v2, %v1795_v4  ;;  %v1921_v13 = vmax.f32 %v1920_v3, %v1797_v6  ;;  %v1354_v17 = vpop.f32.mrb[20].mxu1  ;;  %v1467_v19 = vpop.f32.mrb[36].mxu0  ;;  %v932_v54 = vsub.s32 5, %v2619_v5  ;;  %v2478_v60 = vmov 1966171168  }
 0x28b   : > { %v1355_v20 = vadd.f32 %v1354_v17, %v3024_v45  ;;  %v1468_v27 = vadd.f32 %v1467_v19, %v3029_v46  ;;  %v1356_v21 = vpop.f32.mrb[21].mxu1  ;;  %v1469_v22 = vpop.f32.mrb[37].mxu0  ;;  %v2031_v61 = vunpack.c.l.s4 %v2478_v60  ;;  %v940_v31 = vsub.s32 7, %v2619_v5 }
 0x28c   : > { %v1357_v23 = vadd.f32 %v1356_v21, %v3034_v0  ;;  %v1470_v24 = vadd.f32 %v1469_v22, %v3037_v50  ;;  %v1358_v25 = vpop.f32.mrb[22].mxu1  ;;  %v1471_v29 = vpop.f32.mrb[38].mxu0 }
 0x28d   : > { %v1802_v32 = vmax.f32 %v1355_v20, 0.0  ;;  %v1804_v33 = vmax.f32 %v1468_v27, 0.0  ;;  %v1359_v34 = vadd.f32 %v1358_v25, %v3024_v45  ;;  %v1472_v35 = vadd.f32 %v1471_v29, %v3029_v46  ;;  %v1360_v36 = vpop.f32.mrb[23].mxu1  ;;  %v1473_v38 = vpop.f32.mrb[39].mxu0 }
 0x28e   : > { %v1803_v41 = vmax.f32 %v1357_v23, 0.0  ;;  %v1805_v28 = vmax.f32 %v1470_v24, 0.0  ;;  %v1361_v55 = vadd.f32 %v1360_v36, %v3034_v0  ;;  %v1474_v57 = vadd.f32 %v1473_v38, %v3037_v50 }
 0x28f   : > { %v1859_v62 = vmax.f32 %v1858_v7, %v1802_v32  ;;  %v1901_v8 = vmax.f32 %v1900_v9, %v1804_v33  ;;  %v1810_v63 = vmax.f32 %v1359_v34, 0.0  ;;  %v1812_v10 = vmax.f32 %v1472_v35, 0.0 }
 0x290   : > { %v1880_v18 = vmax.f32 %v1879_v12, %v1803_v41  ;;  %v1922_v16 = vmax.f32 %v1921_v13, %v1805_v28  ;;  %v1811_v30 = vmax.f32 %v1361_v55, 0.0  ;;  %v1813_v37 = vmax.f32 %v1474_v57, 0.0 }
 0x291   : > { %v1860_v11 = vmax.f32 %v1859_v62, %v1810_v63  ;;  %v1902_v43 = vmax.f32 %v1901_v8, %v1812_v10  ;;  %v3100_v36 = vrot.slane %v3018_v26, %v928_v44  ;;  %v3105_v57 = vrot.slane %v3018_v26, %v936_v15 }
 0x292   : > { %v1881_v47 = vmax.f32 %v1880_v18, %v1811_v30  ;;  %v1923_v39 = vmax.f32 %v1922_v16, %v1813_v37  ;;  %v3108_v62 = vrot.slane %v3018_v26, %v932_v54  ;;  %v2032_v16 = vunpack.c.0.s8 %v2031_v61 }
 0x293   : > { %v3113_v30 = vrot.slane %v3018_v26, %v940_v31 }
 0x295   : > { %v1364_v40 = vpop.f32.mrb[24].mxu1  ;;  %v1477_v42 = vpop.f32.mrb[40].mxu0 }
 0x296   : > { %v1365_v48 = vadd.f32 %v1364_v40, %v3024_v45  ;;  %v1478_v49 = vadd.f32 %v1477_v42, %v3029_v46  ;;  %v1366_v52 = vpop.f32.mrb[25].mxu1  ;;  %v1479_v53 = vpop.f32.mrb[41].mxu0 }
 0x297   : > { %v1367_v56 = vadd.f32 %v1366_v52, %v3034_v0  ;;  %v1480_v14 = vadd.f32 %v1479_v53, %v3037_v50  ;;  %v1368_v58 = vpop.f32.mrb[26].mxu1  ;;  %v1481_v59 = vpop.f32.mrb[42].mxu0 }
 0x298   : > { %v1818_v51 = vmax.f32 %v1365_v48, 0.0  ;;  %v1820_v1 = vmax.f32 %v1478_v49, 0.0  ;;  %v1369_v2 = vadd.f32 %v1368_v58, %v3024_v45  ;;  %v1482_v3 = vadd.f32 %v1481_v59, %v3029_v46  ;;  %v1370_v4 = vpop.f32.mrb[27].mxu1  ;;  %v1483_v6 = vpop.f32.mrb[43].mxu0 }
 0x299   : > { %v1819_v7 = vmax.f32 %v1367_v56, 0.0  ;;  %v1821_v9 = vmax.f32 %v1480_v14, 0.0  ;;  %v1371_v12 = vadd.f32 %v1370_v4, %v3034_v0  ;;  %v1484_v13 = vadd.f32 %v1483_v6, %v3037_v50 }
 0x29a   : > { %v1861_v17 = vmax.f32 %v1860_v11, %v1818_v51  ;;  %v1903_v19 = vmax.f32 %v1902_v43, %v1820_v1  ;;  %v1826_v20 = vmax.f32 %v1369_v2, 0.0  ;;  %v1828_v27 = vmax.f32 %v1482_v3, 0.0 }
 0x29b   : > { %v1882_v21 = vmax.f32 %v1881_v47, %v1819_v7  ;;  %v1924_v22 = vmax.f32 %v1923_v39, %v1821_v9  ;;  %v1827_v23 = vmax.f32 %v1371_v12, 0.0  ;;  %v1829_v24 = vmax.f32 %v1484_v13, 0.0 }
 0x29c   : > { %v1862_v25 = vmax.f32 %v1861_v17, %v1826_v20  ;;  %v1904_v29 = vmax.f32 %v1903_v19, %v1828_v27 }
 0x29d   : > { %v1883_v32 = vmax.f32 %v1882_v21, %v1827_v23  ;;  %v1925_v33 = vmax.f32 %v1924_v22, %v1829_v24  ;;  %v1374_v34 = vpop.f32.mrb[28].mxu1  ;;  %v1487_v35 = vpop.f32.mrb[44].mxu0 }
 0x29e   : > { %v1375_v38 = vadd.f32 %v1374_v34, %v3024_v45  ;;  %v1488_v41 = vadd.f32 %v1487_v35, %v3029_v46  ;;  %v1376_v28 = vpop.f32.mrb[29].mxu1  ;;  %v1489_v55 = vpop.f32.mrb[45].mxu0 }
 0x29f   : > { %v1377_v8 = vadd.f32 %v1376_v28, %v3034_v0  ;;  %v1490_v63 = vadd.f32 %v1489_v55, %v3037_v50  ;;  %v1378_v10 = vpop.f32.mrb[30].mxu1  ;;  %v1491_v18 = vpop.f32.mrb[46].mxu0 }
 0x2a0   : > { %v1834_v37 = vmax.f32 %v1375_v38, 0.0  ;;  %v1836_v11 = vmax.f32 %v1488_v41, 0.0  ;;  %v1379_v43 = vadd.f32 %v1378_v10, %v3024_v45  ;;  %v1492_v47 = vadd.f32 %v1491_v18, %v3029_v46  ;;  %v1380_v39 = vpop.f32.mrb[31].mxu1  ;;  %v1493_v40 = vpop.f32.mrb[47].mxu0 }
 0x2a1   : > { %v1835_v42 = vmax.f32 %v1377_v8, 0.0  ;;  %v1837_v44 = vmax.f32 %v1490_v63, 0.0  ;;  %v1381_v48 = vadd.f32 %v1380_v39, %v3034_v0  ;;  %v1494_v49 = vadd.f32 %v1493_v40, %v3037_v50 }
 0x2a2   : > { %v1863_v52 = vmax.f32 %v1862_v25, %v1834_v37  ;;  %v1905_v53 = vmax.f32 %v1904_v29, %v1836_v11  ;;  %v1842_v15 = vmax.f32 %v1379_v43, 0.0  ;;  %v1844_v54 = vmax.f32 %v1492_v47, 0.0 }
 0x2a3   : > { %v1884_v26 = vmax.f32 %v1883_v32, %v1835_v42  ;;  %v1926_v56 = vmax.f32 %v1925_v33, %v1837_v44  ;;  %v1843_v14 = vmax.f32 %v1381_v48, 0.0  ;;  %v1845_v58 = vmax.f32 %v1494_v49, 0.0 }
 0x2a4   : > { %v1864_v59 = vmax.f32 %v1863_v52, %v1842_v15  ;;  %v1906_v45 = vmax.f32 %v1905_v53, %v1844_v54  ;;  %v3120_v46 = vsub.s32 %v2032_v16, %v2619_v5 }
 0x2a5   : > { %v1885_v60 = vmax.f32 %v1884_v26, %v1843_v14  ;;  %v1927_v61 = vmax.f32 %v1926_v56, %v1845_v58  ;;  %v1530_v31 = vpop.f32.mrb[32].mxu1  ;;  %v1643_v51 = vpop.f32.mrb[48].mxu0 }
 0x2a6   : > { %v1865_v0 = vrot.slane %v1864_v59, 4  ;;  %v1907_v1 = vrot.slane %v1906_v45, 4  ;;  %v1531_v50 = vadd.f32 %v1530_v31, %v3100_v36  ;;  %v1644_v2 = vadd.f32 %v1643_v51, %v3105_v57  ;;  %v1532_v3 = vpop.f32.mrb[33].mxu1  ;;  %v1645_v4 = vpop.f32.mrb[49].mxu0 }
 0x2a7   : > { %v1886_v6 = vrot.slane %v1885_v60, 4  ;;  %v1928_v7 = vrot.slane %v1927_v61, 4  ;;  %v1533_v9 = vadd.f32 %v1532_v3, %v3108_v62  ;;  %v1646_v12 = vadd.f32 %v1645_v4, %v3113_v30  ;;  %v1534_v13 = vpop.f32.mrb[34].mxu1  ;;  %v1647_v5 = vpop.f32.mrb[50].mxu0 }
 0x2a8   : > { %v1866_v17 = vmax.f32 %v1864_v59, %v1865_v0  ;;  %v1908_v19 = vmax.f32 %v1906_v45, %v1907_v1  ;;  %v1726_v20 = vmax.f32 %v1531_v50, 0.0  ;;  %v1728_v27 = vmax.f32 %v1644_v2, 0.0  ;;  %v1536_v21 = vpop.f32.mrb[35].mxu1  ;;  %v1649_v22 = vpop.f32.mrb[51].mxu0 }
 0x2a9   : > { %v1887_v23 = vmax.f32 %v1885_v60, %v1886_v6  ;;  %v1929_v24 = vmax.f32 %v1927_v61, %v1928_v7  ;;  %v1727_v25 = vmax.f32 %v1533_v9, 0.0  ;;  %v1729_v29 = vmax.f32 %v1646_v12, 0.0 }
 0x2aa   : > { %v1867_v32 = vrot.slane %v1866_v17, 2  ;;  %v1909_v33 = vrot.slane %v1908_v19, 2  ;;  %v1535_v34 = vadd.f32 %v1534_v13, %v3100_v36  ;;  %v1648_v35 = vadd.f32 %v1647_v5, %v3105_v57 }
 0x2ab   : > { %v1888_v38 = vrot.slane %v1887_v23, 2  ;;  %v1930_v41 = vrot.slane %v1929_v24, 2  ;;  %v1537_v28 = vadd.f32 %v1536_v21, %v3108_v62  ;;  %v1650_v55 = vadd.f32 %v1649_v22, %v3113_v30 }
 0x2ac   : > { %v1868_v8 = vmax.f32 %v1866_v17, %v1867_v32  ;;  %v1910_v63 = vmax.f32 %v1908_v19, %v1909_v33  ;;  %v1734_v10 = vmax.f32 %v1535_v34, 0.0  ;;  %v1736_v18 = vmax.f32 %v1648_v35, 0.0 }
 0x2ad   : > { %v1889_v16 = vmax.f32 %v1887_v23, %v1888_v38  ;;  %v1931_v37 = vmax.f32 %v1929_v24, %v1930_v41  ;;  %v1735_v11 = vmax.f32 %v1537_v28, 0.0  ;;  %v1737_v43 = vmax.f32 %v1650_v55, 0.0  ;;  %v1540_v47 = vpop.f32.mrb[36].mxu1  ;;  %v1653_v39 = vpop.f32.mrb[52].mxu0 }
 0x2ae   : > { %v1869_v40 = vrot.slane %v1868_v8, 1  ;;  %v1911_v42 = vrot.slane %v1910_v63, 1  ;;  %v1934_v44 = vmax.f32 %v1726_v20, %v1734_v10  ;;  %v1976_v48 = vmax.f32 %v1728_v27, %v1736_v18  ;;  %v1542_v49 = vpop.f32.mrb[37].mxu1  ;;  %v1655_v52 = vpop.f32.mrb[53].mxu0 }
 0x2af   : > { %v1890_v53 = vrot.slane %v1889_v16, 1  ;;  %v1932_v15 = vrot.slane %v1931_v37, 1  ;;  %v1955_v54 = vmax.f32 %v1727_v25, %v1735_v11  ;;  %v1997_v26 = vmax.f32 %v1729_v29, %v1737_v43  ;;  %v1544_v56 = vpop.f32.mrb[38].mxu1  ;;  %v1657_v14 = vpop.f32.mrb[54].mxu0 }
 0x2b0   : > { %v1870_v58 = vmax.f32 %v1868_v8, %v1869_v40  ;;  %v1912_v59 = vmax.f32 %v1910_v63, %v1911_v42  ;;  %v1541_v45 = vadd.f32 %v1540_v47, %v3100_v36  ;;  %v1654_v60 = vadd.f32 %v1653_v39, %v3105_v57  ;;  %v1546_v61 = vpop.f32.mrb[39].mxu1  ;;  %v1659_v31 = vpop.f32.mrb[55].mxu0 }
 0x2b1   : > { %v1891_v51 = vmax.f32 %v1889_v16, %v1890_v53  ;;  %v1933_v0 = vmax.f32 %v1931_v37, %v1932_v15  ;;  %v1543_v1 = vadd.f32 %v1542_v49, %v3108_v62  ;;  %v1656_v50 = vadd.f32 %v1655_v52, %v3113_v30 }
 0x2b2   : > { %v1742_v2 = vmax.f32 %v1541_v45, 0.0  ;;  %v1744_v3 = vmax.f32 %v1654_v60, 0.0  ;;  %v1545_v4 = vadd.f32 %v1544_v56, %v3100_v36  ;;  %v1658_v6 = vadd.f32 %v1657_v14, %v3105_v57 }
 0x2b3   : > { %v2026_v7 = vcombine.low %v1870_v58, %v1891_v51  ;;  %v2027_v9 = vcombine.low %v1912_v59, %v1933_v0  ;;  %v1743_v12 = vmax.f32 %v1543_v1, 0.0  ;;  %v1745_v13 = vmax.f32 %v1656_v50, 0.0 }
 0x2b4   : > { %v1935_v5 = vmax.f32 %v1934_v44, %v1742_v2  ;;  %v1977_v17 = vmax.f32 %v1976_v48, %v1744_v3  ;;  %v1750_v19 = vmax.f32 %v1545_v4, 0.0  ;;  %v1752_v20 = vmax.f32 %v1658_v6, 0.0 }
 0x2b5   : > { %v3137_v27 = vrot.slane %v2026_v7, %v3120_v46  ;;  %v3140_v21 = vrot.slane %v2027_v9, %v3120_v46  ;;  %v1956_v22 = vmax.f32 %v1955_v54, %v1743_v12  ;;  %v1998_v23 = vmax.f32 %v1997_v26, %v1745_v13  ;;  %v1550_v24 = vpop.f32.mrb[40].mxu1  ;;  %v1663_v25 = vpop.f32.mrb[56].mxu0 }
 0x2b6   : > { %v1936_v29 = vmax.f32 %v1935_v5, %v1750_v19  ;;  %v1978_v32 = vmax.f32 %v1977_v17, %v1752_v20  ;;  %v1547_v33 = vadd.f32 %v1546_v61, %v3108_v62  ;;  %v1660_v34 = vadd.f32 %v1659_v31, %v3113_v30  ;;  %v1552_v35 = vpop.f32.mrb[41].mxu1  ;;  %v1665_v38 = vpop.f32.mrb[57].mxu0 }
 0x2b7   : > { %v2058_v41 = vcombine.low %v3137_v27, %v3140_v21  ;;  %v1551_v28 = vadd.f32 %v1550_v24, %v3100_v36  ;;  %v1664_v55 = vadd.f32 %v1663_v25, %v3105_v57  ;;  %v1553_v8 = vadd.f32 %v1552_v35, %v3108_v62  ;;  %v1554_v63 = vpop.f32.mrb[42].mxu1  ;;  %v1667_v10 = vpop.f32.mrb[58].mxu0 }
 0x2b8   : > { %v1751_v18 = vmax.f32 %v1547_v33, 0.0  ;;  %v1753_v16 = vmax.f32 %v1660_v34, 0.0  ;;  %v1666_v37 = vadd.f32 %v1665_v38, %v3113_v30  ;;  %v1555_v11 = vadd.f32 %v1554_v63, %v3100_v36  ;;  %v1556_v43 = vpop.f32.mrb[43].mxu1  ;;  %v1669_v47 = vpop.f32.mrb[59].mxu0 }
 0x2b9   : > { %v1758_v39 = vmax.f32 %v1551_v28, 0.0  ;;  %v1760_v40 = vmax.f32 %v1664_v55, 0.0  ;;  %v1759_v42 = vmax.f32 %v1553_v8, 0.0  ;;  %v1668_v54 = vadd.f32 %v1667_v10, %v3105_v57 }
 0x2ba   : > { %v1957_v44 = vmax.f32 %v1956_v22, %v1751_v18  ;;  %v1999_v48 = vmax.f32 %v1998_v23, %v1753_v16  ;;  %v1761_v49 = vmax.f32 %v1666_v37, 0.0  ;;  %v1766_v52 = vmax.f32 %v1555_v11, 0.0 }
 0x2bb   : > { %v1937_v53 = vmax.f32 %v1936_v29, %v1758_v39  ;;  %v1979_v15 = vmax.f32 %v1978_v32, %v1760_v40  ;;  %v1557_v26 = vadd.f32 %v1556_v43, %v3108_v62  ;;  %v1670_v58 = vadd.f32 %v1669_v47, %v3113_v30 }
 0x2bc   : > { %v1958_v56 = vmax.f32 %v1957_v44, %v1759_v42  ;;  %v2000_v14 = vmax.f32 %v1999_v48, %v1761_v49  ;;  %v1768_v45 = vmax.f32 %v1668_v54, 0.0 }
 0x2bd   : > { %v1938_v59 = vmax.f32 %v1937_v53, %v1766_v52  ;;  %v1767_v60 = vmax.f32 %v1557_v26, 0.0  ;;  %v1560_v61 = vpop.f32.mrb[44].mxu1  ;;  %v1673_v31 = vpop.f32.mrb[60].mxu0  ;;  %v1769_v51 = vmax.f32 %v1670_v58, 0.0 }
 0x2be   : > { %v1561_v0 = vadd.f32 %v1560_v61, %v3100_v36  ;;  %v1674_v1 = vadd.f32 %v1673_v31, %v3105_v57  ;;  %v1562_v50 = vpop.f32.mrb[45].mxu1  ;;  %v1675_v2 = vpop.f32.mrb[61].mxu0  ;;  %v1980_v3 = vmax.f32 %v1979_v15, %v1768_v45 }
 0x2bf   : > { %v1959_v4 = vmax.f32 %v1958_v56, %v1767_v60  ;;  %v1563_v6 = vadd.f32 %v1562_v50, %v3108_v62  ;;  %v1676_v7 = vadd.f32 %v1675_v2, %v3113_v30  ;;  %v1564_v9 = vpop.f32.mrb[46].mxu1  ;;  %v1677_v12 = vpop.f32.mrb[62].mxu0  ;;  %v2001_v13 = vmax.f32 %v2000_v14, %v1769_v51 }
 0x2c0   : > { %v1774_v5 = vmax.f32 %v1561_v0, 0.0  ;;  %v1776_v17 = vmax.f32 %v1674_v1, 0.0  ;;  %v1565_v19 = vadd.f32 %v1564_v9, %v3100_v36  ;;  %v1566_v20 = vpop.f32.mrb[47].mxu1  ;;  %v1679_v22 = vpop.f32.mrb[63].mxu0  ;;  %v1678_v25 = vadd.f32 %v1677_v12, %v3105_v57 }
 0x2c1   : > { %v1775_v23 = vmax.f32 %v1563_v6, 0.0  ;;  %v1777_v24 = vmax.f32 %v1676_v7, 0.0  ;;  %v1567_v29 = vadd.f32 %v1566_v20, %v3108_v62  ;;  %v1680_v35 = vadd.f32 %v1679_v22, %v3113_v30 }
 0x2c2   : > { %v1939_v32 = vmax.f32 %v1938_v59, %v1774_v5  ;;  %v1981_v33 = vmax.f32 %v1980_v3, %v1776_v17  ;;  %v1782_v34 = vmax.f32 %v1565_v19, 0.0  ;;  %v1784_v55 = vmax.f32 %v1678_v25, 0.0 }
 0x2c3   : > { %v1960_v38 = vmax.f32 %v1959_v4, %v1775_v23  ;;  %v2002_v28 = vmax.f32 %v2001_v13, %v1777_v24  ;;  %v1783_v8 = vmax.f32 %v1567_v29, 0.0  ;;  %v1785_v10 = vmax.f32 %v1680_v35, 0.0 }
 0x2c4   : > { %v1940_v63 = vmax.f32 %v1939_v32, %v1782_v34  ;;  %v1982_v18 = vmax.f32 %v1981_v33, %v1784_v55 }
 0x2c5   : > { %v1961_v16 = vmax.f32 %v1960_v38, %v1783_v8  ;;  %v1570_v37 = vpop.f32.mrb[48].mxu1  ;;  %v1683_v11 = vpop.f32.mrb[64].mxu0  ;;  %v2003_v43 = vmax.f32 %v2002_v28, %v1785_v10 }
 0x2c6   : > { %v1571_v47 = vadd.f32 %v1570_v37, %v3100_v36  ;;  %v1684_v39 = vadd.f32 %v1683_v11, %v3105_v57  ;;  %v1572_v40 = vpop.f32.mrb[49].mxu1  ;;  %v1685_v42 = vpop.f32.mrb[65].mxu0 }
 0x2c7   : > { %v1573_v44 = vadd.f32 %v1572_v40, %v3108_v62  ;;  %v1686_v48 = vadd.f32 %v1685_v42, %v3113_v30  ;;  %v1574_v49 = vpop.f32.mrb[50].mxu1  ;;  %v1687_v52 = vpop.f32.mrb[66].mxu0 }
 0x2c8   : > { %v1790_v53 = vmax.f32 %v1571_v47, 0.0  ;;  %v1792_v15 = vmax.f32 %v1684_v39, 0.0  ;;  %v1575_v54 = vadd.f32 %v1574_v49, %v3100_v36  ;;  %v1688_v26 = vadd.f32 %v1687_v52, %v3105_v57  ;;  %v1576_v56 = vpop.f32.mrb[51].mxu1  ;;  %v1689_v14 = vpop.f32.mrb[67].mxu0 }
 0x2c9   : > { %v1791_v58 = vmax.f32 %v1573_v44, 0.0  ;;  %v1793_v59 = vmax.f32 %v1686_v48, 0.0  ;;  %v1577_v45 = vadd.f32 %v1576_v56, %v3108_v62  ;;  %v1690_v60 = vadd.f32 %v1689_v14, %v3113_v30 }
 0x2ca   : > { %v1941_v61 = vmax.f32 %v1940_v63, %v1790_v53  ;;  %v1983_v31 = vmax.f32 %v1982_v18, %v1792_v15  ;;  %v1798_v51 = vmax.f32 %v1575_v54, 0.0  ;;  %v1800_v0 = vmax.f32 %v1688_v26, 0.0 }
 0x2cb   : > { %v1962_v1 = vmax.f32 %v1961_v16, %v1791_v58  ;;  %v2004_v50 = vmax.f32 %v2003_v43, %v1793_v59  ;;  %v1799_v2 = vmax.f32 %v1577_v45, 0.0  ;;  %v1801_v3 = vmax.f32 %v1690_v60, 0.0 }
 0x2cc   : > { %v1942_v4 = vmax.f32 %v1941_v61, %v1798_v51  ;;  %v1984_v6 = vmax.f32 %v1983_v31, %v1800_v0 }
 0x2cd   : > { %v1963_v7 = vmax.f32 %v1962_v1, %v1799_v2  ;;  %v2005_v9 = vmax.f32 %v2004_v50, %v1801_v3  ;;  %v1580_v12 = vpop.f32.mrb[52].mxu1  ;;  %v1693_v13 = vpop.f32.mrb[68].mxu0 }
 0x2ce   : > { %v1581_v5 = vadd.f32 %v1580_v12, %v3100_v36  ;;  %v1694_v17 = vadd.f32 %v1693_v13, %v3105_v57  ;;  %v1582_v19 = vpop.f32.mrb[53].mxu1  ;;  %v1695_v20 = vpop.f32.mrb[69].mxu0 }
 0x2cf   : > { %v1583_v22 = vadd.f32 %v1582_v19, %v3108_v62  ;;  %v1696_v23 = vadd.f32 %v1695_v20, %v3113_v30  ;;  %v1584_v24 = vpop.f32.mrb[54].mxu1  ;;  %v1697_v25 = vpop.f32.mrb[70].mxu0 }
 0x2d0   : > { %v1806_v29 = vmax.f32 %v1581_v5, 0.0  ;;  %v1808_v32 = vmax.f32 %v1694_v17, 0.0  ;;  %v1585_v33 = vadd.f32 %v1584_v24, %v3100_v36  ;;  %v1698_v34 = vadd.f32 %v1697_v25, %v3105_v57  ;;  %v1586_v35 = vpop.f32.mrb[55].mxu1  ;;  %v1699_v38 = vpop.f32.mrb[71].mxu0 }
 0x2d1   : > { %v1807_v28 = vmax.f32 %v1583_v22, 0.0  ;;  %v1809_v55 = vmax.f32 %v1696_v23, 0.0  ;;  %v1587_v8 = vadd.f32 %v1586_v35, %v3108_v62  ;;  %v1700_v63 = vadd.f32 %v1699_v38, %v3113_v30 }
 0x2d2   : > { %v1943_v10 = vmax.f32 %v1942_v4, %v1806_v29  ;;  %v1985_v18 = vmax.f32 %v1984_v6, %v1808_v32  ;;  %v1814_v16 = vmax.f32 %v1585_v33, 0.0  ;;  %v1816_v37 = vmax.f32 %v1698_v34, 0.0 }
 0x2d3   : > { %v1964_v11 = vmax.f32 %v1963_v7, %v1807_v28  ;;  %v2006_v43 = vmax.f32 %v2005_v9, %v1809_v55  ;;  %v1815_v47 = vmax.f32 %v1587_v8, 0.0  ;;  %v1817_v39 = vmax.f32 %v1700_v63, 0.0 }
 0x2d4   : > { %v1944_v40 = vmax.f32 %v1943_v10, %v1814_v16  ;;  %v1986_v42 = vmax.f32 %v1985_v18, %v1816_v37 }
 0x2d5   : > { %v1965_v44 = vmax.f32 %v1964_v11, %v1815_v47  ;;  %v2007_v48 = vmax.f32 %v2006_v43, %v1817_v39  ;;  %v1590_v49 = vpop.f32.mrb[56].mxu1  ;;  %v1703_v52 = vpop.f32.mrb[72].mxu0 }
 0x2d6   : > { %v1591_v53 = vadd.f32 %v1590_v49, %v3100_v36  ;;  %v1704_v15 = vadd.f32 %v1703_v52, %v3105_v57  ;;  %v1592_v54 = vpop.f32.mrb[57].mxu1  ;;  %v1705_v26 = vpop.f32.mrb[73].mxu0 }
 0x2d7   : > { %v1593_v56 = vadd.f32 %v1592_v54, %v3108_v62  ;;  %v1706_v14 = vadd.f32 %v1705_v26, %v3113_v30  ;;  %v1594_v58 = vpop.f32.mrb[58].mxu1  ;;  %v1707_v59 = vpop.f32.mrb[74].mxu0 }
 0x2d8   : > { %v1822_v45 = vmax.f32 %v1591_v53, 0.0  ;;  %v1824_v60 = vmax.f32 %v1704_v15, 0.0  ;;  %v1595_v61 = vadd.f32 %v1594_v58, %v3100_v36  ;;  %v1708_v31 = vadd.f32 %v1707_v59, %v3105_v57  ;;  %v1596_v51 = vpop.f32.mrb[59].mxu1  ;;  %v1709_v0 = vpop.f32.mrb[75].mxu0 }
 0x2d9   : > { %v1823_v1 = vmax.f32 %v1593_v56, 0.0  ;;  %v1825_v50 = vmax.f32 %v1706_v14, 0.0  ;;  %v1597_v2 = vadd.f32 %v1596_v51, %v3108_v62  ;;  %v1710_v3 = vadd.f32 %v1709_v0, %v3113_v30 }
 0x2da   : > { %v1945_v4 = vmax.f32 %v1944_v40, %v1822_v45  ;;  %v1987_v6 = vmax.f32 %v1986_v42, %v1824_v60  ;;  %v1830_v7 = vmax.f32 %v1595_v61, 0.0  ;;  %v1832_v9 = vmax.f32 %v1708_v31, 0.0 }
 0x2db   : > { %v1966_v12 = vmax.f32 %v1965_v44, %v1823_v1  ;;  %v2008_v13 = vmax.f32 %v2007_v48, %v1825_v50  ;;  %v1831_v5 = vmax.f32 %v1597_v2, 0.0  ;;  %v1833_v17 = vmax.f32 %v1710_v3, 0.0 }
 0x2dc   : > { %v1946_v19 = vmax.f32 %v1945_v4, %v1830_v7  ;;  %v1988_v20 = vmax.f32 %v1987_v6, %v1832_v9 }
 0x2dd   : > { %v1967_v22 = vmax.f32 %v1966_v12, %v1831_v5  ;;  %v2009_v23 = vmax.f32 %v2008_v13, %v1833_v17  ;;  %v1600_v24 = vpop.f32.mrb[60].mxu1 }
 0x2de   : > { %v1601_v25 = vadd.f32 %v1600_v24, %v3100_v36  ;;  %v1602_v29 = vpop.f32.mrb[61].mxu1 }
 0x2df   : > { %v1603_v32 = vadd.f32 %v1602_v29, %v3108_v62  ;;  %v1604_v33 = vpop.f32.mrb[62].mxu1 }
 0x2e0   : > { %v1838_v34 = vmax.f32 %v1601_v25, 0.0  ;;  %v1605_v35 = vadd.f32 %v1604_v33, %v3100_v36  ;;  %v1606_v38 = vpop.f32.mrb[63].mxu1  ;;  %v2066_v25 = vrot.slane %v2058_v41, %v3120_v46 }
 0x2e1   : > { %v1839_v28 = vmax.f32 %v1603_v32, 0.0  ;;  %v1607_v55 = vadd.f32 %v1606_v38, %v3108_v62 }
 0x2e2   : > { %v1947_v8 = vmax.f32 %v1946_v19, %v1838_v34  ;;  %v1846_v63 = vmax.f32 %v1605_v35, 0.0 }
 0x2e3   : > { %v1968_v10 = vmax.f32 %v1967_v22, %v1839_v28  ;;  %v1847_v18 = vmax.f32 %v1607_v55, 0.0 }
 0x2e4   : > { %v1948_v16 = vmax.f32 %v1947_v8, %v1846_v63 }
 0x2e5   : > { %v1969_v37 = vmax.f32 %v1968_v10, %v1847_v18  ;;  %v1713_v11 = vpop.f32.mrb[64].mxu1 }
 0x2e6   : > { %v1949_v43 = vrot.slane %v1948_v16, 4  ;;  %v1714_v47 = vadd.f32 %v1713_v11, %v3105_v57  ;;  %v1715_v39 = vpop.f32.mrb[65].mxu1 }
 0x2e7   : > { %v1970_v40 = vrot.slane %v1969_v37, 4  ;;  %v1716_v42 = vadd.f32 %v1715_v39, %v3113_v30  ;;  %v1717_v44 = vpop.f32.mrb[66].mxu1 }
 0x2e8   : > { %v1950_v36 = vmax.f32 %v1948_v16, %v1949_v43  ;;  %v1840_v48 = vmax.f32 %v1714_v47, 0.0  ;;  %v1718_v49 = vadd.f32 %v1717_v44, %v3105_v57  ;;  %v1719_v62 = vpop.f32.mrb[67].mxu1 }
 0x2e9   : > { %v1971_v52 = vmax.f32 %v1969_v37, %v1970_v40  ;;  %v1841_v53 = vmax.f32 %v1716_v42, 0.0  ;;  %v1720_v15 = vadd.f32 %v1719_v62, %v3113_v30 }
 0x2ea   : > { %v1951_v54 = vrot.slane %v1950_v36, 2  ;;  %v1989_v26 = vmax.f32 %v1988_v20, %v1840_v48  ;;  %v1848_v56 = vmax.f32 %v1718_v49, 0.0 }
 0x2eb   : > { %v1972_v14 = vrot.slane %v1971_v52, 2  ;;  %v2010_v58 = vmax.f32 %v2009_v23, %v1841_v53  ;;  %v1849_v59 = vmax.f32 %v1720_v15, 0.0 }
 0x2ec   : > { %v1952_v45 = vmax.f32 %v1950_v36, %v1951_v54  ;;  %v1990_v60 = vmax.f32 %v1989_v26, %v1848_v56 }
 0x2ed   : > { %v1973_v61 = vmax.f32 %v1971_v52, %v1972_v14  ;;  %v2011_v31 = vmax.f32 %v2010_v58, %v1849_v59 }
 0x2ee   : > { %v1953_v51 = vrot.slane %v1952_v45, 1  ;;  %v1991_v0 = vrot.slane %v1990_v60, 4 }
 0x2ef   : > { %v1974_v1 = vrot.slane %v1973_v61, 1  ;;  %v2012_v50 = vrot.slane %v2011_v31, 4 }
 0x2f0   : > { %v1954_v57 = vmax.f32 %v1952_v45, %v1953_v51  ;;  %v1992_v2 = vmax.f32 %v1990_v60, %v1991_v0 }
 0x2f1   : > { %v1975_v3 = vmax.f32 %v1973_v61, %v1974_v1  ;;  %v2013_v4 = vmax.f32 %v2011_v31, %v2012_v50 }
 0x2f2   : > { %v1993_v30 = vrot.slane %v1992_v2, 2 }
 0x2f3   : > { %v2028_v6 = vcombine.low %v1954_v57, %v1975_v3  ;;  %v2014_v7 = vrot.slane %v2013_v4, 2 }
 0x2f4   : > { %v1994_v9 = vmax.f32 %v1992_v2, %v1993_v30 }
 0x2f5   : > { %v2015_v12 = vmax.f32 %v2013_v4, %v2014_v7  ;;  %v2050_v22 = vrot.slane %v2028_v6, %v3120_v46 }
 0x2f6   : > { %v1995_v13 = vrot.slane %v1994_v9, 1 }
 0x2f7   : > { %v2016_v5 = vrot.slane %v2015_v12, 1 }
 0x2f8   : > { %v1996_v17 = vmax.f32 %v1994_v9, %v1995_v13 }
 0x2f9   : > { %v2017_v19 = vmax.f32 %v2015_v12, %v2016_v5 }
 0x2fb   : > { %v2029_v20 = vcombine.low %v1996_v17, %v2017_v19 }
 0x2fd   : > { %v2057_v23 = vrot.slane %v2029_v20, %v3120_v46 }
 0x2ff   : > { %v2059_v24 = vcombine.low %v2050_v22, %v2057_v23 }
 0x301   : > { %v2073_v29 = vrot.slane %v2059_v24, %v3120_v46 }
 0x303   : > { %v2074_v32 = vcombine.low %v2066_v25, %v2073_v29 }
 0x305   : > { %2076 = vst [vmem:[%s276_s30] sm:$0xff] %v2074_v32 }
 0x306 PF: > { %s17_s24 = sadd.s32 1, %s2473_s24  }
 0x307   : > { %p14_p4 = scmp.ge.s32.totalorder %s17_s24, 4  }
 0x309   :  { %16 = sbr.rel (!%p14_p4) target bundleno = 1 (0x1), region = 78 }

// kernel: pointnetfeat_forward.4
= control target key start
LH: loop header
LB: loop body
LE: loop exit
PB: predicated region body
PF: predicated region fallthrough
CT: control target
= control target key end

     0   :  { %v3528_v36 = vmov 1983009808   ;;  %v35_v38 = vlaneseq  ;;  %vm2632_vm0 = vcmask 123904   ;;  %s4667_s1 = inlined_call_operand.vmem [shape: bf16[1024,512], index: 1, kind: input, shape index: {}]   ;;  %s4668_s0 = inlined_call_operand.vmem [shape: f32[2,1024], index: 0, kind: input, shape index: {}]   ;;  %s4669_s3 = inlined_call_operand.vmem [shape: bf16[512,256], index: 3, kind: input, shape index: {}]   ;;  %s4670_s2 = inlined_call_operand.vmem [shape: f32[1,512], index: 2, kind: input, shape index: {}]   ;;  %s4671_s5 = inlined_call_operand.vmem [shape: bf16[256,16], index: 5, kind: input, shape index: {}]   ;;  %s4672_s4 = inlined_call_operand.vmem [shape: f32[1,256], index: 4, kind: input, shape index: {}]   ;;  %s4673_s6 = inlined_call_operand.vmem [shape: f32[1,16], index: 6, kind: input, shape index: {}]   ;;  %s4674_s7 = inlined_call_operand.vmem [shape: f32[2,16], index: 7, kind: output, shape index: {}]  }
   0x1   :  { %v3030_v0 = vld [vmem:[%s4667_s1 + $0x4] ss:$16 sps:$4 sm:$0xff]   ;;  %v3034_v2 = vld [vmem:[%s4667_s1] ss:$16 sps:$4 sm:$0xff]   ;;  %v33_v37 = vunpack.c.l.s4 %v3528_v36 }
   0x2   :  { %v3032_v1 = vld [vmem:[%s4667_s1 + $0x204] ss:$16 sps:$4 sm:$0xff]   ;;  %1639 = vmatprep.subr.bf16.mxu1 %v3030_v0  ;;  %v3035_v3 = vld [vmem:[%s4667_s1 + $0x200] ss:$16 sps:$4 sm:$0xff]   ;;  %v3686_v43 = vshrl.u32 %v35_v38, 7 }
   0x3   :  { %1680 = vmatprep.subr.bf16.mxu0 %v3032_v1  ;;  %v3036_v4 = vld [vmem:[%s4667_s1 + $0x24] ss:$16 sps:$4 sm:$0xff]   ;;  %1640 = vmatpush1.bf16.msra.mxu1 %v3034_v2  ;;  %v3040_v6 = vld [vmem:[%s4667_s1 + $0x20] ss:$16 sps:$4 sm:$0xff]   ;;  %v34_v42 = vunpack.c.0.s8 %v33_v37  ;;  %v3157_v37 = vld [vmem:[%s4667_s1 + $0x8c] ss:$16 sps:$4 sm:$0xff]  }
   0x4   :  { %1681 = vmatpush1.bf16.msra.mxu0 %v3035_v3  ;;  %v3038_v5 = vld [vmem:[%s4667_s1 + $0x224] ss:$16 sps:$4 sm:$0xff]   ;;  %1641 = vmatprep.subr.bf16.mxu1 %v3036_v4  ;;  %v3041_v7 = vld [vmem:[%s4667_s1 + $0x220] ss:$16 sps:$4 sm:$0xff]  }
   0x5   :  { %1682 = vmatprep.subr.bf16.mxu0 %v3038_v5  ;;  %v3042_v8 = vld [vmem:[%s4667_s1 + $0x44] ss:$16 sps:$4 sm:$0xff]   ;;  %v3046_v10 = vld [vmem:[%s4667_s1 + $0x40] ss:$16 sps:$4 sm:$0xff]   ;;  %v3704_v49 = vsub.s32 %v34_v42, %v3686_v43 }
   0x6   :  { %v3044_v9 = vld [vmem:[%s4667_s1 + $0x244] ss:$16 sps:$4 sm:$0xff]   ;;  %v3047_v11 = vld [vmem:[%s4667_s1 + $0x240] ss:$16 sps:$4 sm:$0xff]  }
   0x7   :  { %1642 = vmatpush1.bf16.msra.mxu1 %v3040_v6  ;;  %v3048_v12 = vld [vmem:[%s4667_s1 + $0x64] ss:$16 sps:$4 sm:$0xff]   ;;  %v3052_v14 = vld [vmem:[%s4667_s1 + $0x60] ss:$16 sps:$4 sm:$0xff]  }
   0x8   :  { %1683 = vmatpush1.bf16.msra.mxu0 %v3041_v7  ;;  %1643 = vmatprep.subr.bf16.mxu1 %v3042_v8  ;;  %v3050_v13 = vld [vmem:[%s4667_s1 + $0x264] ss:$16 sps:$4 sm:$0xff]   ;;  %v3053_v15 = vld [vmem:[%s4667_s1 + $0x260] ss:$16 sps:$4 sm:$0xff]   ;;  %v3759_v8 = vld [vmem:[%s4668_s0 + $0x8] sm:$0xff] }
   0x9   :  { %1684 = vmatprep.subr.bf16.mxu0 %v3044_v9  ;;  %v3054_v16 = vld [vmem:[%s4667_s1 + $0x84] ss:$16 sps:$4 sm:$0xff]   ;;  %v3058_v18 = vld [vmem:[%s4667_s1 + $0x80] ss:$16 sps:$4 sm:$0xff]  }
   0xa   :  { %v3056_v17 = vld [vmem:[%s4667_s1 + $0x284] ss:$16 sps:$4 sm:$0xff]   ;;  %v3059_v19 = vld [vmem:[%s4667_s1 + $0x280] ss:$16 sps:$4 sm:$0xff]  }
   0xb   :  { %1644 = vmatpush1.bf16.msra.mxu1 %v3046_v10  ;;  %v3060_v20 = vld [vmem:[%s4667_s1 + $0xa4] ss:$16 sps:$4 sm:$0xff]   ;;  %v3064_v22 = vld [vmem:[%s4667_s1 + $0xa0] ss:$16 sps:$4 sm:$0xff]  }
   0xc   :  { %1685 = vmatpush1.bf16.msra.mxu0 %v3047_v11  ;;  %1645 = vmatprep.subr.bf16.mxu1 %v3048_v12  ;;  %v3062_v21 = vld [vmem:[%s4667_s1 + $0x2a4] ss:$16 sps:$4 sm:$0xff]   ;;  %v3065_v23 = vld [vmem:[%s4667_s1 + $0x2a0] ss:$16 sps:$4 sm:$0xff]  }
   0xd   :  { %1686 = vmatprep.subr.bf16.mxu0 %v3050_v13  ;;  %v3066_v24 = vld [vmem:[%s4667_s1 + $0xc4] ss:$16 sps:$4 sm:$0xff]   ;;  %v3070_v26 = vld [vmem:[%s4667_s1 + $0xc0] ss:$16 sps:$4 sm:$0xff]   ;;  %v3775_v13 = vrot.slane %v3759_v8, %v3704_v49 }
   0xe   :  { %v3068_v25 = vld [vmem:[%s4667_s1 + $0x2c4] ss:$16 sps:$4 sm:$0xff]   ;;  %v3071_v27 = vld [vmem:[%s4667_s1 + $0x2c0] ss:$16 sps:$4 sm:$0xff]  }
   0xf   :  { %1646 = vmatpush1.bf16.msra.mxu1 %v3052_v14  ;;  %v3072_v28 = vld [vmem:[%s4667_s1 + $0xe4] ss:$16 sps:$4 sm:$0xff]   ;;  %v3076_v30 = vld [vmem:[%s4667_s1 + $0xe0] ss:$16 sps:$4 sm:$0xff]  }
  0x10   :  { %1687 = vmatpush1.bf16.msra.mxu0 %v3053_v15  ;;  %1647 = vmatprep.subr.bf16.mxu1 %v3054_v16  ;;  %v3074_v29 = vld [vmem:[%s4667_s1 + $0x2e4] ss:$16 sps:$4 sm:$0xff]   ;;  %v3077_v31 = vld [vmem:[%s4667_s1 + $0x2e0] ss:$16 sps:$4 sm:$0xff]  }
  0x11   :  { %1688 = vmatprep.subr.bf16.mxu0 %v3056_v17  ;;  %v3078_v32 = vld [vmem:[%s4667_s1 + $0x104] ss:$16 sps:$4 sm:$0xff]   ;;  %v3082_v34 = vld [vmem:[%s4667_s1 + $0x100] ss:$16 sps:$4 sm:$0xff]   ;;  %v3133_v17 = vld [vmem:[%s4667_s1 + $0xc] ss:$16 sps:$4 sm:$0xff]  }
  0x12   :  { %v3080_v33 = vld [vmem:[%s4667_s1 + $0x304] ss:$16 sps:$4 sm:$0xff]   ;;  %v3083_v35 = vld [vmem:[%s4667_s1 + $0x300] ss:$16 sps:$4 sm:$0xff]  }
  0x13   :  { %1648 = vmatpush1.bf16.msra.mxu1 %v3058_v18  ;;  %v3084_v39 = vld [vmem:[%s4667_s1 + $0x124] ss:$16 sps:$4 sm:$0xff]   ;;  %v3088_v41 = vld [vmem:[%s4667_s1 + $0x120] ss:$16 sps:$4 sm:$0xff]   ;;  %v63_v18 = vcombine.high %v3775_v13, %v3775_v13 }
  0x14   :  { %1689 = vmatpush1.bf16.msra.mxu0 %v3059_v19  ;;  %1649 = vmatprep.subr.bf16.mxu1 %v3060_v20  ;;  %v3086_v40 = vld [vmem:[%s4667_s1 + $0x324] ss:$16 sps:$4 sm:$0xff]   ;;  %v3089_v44 = vld [vmem:[%s4667_s1 + $0x320] ss:$16 sps:$4 sm:$0xff]  }
  0x15   :  { %1690 = vmatprep.subr.bf16.mxu0 %v3062_v21  ;;  %v3090_v45 = vld [vmem:[%s4667_s1 + $0x144] ss:$16 sps:$4 sm:$0xff]   ;;  %v3094_v47 = vld [vmem:[%s4667_s1 + $0x140] ss:$16 sps:$4 sm:$0xff]  }
  0x16   :  { %v3092_v46 = vld [vmem:[%s4667_s1 + $0x344] ss:$16 sps:$4 sm:$0xff]   ;;  %v3095_v48 = vld [vmem:[%s4667_s1 + $0x340] ss:$16 sps:$4 sm:$0xff]  }
  0x17   :  { %1650 = vmatpush1.bf16.msra.mxu1 %v3064_v22  ;;  %v3096_v50 = vld [vmem:[%s4667_s1 + $0x164] ss:$16 sps:$4 sm:$0xff]   ;;  %v3100_v55 = vld [vmem:[%s4667_s1 + $0x160] ss:$16 sps:$4 sm:$0xff]   ;;  %v3131_v22 = vld [vmem:[%s4667_s1 + $0x8] ss:$16 sps:$4 sm:$0xff]  }
  0x18   :  { %1691 = vmatpush1.bf16.msra.mxu0 %v3065_v23  ;;  %1651 = vmatprep.subr.bf16.mxu1 %v3066_v24  ;;  %v3098_v51 = vld [vmem:[%s4667_s1 + $0x364] ss:$16 sps:$4 sm:$0xff]   ;;  %v3101_v56 = vld [vmem:[%s4667_s1 + $0x360] ss:$16 sps:$4 sm:$0xff]   ;;  %v3139_v24 = vld [vmem:[%s4667_s1 + $0x2c] ss:$16 sps:$4 sm:$0xff]  }
  0x19   :  { %1692 = vmatprep.subr.bf16.mxu0 %v3068_v25  ;;  %v27_v52 = vld [vmem:[%s4668_s0] sm:$0xff]  ;;  %v3807_v25 = vpack.c.bf16 %v63_v18, %v63_v18  ;;  %v3217_v18 = vld [vmem:[%s4667_s1 + $0x1cc] ss:$16 sps:$4 sm:$0xff]  }
  0x1a   :  { %v38_v53 = vrot.slane %v27_v52, %v3704_v49  ;;  %v31_v54 = vcombine.high %v27_v52, %v27_v52  ;;  %v3102_v57 = vld [vmem:[%s4667_s1 + $0x184] ss:$16 sps:$4 sm:$0xff]   ;;  %v3106_v63 = vld [vmem:[%s4667_s1 + $0x180] ss:$16 sps:$4 sm:$0xff]  }
  0x1b   :  { %1652 = vmatpush1.bf16.msra.mxu1 %v3070_v26  ;;  %v3104_v58 = vld [vmem:[%s4667_s1 + $0x384] ss:$16 sps:$4 sm:$0xff]   ;;  %v3107_v0 = vld [vmem:[%s4667_s1 + $0x380] ss:$16 sps:$4 sm:$0xff]  }
  0x1c   :  { %1693 = vmatpush1.bf16.msra.mxu0 %v3071_v27  ;;  %1653 = vmatprep.subr.bf16.mxu1 %v3072_v28  ;;  %v46_v59 = vcombine.high %v38_v53, %v38_v53  ;;  %v45_v60 = vrot.slane %v31_v54, %v3704_v49  ;;  %v3108_v1 = vld [vmem:[%s4667_s1 + $0x1a4] ss:$16 sps:$4 sm:$0xff]   ;;  %v3112_v4 = vld [vmem:[%s4667_s1 + $0x1a0] ss:$16 sps:$4 sm:$0xff]   ;;  %v3791_v19 = vpack.c.bf16 %v38_v53, %v38_v53  ;;  %v3137_v27 = vld [vmem:[%s4667_s1 + $0x28] ss:$16 sps:$4 sm:$0xff]  }
  0x1d   :  { %1694 = vmatprep.subr.bf16.mxu0 %v3074_v29  ;;  %v3110_v2 = vld [vmem:[%s4667_s1 + $0x3a4] ss:$16 sps:$4 sm:$0xff]   ;;  %v3113_v5 = vld [vmem:[%s4667_s1 + $0x3a0] ss:$16 sps:$4 sm:$0xff]   ;;  %v3145_v29 = vld [vmem:[%s4667_s1 + $0x4c] ss:$16 sps:$4 sm:$0xff]  }
  0x1e   :  { %v74_v61 = vpack.c.bf16 %v46_v59, %v46_v59  ;;  %v47_v62 = vcombine.high %v45_v60, %v45_v60  ;;  %v3114_v6 = vld [vmem:[%s4667_s1 + $0x1c4] ss:$16 sps:$4 sm:$0xff]   ;;  %v3118_v9 = vld [vmem:[%s4667_s1 + $0x1c0] ss:$16 sps:$4 sm:$0xff]   ;;  %v3793_v20 = vpack.c.bf16 %v45_v60, %v45_v60  ;;  %v3173_v53 = vld [vmem:[%s4667_s1 + $0xe8] ss:$16 sps:$4 sm:$0xff]  }
  0x1f   :  { %1654 = vmatpush1.bf16.msra.mxu1 %v3076_v30  ;;  %v3116_v7 = vld [vmem:[%s4667_s1 + $0x3c4] ss:$16 sps:$4 sm:$0xff]   ;;  %v3119_v10 = vld [vmem:[%s4667_s1 + $0x3c0] ss:$16 sps:$4 sm:$0xff]   ;;  %v3187_v59 = vld [vmem:[%s4667_s1 + $0x12c] ss:$16 sps:$4 sm:$0xff]  }
  0x20   :  { %1695 = vmatpush1.bf16.msra.mxu0 %v3077_v31  ;;  %1655 = vmatprep.subr.bf16.mxu1 %v3078_v32  ;;  %v3741_v3 = vpack.c.bf16 %v47_v62, %v47_v62  ;;  %v3120_v11 = vld [vmem:[%s4667_s1 + $0x1e4] ss:$16 sps:$4 sm:$0xff]   ;;  %v3124_v14 = vld [vmem:[%s4667_s1 + $0x1e0] ss:$16 sps:$4 sm:$0xff]   ;;  %v3143_v31 = vld [vmem:[%s4667_s1 + $0x48] ss:$16 sps:$4 sm:$0xff]  }
  0x21   :  { %1696 = vmatprep.subr.bf16.mxu0 %v3080_v33  ;;  %1671 = vmatprep.mubr.bf16.mxu1 %v74_v61  ;;  %v3122_v12 = vld [vmem:[%s4667_s1 + $0x3e4] ss:$16 sps:$4 sm:$0xff]   ;;  %v3125_v15 = vld [vmem:[%s4667_s1 + $0x3e0] ss:$16 sps:$4 sm:$0xff]   ;;  %v3151_v33 = vld [vmem:[%s4667_s1 + $0x6c] ss:$16 sps:$4 sm:$0xff]  }
  0x22   :  { %1712 = vmatprep.mubr.bf16.mxu0 %v3741_v3  ;;  %v3130_v16 = vld [vmem:[%s4667_s1 + $0x404] ss:$16 sps:$4 sm:$0xff]   ;;  %v3128_v21 = vld [vmem:[%s4667_s1 + $0x400] ss:$16 sps:$4 sm:$0xff]  }
  0x23   :  { %1656 = vmatpush1.bf16.msra.mxu1 %v3082_v34  ;;  %v3136_v23 = vld [vmem:[%s4667_s1 + $0x424] ss:$16 sps:$4 sm:$0xff]   ;;  %v3134_v26 = vld [vmem:[%s4667_s1 + $0x420] ss:$16 sps:$4 sm:$0xff]  }
  0x24   :  { %1697 = vmatpush1.bf16.msra.mxu0 %v3083_v35  ;;  %1657 = vmatprep.subr.bf16.mxu1 %v3084_v39  ;;  %v3142_v28 = vld [vmem:[%s4667_s1 + $0x444] ss:$16 sps:$4 sm:$0xff]   ;;  %v3140_v30 = vld [vmem:[%s4667_s1 + $0x440] ss:$16 sps:$4 sm:$0xff]   ;;  %v3149_v35 = vld [vmem:[%s4667_s1 + $0x68] ss:$16 sps:$4 sm:$0xff]  }
  0x25   :  { %1698 = vmatprep.subr.bf16.mxu0 %v3086_v40  ;;  %v3148_v32 = vld [vmem:[%s4667_s1 + $0x464] ss:$16 sps:$4 sm:$0xff]   ;;  %v3146_v34 = vld [vmem:[%s4667_s1 + $0x460] ss:$16 sps:$4 sm:$0xff]   ;;  %v3155_v39 = vld [vmem:[%s4667_s1 + $0x88] ss:$16 sps:$4 sm:$0xff]  }
  0x26   :  { %v3154_v36 = vld [vmem:[%s4667_s1 + $0x484] ss:$16 sps:$4 sm:$0xff]   ;;  %v3152_v38 = vld [vmem:[%s4667_s1 + $0x480] ss:$16 sps:$4 sm:$0xff]  }
  0x27   :  { %1658 = vmatpush1.bf16.msra.mxu1 %v3088_v41  ;;  %v3160_v40 = vld [vmem:[%s4667_s1 + $0x4a4] ss:$16 sps:$4 sm:$0xff]   ;;  %v3163_v41 = vld [vmem:[%s4667_s1 + $0xac] ss:$16 sps:$4 sm:$0xff]   ;;  %v3158_v42 = vld [vmem:[%s4667_s1 + $0x4a0] ss:$16 sps:$4 sm:$0xff]  }
  0x28   :  { %1699 = vmatpush1.bf16.msra.mxu0 %v3089_v44  ;;  %1659 = vmatprep.subr.bf16.mxu1 %v3090_v45  ;;  %v3161_v44 = vld [vmem:[%s4667_s1 + $0xa8] ss:$16 sps:$4 sm:$0xff]   ;;  %v3166_v45 = vld [vmem:[%s4667_s1 + $0x4c4] ss:$16 sps:$4 sm:$0xff]   ;;  %v3170_v52 = vld [vmem:[%s4667_s1 + $0x4e0] ss:$16 sps:$4 sm:$0xff]  }
  0x29   :  { %1700 = vmatprep.subr.bf16.mxu0 %v3092_v46  ;;  %v3169_v46 = vld [vmem:[%s4667_s1 + $0xcc] ss:$16 sps:$4 sm:$0xff]   ;;  %v3178_v54 = vld [vmem:[%s4667_s1 + $0x504] ss:$16 sps:$4 sm:$0xff]   ;;  %v3182_v60 = vld [vmem:[%s4667_s1 + $0x520] ss:$16 sps:$4 sm:$0xff]  }
  0x2a   :  { %v3190_v62 = vld [vmem:[%s4667_s1 + $0x544] ss:$16 sps:$4 sm:$0xff]  }
  0x2b   :  { %1660 = vmatpush1.bf16.msra.mxu1 %v3094_v47  ;;  %v3164_v47 = vld [vmem:[%s4667_s1 + $0x4c0] ss:$16 sps:$4 sm:$0xff]  }
  0x2c   :  { %1701 = vmatpush1.bf16.msra.mxu0 %v3095_v48  ;;  %1661 = vmatprep.subr.bf16.mxu1 %v3096_v50  ;;  %v3167_v48 = vld [vmem:[%s4667_s1 + $0xc8] ss:$16 sps:$4 sm:$0xff]   ;;  %v3172_v50 = vld [vmem:[%s4667_s1 + $0x4e4] ss:$16 sps:$4 sm:$0xff]  }
  0x2d   :  { %1702 = vmatprep.subr.bf16.mxu0 %v3098_v51  ;;  %v3175_v51 = vld [vmem:[%s4667_s1 + $0xec] ss:$16 sps:$4 sm:$0xff]  }
  0x2f   :  { %1662 = vmatpush1.bf16.msra.mxu1 %v3100_v55  ;;  %v3181_v55 = vld [vmem:[%s4667_s1 + $0x10c] ss:$16 sps:$4 sm:$0xff]  }
  0x30   :  { %1703 = vmatpush1.bf16.msra.mxu0 %v3101_v56  ;;  %1663 = vmatprep.subr.bf16.mxu1 %v3102_v57  ;;  %v3176_v56 = vld [vmem:[%s4667_s1 + $0x500] ss:$16 sps:$4 sm:$0xff]   ;;  %v3179_v57 = vld [vmem:[%s4667_s1 + $0x108] ss:$16 sps:$4 sm:$0xff]  }
  0x31   :  { %1704 = vmatprep.subr.bf16.mxu0 %v3104_v58  ;;  %v3184_v58 = vld [vmem:[%s4667_s1 + $0x524] ss:$16 sps:$4 sm:$0xff]  }
  0x33   :  { %1664 = vmatpush1.bf16.msra.mxu1 %v3106_v63  ;;  %v3193_v63 = vld [vmem:[%s4667_s1 + $0x14c] ss:$16 sps:$4 sm:$0xff]  }
  0x34   :  { %1705 = vmatpush1.bf16.msra.mxu0 %v3107_v0  ;;  %1665 = vmatprep.subr.bf16.mxu1 %v3108_v1  ;;  %v3188_v0 = vld [vmem:[%s4667_s1 + $0x540] ss:$16 sps:$4 sm:$0xff]   ;;  %v3191_v1 = vld [vmem:[%s4667_s1 + $0x148] ss:$16 sps:$4 sm:$0xff]  }
  0x35   :  { %1706 = vmatprep.subr.bf16.mxu0 %v3110_v2  ;;  %v3196_v2 = vld [vmem:[%s4667_s1 + $0x564] ss:$16 sps:$4 sm:$0xff]  }
  0x37   :  { %1666 = vmatpush1.bf16.msra.mxu1 %v3112_v4  ;;  %v3199_v4 = vld [vmem:[%s4667_s1 + $0x16c] ss:$16 sps:$4 sm:$0xff]  }
  0x38   :  { %1707 = vmatpush1.bf16.msra.mxu0 %v3113_v5  ;;  %1667 = vmatprep.subr.bf16.mxu1 %v3114_v6  ;;  %v3194_v5 = vld [vmem:[%s4667_s1 + $0x560] ss:$16 sps:$4 sm:$0xff]   ;;  %v3197_v6 = vld [vmem:[%s4667_s1 + $0x168] ss:$16 sps:$4 sm:$0xff]  }
  0x39   :  { %1708 = vmatprep.subr.bf16.mxu0 %v3116_v7  ;;  %v3202_v7 = vld [vmem:[%s4667_s1 + $0x584] ss:$16 sps:$4 sm:$0xff]  }
  0x3b   :  { %1668 = vmatpush1.bf16.msra.mxu1 %v3118_v9  ;;  %v3205_v9 = vld [vmem:[%s4667_s1 + $0x18c] ss:$16 sps:$4 sm:$0xff]  }
  0x3c   :  { %1709 = vmatpush1.bf16.msra.mxu0 %v3119_v10  ;;  %1669 = vmatprep.subr.bf16.mxu1 %v3120_v11  ;;  %v3200_v10 = vld [vmem:[%s4667_s1 + $0x580] ss:$16 sps:$4 sm:$0xff]   ;;  %v3203_v11 = vld [vmem:[%s4667_s1 + $0x188] ss:$16 sps:$4 sm:$0xff]  }
  0x3d   :  { %1710 = vmatprep.subr.bf16.mxu0 %v3122_v12  ;;  %v3208_v12 = vld [vmem:[%s4667_s1 + $0x5a4] ss:$16 sps:$4 sm:$0xff]  }
  0x3f   :  { %1670 = vmatpush1.bf16.msra.mxu1 %v3124_v14  ;;  %v3211_v14 = vld [vmem:[%s4667_s1 + $0x1ac] ss:$16 sps:$4 sm:$0xff]  }
  0x40   :  { %1711 = vmatpush1.bf16.msra.mxu0 %v3125_v15  ;;  %1803 = vmatprep.subr.bf16.mxu1 %v3133_v17  ;;  %v3206_v15 = vld [vmem:[%s4667_s1 + $0x5a0] ss:$16 sps:$4 sm:$0xff]   ;;  %v3214_v17 = vld [vmem:[%s4667_s1 + $0x5c4] ss:$16 sps:$4 sm:$0xff]  }
  0x41   :  { %1721 = vmatprep.subr.bf16.mxu0 %v3130_v16  ;;  %v3209_v16 = vld [vmem:[%s4667_s1 + $0x1a8] ss:$16 sps:$4 sm:$0xff]  }
  0x42   :  { %1672 = vmatmul.mubr.bf16.vlgmr.msra.gmra.mrb[0].mxu1 %v3791_v19 }
  0x43   :  { %1713 = vmatmul.mubr.bf16.vlgmr.msra.gmra.mrb[0].mxu0 %v3793_v20  ;;  %1804 = vmatpush1.bf16.msra.mxu1 %v3131_v22  ;;  %v3212_v22 = vld [vmem:[%s4667_s1 + $0x5c0] ss:$16 sps:$4 sm:$0xff]  }
  0x44   :  { %1722 = vmatpush1.bf16.msra.mxu0 %v3128_v21  ;;  %1805 = vmatprep.subr.bf16.mxu1 %v3139_v24  ;;  %v48_v21 = vcombine.high %v3759_v8, %v3759_v8  ;;  %v3220_v24 = vld [vmem:[%s4667_s1 + $0x5e4] ss:$16 sps:$4 sm:$0xff]   ;;  %v3223_v8 = vld [vmem:[%s4667_s1 + $0x1ec] ss:$16 sps:$4 sm:$0xff]  }
  0x45   :  { %1723 = vmatprep.subr.bf16.mxu0 %v3136_v23  ;;  %1753 = vmatprep.mubr.bf16.mxu0 %v3807_v25  ;;  %v3215_v23 = vld [vmem:[%s4667_s1 + $0x1c8] ss:$16 sps:$4 sm:$0xff]  }
  0x46   :  { %1835 = vmatprep.mubr.bf16.mxu1 %v74_v61  ;;  %v3185_v61 = vld [vmem:[%s4667_s1 + $0x128] ss:$16 sps:$4 sm:$0xff]  }
  0x47   :  { %1806 = vmatpush1.bf16.msra.mxu1 %v3137_v27  ;;  %v3218_v27 = vld [vmem:[%s4667_s1 + $0x5e0] ss:$16 sps:$4 sm:$0xff]  }
  0x48   :  { %1724 = vmatpush1.bf16.msra.mxu0 %v3134_v26  ;;  %1807 = vmatprep.subr.bf16.mxu1 %v3145_v29  ;;  %v3983_v26 = vrot.slane %v48_v21, %v3704_v49  ;;  %v3226_v29 = vld [vmem:[%s4667_s1 + $0x604] ss:$16 sps:$4 sm:$0xff]   ;;  %v3229_v49 = vld [vmem:[%s4667_s1 + $0x20c] ss:$16 sps:$4 sm:$0xff]   ;;  %v3296_v21 = vld [vmem:[%s4667_s1 + $0x780] ss:$16 sps:$4 sm:$0xff]  }
  0x49   :  { %1725 = vmatprep.subr.bf16.mxu0 %v3142_v28  ;;  %v3221_v28 = vld [vmem:[%s4667_s1 + $0x1e8] ss:$16 sps:$4 sm:$0xff]  }
  0x4b   :  { %1808 = vmatpush1.bf16.msra.mxu1 %v3143_v31  ;;  %v4001_v31 = vpack.c.bf16 %v3775_v13, %v3775_v13  ;;  %v3235_v13 = vld [vmem:[%s4667_s1 + $0x22c] ss:$16 sps:$4 sm:$0xff]  }
  0x4c   :  { %1726 = vmatpush1.bf16.msra.mxu0 %v3140_v30  ;;  %1809 = vmatprep.subr.bf16.mxu1 %v3151_v33  ;;  %v64_v30 = vcombine.high %v3983_v26, %v3983_v26  ;;  %v3227_v33 = vld [vmem:[%s4667_s1 + $0x208] ss:$16 sps:$4 sm:$0xff]  }
  0x4d   :  { %1727 = vmatprep.subr.bf16.mxu0 %v3148_v32  ;;  %v3224_v32 = vld [vmem:[%s4667_s1 + $0x600] ss:$16 sps:$4 sm:$0xff]  }
  0x4f   :  { %1810 = vmatpush1.bf16.msra.mxu1 %v3149_v35  ;;  %v4015_v35 = vpack.c.bf16 %v64_v30, %v64_v30  ;;  %v3311_v30 = vld [vmem:[%s4667_s1 + $0x3c8] ss:$16 sps:$4 sm:$0xff]  }
  0x50   :  { %1728 = vmatpush1.bf16.msra.mxu0 %v3146_v34  ;;  %1811 = vmatprep.subr.bf16.mxu1 %v3157_v37  ;;  %v3232_v34 = vld [vmem:[%s4667_s1 + $0x624] ss:$16 sps:$4 sm:$0xff]   ;;  %v3233_v37 = vld [vmem:[%s4667_s1 + $0x228] ss:$16 sps:$4 sm:$0xff]  }
  0x51   :  { %1729 = vmatprep.subr.bf16.mxu0 %v3154_v36  ;;  %v3230_v36 = vld [vmem:[%s4667_s1 + $0x620] ss:$16 sps:$4 sm:$0xff]  }
  0x53   :  { %1812 = vmatpush1.bf16.msra.mxu1 %v3155_v39  ;;  %v3236_v39 = vld [vmem:[%s4667_s1 + $0x640] ss:$16 sps:$4 sm:$0xff]  }
  0x54   :  { %1730 = vmatpush1.bf16.msra.mxu0 %v3152_v38  ;;  %1813 = vmatprep.subr.bf16.mxu1 %v3163_v41  ;;  %v3238_v38 = vld [vmem:[%s4667_s1 + $0x644] ss:$16 sps:$4 sm:$0xff]  }
  0x55   :  { %1731 = vmatprep.subr.bf16.mxu0 %v3160_v40  ;;  %v3239_v40 = vld [vmem:[%s4667_s1 + $0x248] ss:$16 sps:$4 sm:$0xff]   ;;  %v3244_v41 = vld [vmem:[%s4667_s1 + $0x664] ss:$16 sps:$4 sm:$0xff]  }
  0x57   :  { %1814 = vmatpush1.bf16.msra.mxu1 %v3161_v44  ;;  %v3245_v44 = vld [vmem:[%s4667_s1 + $0x268] ss:$16 sps:$4 sm:$0xff]  }
  0x58   :  { %1732 = vmatpush1.bf16.msra.mxu0 %v3158_v42  ;;  %1815 = vmatprep.subr.bf16.mxu1 %v3169_v46  ;;  %v3242_v42 = vld [vmem:[%s4667_s1 + $0x660] ss:$16 sps:$4 sm:$0xff]   ;;  %v3253_v46 = vld [vmem:[%s4667_s1 + $0x28c] ss:$16 sps:$4 sm:$0xff]  }
  0x59   :  { %1733 = vmatprep.subr.bf16.mxu0 %v3166_v45  ;;  %v3250_v45 = vld [vmem:[%s4667_s1 + $0x684] ss:$16 sps:$4 sm:$0xff]  }
  0x5b   :  { %1816 = vmatpush1.bf16.msra.mxu1 %v3167_v48  ;;  %v3251_v48 = vld [vmem:[%s4667_s1 + $0x288] ss:$16 sps:$4 sm:$0xff]  }
  0x5c   :  { %1734 = vmatpush1.bf16.msra.mxu0 %v3164_v47  ;;  %1817 = vmatprep.subr.bf16.mxu1 %v3175_v51  ;;  %v3248_v47 = vld [vmem:[%s4667_s1 + $0x680] ss:$16 sps:$4 sm:$0xff]   ;;  %v3259_v51 = vld [vmem:[%s4667_s1 + $0x2ac] ss:$16 sps:$4 sm:$0xff]  }
  0x5d   :  { %1735 = vmatprep.subr.bf16.mxu0 %v3172_v50  ;;  %v3256_v50 = vld [vmem:[%s4667_s1 + $0x6a4] ss:$16 sps:$4 sm:$0xff]  }
  0x5f   :  { %1818 = vmatpush1.bf16.msra.mxu1 %v3173_v53  ;;  %v3257_v53 = vld [vmem:[%s4667_s1 + $0x2a8] ss:$16 sps:$4 sm:$0xff]  }
  0x60   :  { %1736 = vmatpush1.bf16.msra.mxu0 %v3170_v52  ;;  %1819 = vmatprep.subr.bf16.mxu1 %v3181_v55  ;;  %v3254_v52 = vld [vmem:[%s4667_s1 + $0x6a0] ss:$16 sps:$4 sm:$0xff]   ;;  %v3265_v55 = vld [vmem:[%s4667_s1 + $0x2cc] ss:$16 sps:$4 sm:$0xff]  }
  0x61   :  { %1737 = vmatprep.subr.bf16.mxu0 %v3178_v54  ;;  %v3262_v54 = vld [vmem:[%s4667_s1 + $0x6c4] ss:$16 sps:$4 sm:$0xff]  }
  0x63   :  { %1820 = vmatpush1.bf16.msra.mxu1 %v3179_v57  ;;  %v3263_v57 = vld [vmem:[%s4667_s1 + $0x2c8] ss:$16 sps:$4 sm:$0xff]  }
  0x64   :  { %1738 = vmatpush1.bf16.msra.mxu0 %v3176_v56  ;;  %1821 = vmatprep.subr.bf16.mxu1 %v3187_v59  ;;  %v3260_v56 = vld [vmem:[%s4667_s1 + $0x6c0] ss:$16 sps:$4 sm:$0xff]   ;;  %v3271_v59 = vld [vmem:[%s4667_s1 + $0x2ec] ss:$16 sps:$4 sm:$0xff]  }
  0x65   :  { %1739 = vmatprep.subr.bf16.mxu0 %v3184_v58  ;;  %v3268_v58 = vld [vmem:[%s4667_s1 + $0x6e4] ss:$16 sps:$4 sm:$0xff]  }
  0x67   :  { %1822 = vmatpush1.bf16.msra.mxu1 %v3185_v61  ;;  %v3269_v61 = vld [vmem:[%s4667_s1 + $0x2e8] ss:$16 sps:$4 sm:$0xff]  }
  0x68   :  { %1740 = vmatpush1.bf16.msra.mxu0 %v3182_v60  ;;  %1823 = vmatprep.subr.bf16.mxu1 %v3193_v63  ;;  %v3266_v60 = vld [vmem:[%s4667_s1 + $0x6e0] ss:$16 sps:$4 sm:$0xff]   ;;  %v3277_v63 = vld [vmem:[%s4667_s1 + $0x30c] ss:$16 sps:$4 sm:$0xff]  }
  0x69   :  { %1741 = vmatprep.subr.bf16.mxu0 %v3190_v62  ;;  %v3274_v62 = vld [vmem:[%s4667_s1 + $0x704] ss:$16 sps:$4 sm:$0xff]  }
  0x6b   :  { %1824 = vmatpush1.bf16.msra.mxu1 %v3191_v1  ;;  %v3275_v1 = vld [vmem:[%s4667_s1 + $0x308] ss:$16 sps:$4 sm:$0xff]  }
  0x6c   :  { %1742 = vmatpush1.bf16.msra.mxu0 %v3188_v0  ;;  %1825 = vmatprep.subr.bf16.mxu1 %v3199_v4  ;;  %v3272_v0 = vld [vmem:[%s4667_s1 + $0x700] ss:$16 sps:$4 sm:$0xff]   ;;  %v3283_v4 = vld [vmem:[%s4667_s1 + $0x32c] ss:$16 sps:$4 sm:$0xff]  }
  0x6d   :  { %1743 = vmatprep.subr.bf16.mxu0 %v3196_v2  ;;  %v3280_v2 = vld [vmem:[%s4667_s1 + $0x724] ss:$16 sps:$4 sm:$0xff]  }
  0x6f   :  { %1826 = vmatpush1.bf16.msra.mxu1 %v3197_v6  ;;  %v3281_v6 = vld [vmem:[%s4667_s1 + $0x328] ss:$16 sps:$4 sm:$0xff]  }
  0x70   :  { %1744 = vmatpush1.bf16.msra.mxu0 %v3194_v5  ;;  %1827 = vmatprep.subr.bf16.mxu1 %v3205_v9  ;;  %v3278_v5 = vld [vmem:[%s4667_s1 + $0x720] ss:$16 sps:$4 sm:$0xff]   ;;  %v3289_v9 = vld [vmem:[%s4667_s1 + $0x34c] ss:$16 sps:$4 sm:$0xff]  }
  0x71   :  { %1745 = vmatprep.subr.bf16.mxu0 %v3202_v7  ;;  %v3286_v7 = vld [vmem:[%s4667_s1 + $0x744] ss:$16 sps:$4 sm:$0xff]  }
  0x73   :  { %1828 = vmatpush1.bf16.msra.mxu1 %v3203_v11  ;;  %v3287_v11 = vld [vmem:[%s4667_s1 + $0x348] ss:$16 sps:$4 sm:$0xff]  }
  0x74   :  { %1746 = vmatpush1.bf16.msra.mxu0 %v3200_v10  ;;  %1829 = vmatprep.subr.bf16.mxu1 %v3211_v14  ;;  %v3284_v10 = vld [vmem:[%s4667_s1 + $0x740] ss:$16 sps:$4 sm:$0xff]   ;;  %v3295_v14 = vld [vmem:[%s4667_s1 + $0x36c] ss:$16 sps:$4 sm:$0xff]  }
  0x75   :  { %1747 = vmatprep.subr.bf16.mxu0 %v3208_v12  ;;  %v3292_v12 = vld [vmem:[%s4667_s1 + $0x764] ss:$16 sps:$4 sm:$0xff]  }
  0x77   :  { %1830 = vmatpush1.bf16.msra.mxu1 %v3209_v16  ;;  %v3293_v16 = vld [vmem:[%s4667_s1 + $0x368] ss:$16 sps:$4 sm:$0xff]  }
  0x78   :  { %1748 = vmatpush1.bf16.msra.mxu0 %v3206_v15  ;;  %1831 = vmatprep.subr.bf16.mxu1 %v3217_v18  ;;  %v3290_v15 = vld [vmem:[%s4667_s1 + $0x760] ss:$16 sps:$4 sm:$0xff]   ;;  %v3301_v18 = vld [vmem:[%s4667_s1 + $0x38c] ss:$16 sps:$4 sm:$0xff]  }
  0x79   :  { %1749 = vmatprep.subr.bf16.mxu0 %v3214_v17  ;;  %v3298_v17 = vld [vmem:[%s4667_s1 + $0x784] ss:$16 sps:$4 sm:$0xff]  }
  0x7b   :  { %1832 = vmatpush1.bf16.msra.mxu1 %v3215_v23  ;;  %v3304_v23 = vld [vmem:[%s4667_s1 + $0x7a4] ss:$16 sps:$4 sm:$0xff]  }
  0x7c   :  { %1750 = vmatpush1.bf16.msra.mxu0 %v3212_v22  ;;  %1833 = vmatprep.subr.bf16.mxu1 %v3223_v8  ;;  %v3299_v22 = vld [vmem:[%s4667_s1 + $0x388] ss:$16 sps:$4 sm:$0xff]   ;;  %v3302_v8 = vld [vmem:[%s4667_s1 + $0x7a0] ss:$16 sps:$4 sm:$0xff]  }
  0x7d   :  { %1751 = vmatprep.subr.bf16.mxu0 %v3220_v24  ;;  %v3307_v24 = vld [vmem:[%s4667_s1 + $0x3ac] ss:$16 sps:$4 sm:$0xff]  }
  0x7f   :  { %1834 = vmatpush1.bf16.msra.mxu1 %v3221_v28  ;;  %v3310_v28 = vld [vmem:[%s4667_s1 + $0x7c4] ss:$16 sps:$4 sm:$0xff]  }
  0x80   :  { %1752 = vmatpush1.bf16.msra.mxu0 %v3218_v27  ;;  %1844 = vmatprep.subr.bf16.mxu1 %v3229_v49  ;;  %v3305_v27 = vld [vmem:[%s4667_s1 + $0x3a8] ss:$16 sps:$4 sm:$0xff]   ;;  %v3308_v49 = vld [vmem:[%s4667_s1 + $0x7c0] ss:$16 sps:$4 sm:$0xff]  }
  0x81   :  { %1762 = vmatprep.subr.bf16.mxu0 %v3226_v29  ;;  %v3313_v29 = vld [vmem:[%s4667_s1 + $0x3cc] ss:$16 sps:$4 sm:$0xff]  }
  0x82   :  { %1836 = vmatmul.mubr.bf16.vlgmr.msra.gmra.mrb[4].mxu1 %v3791_v19  ;;  %v3241_v19 = vld [vmem:[%s4667_s1 + $0x24c] ss:$16 sps:$4 sm:$0xff]  }
  0x83   :  { %1754 = vmatmul.mubr.bf16.vlgmr.msra.gmra.mrb[0].mxu0 %v4001_v31  ;;  %1845 = vmatpush1.bf16.msra.mxu1 %v3227_v33  ;;  %v3319_v33 = vld [vmem:[%s4667_s1 + $0x3ec] ss:$16 sps:$4 sm:$0xff]  }
  0x84   :  { %1763 = vmatpush1.bf16.msra.mxu0 %v3224_v32  ;;  %1846 = vmatprep.subr.bf16.mxu1 %v3235_v13  ;;  %v3316_v32 = vld [vmem:[%s4667_s1 + $0x7e4] ss:$16 sps:$4 sm:$0xff]   ;;  %v3317_v13 = vld [vmem:[%s4667_s1 + $0x3e8] ss:$16 sps:$4 sm:$0xff]  }
  0x85   :  { %1764 = vmatprep.subr.bf16.mxu0 %v3232_v34  ;;  %1794 = vmatprep.mubr.bf16.mxu0 %v4015_v35  ;;  %v3314_v34 = vld [vmem:[%s4667_s1 + $0x7e0] ss:$16 sps:$4 sm:$0xff]  }
  0x86   :  { %1876 = vmatprep.mubr.bf16.mxu1 %v3741_v3  ;;  %v3247_v3 = vld [vmem:[%s4667_s1 + $0x26c] ss:$16 sps:$4 sm:$0xff]  }
  0x87   :  { %1847 = vmatpush1.bf16.msra.mxu1 %v3233_v37  ;;  %v4200_v37 = vpack.c.bf16 %v3983_v26, %v3983_v26  ;;  %v3323_v26 = vld [vmem:[%s4667_s1 + $0x428] ss:$16 sps:$4 sm:$0xff]  }
  0x88   :  { %1765 = vmatpush1.bf16.msra.mxu0 %v3230_v36  ;;  %1848 = vmatprep.subr.bf16.mxu1 %v3241_v19  ;;  %v3322_v36 = vld [vmem:[%s4667_s1 + $0x40c] ss:$16 sps:$4 sm:$0xff]  }
  0x89   :  { %1766 = vmatprep.subr.bf16.mxu0 %v3238_v38  ;;  %v3320_v38 = vld [vmem:[%s4667_s1 + $0x408] ss:$16 sps:$4 sm:$0xff]   ;;  %v3325_v19 = vld [vmem:[%s4667_s1 + $0x42c] ss:$16 sps:$4 sm:$0xff]  }
  0x8b   :  { %1849 = vmatpush1.bf16.msra.mxu1 %v3239_v40  ;;  %v3416_v40 = vld [vmem:[%s4669_s3] ss:$8 sps:$4 sm:$0xff]  }
  0x8c   :  { %1767 = vmatpush1.bf16.msra.mxu0 %v3236_v39  ;;  %1850 = vmatprep.subr.bf16.mxu1 %v3247_v3  ;;  %v3328_v39 = vld [vmem:[%s4667_s1 + $0x44c] ss:$16 sps:$4 sm:$0xff]   ;;  %v3326_v3 = vld [vmem:[%s4667_s1 + $0x448] ss:$16 sps:$4 sm:$0xff]  }
  0x8d   :  { %1768 = vmatprep.subr.bf16.mxu0 %v3244_v41  ;;  %v3421_v41 = vld [vmem:[%s4669_s3 + $0x14] ss:$8 sps:$4 sm:$0xff]  }
  0x8f   :  { %1851 = vmatpush1.bf16.msra.mxu1 %v3245_v44  ;;  %v3424_v44 = vld [vmem:[%s4669_s3 + $0x24] ss:$8 sps:$4 sm:$0xff]  }
  0x90   :  { %1769 = vmatpush1.bf16.msra.mxu0 %v3242_v42  ;;  %1852 = vmatprep.subr.bf16.mxu1 %v3253_v46  ;;  %v3419_v42 = vld [vmem:[%s4669_s3 + $0x10] ss:$8 sps:$4 sm:$0xff]   ;;  %v3334_v46 = vld [vmem:[%s4667_s1 + $0x48c] ss:$16 sps:$4 sm:$0xff]  }
  0x91   :  { %1770 = vmatprep.subr.bf16.mxu0 %v3250_v45  ;;  %v3329_v45 = vld [vmem:[%s4667_s1 + $0x468] ss:$16 sps:$4 sm:$0xff]  }
  0x93   :  { %1853 = vmatpush1.bf16.msra.mxu1 %v3251_v48  ;;  %v3427_v48 = vld [vmem:[%s4669_s3 + $0x34] ss:$8 sps:$4 sm:$0xff]  }
  0x94   :  { %1771 = vmatpush1.bf16.msra.mxu0 %v3248_v47  ;;  %1854 = vmatprep.subr.bf16.mxu1 %v3259_v51  ;;  %v3422_v47 = vld [vmem:[%s4669_s3 + $0x20] ss:$8 sps:$4 sm:$0xff]   ;;  %v3337_v51 = vld [vmem:[%s4667_s1 + $0x4ac] ss:$16 sps:$4 sm:$0xff]  }
  0x95   :  { %1772 = vmatprep.subr.bf16.mxu0 %v3256_v50  ;;  %v3332_v50 = vld [vmem:[%s4667_s1 + $0x488] ss:$16 sps:$4 sm:$0xff]  }
  0x97   :  { %1855 = vmatpush1.bf16.msra.mxu1 %v3257_v53  ;;  %v3430_v53 = vld [vmem:[%s4669_s3 + $0x44] ss:$8 sps:$4 sm:$0xff]  }
  0x98   :  { %1773 = vmatpush1.bf16.msra.mxu0 %v3254_v52  ;;  %1856 = vmatprep.subr.bf16.mxu1 %v3265_v55  ;;  %v3425_v52 = vld [vmem:[%s4669_s3 + $0x30] ss:$8 sps:$4 sm:$0xff]   ;;  %v3340_v55 = vld [vmem:[%s4667_s1 + $0x4cc] ss:$16 sps:$4 sm:$0xff]  }
  0x99   :  { %1774 = vmatprep.subr.bf16.mxu0 %v3262_v54  ;;  %v3335_v54 = vld [vmem:[%s4667_s1 + $0x4a8] ss:$16 sps:$4 sm:$0xff]  }
  0x9b   :  { %1857 = vmatpush1.bf16.msra.mxu1 %v3263_v57  ;;  %v3433_v57 = vld [vmem:[%s4669_s3 + $0x54] ss:$8 sps:$4 sm:$0xff]  }
  0x9c   :  { %1775 = vmatpush1.bf16.msra.mxu0 %v3260_v56  ;;  %1858 = vmatprep.subr.bf16.mxu1 %v3271_v59  ;;  %v3428_v56 = vld [vmem:[%s4669_s3 + $0x40] ss:$8 sps:$4 sm:$0xff]   ;;  %v3431_v59 = vld [vmem:[%s4669_s3 + $0x50] ss:$8 sps:$4 sm:$0xff]  }
  0x9d   :  { %1776 = vmatprep.subr.bf16.mxu0 %v3268_v58  ;;  %v3338_v58 = vld [vmem:[%s4667_s1 + $0x4c8] ss:$16 sps:$4 sm:$0xff]  }
  0x9f   :  { %1859 = vmatpush1.bf16.msra.mxu1 %v3269_v61  ;;  %v3436_v61 = vld [vmem:[%s4669_s3 + $0x64] ss:$8 sps:$4 sm:$0xff]  }
  0xa0   :  { %1777 = vmatpush1.bf16.msra.mxu0 %v3266_v60  ;;  %1860 = vmatprep.subr.bf16.mxu1 %v3277_v63  ;;  %v3343_v60 = vld [vmem:[%s4667_s1 + $0x4ec] ss:$16 sps:$4 sm:$0xff]   ;;  %v3434_v63 = vld [vmem:[%s4669_s3 + $0x60] ss:$8 sps:$4 sm:$0xff]  }
  0xa1   :  { %1778 = vmatprep.subr.bf16.mxu0 %v3274_v62  ;;  %v3341_v62 = vld [vmem:[%s4667_s1 + $0x4e8] ss:$16 sps:$4 sm:$0xff]  }
  0xa3   :  { %1861 = vmatpush1.bf16.msra.mxu1 %v3275_v1  ;;  %v3439_v1 = vld [vmem:[%s4669_s3 + $0x74] ss:$8 sps:$4 sm:$0xff]  }
  0xa4   :  { %1779 = vmatpush1.bf16.msra.mxu0 %v3272_v0  ;;  %1862 = vmatprep.subr.bf16.mxu1 %v3283_v4  ;;  %v3346_v0 = vld [vmem:[%s4667_s1 + $0x50c] ss:$16 sps:$4 sm:$0xff]   ;;  %v3437_v4 = vld [vmem:[%s4669_s3 + $0x70] ss:$8 sps:$4 sm:$0xff]  }
  0xa5   :  { %1780 = vmatprep.subr.bf16.mxu0 %v3280_v2  ;;  %v3344_v2 = vld [vmem:[%s4667_s1 + $0x508] ss:$16 sps:$4 sm:$0xff]  }
  0xa7   :  { %1863 = vmatpush1.bf16.msra.mxu1 %v3281_v6  ;;  %v3442_v6 = vld [vmem:[%s4669_s3 + $0x84] ss:$8 sps:$4 sm:$0xff]  }
  0xa8   :  { %1781 = vmatpush1.bf16.msra.mxu0 %v3278_v5  ;;  %1864 = vmatprep.subr.bf16.mxu1 %v3289_v9  ;;  %v3349_v5 = vld [vmem:[%s4667_s1 + $0x52c] ss:$16 sps:$4 sm:$0xff]   ;;  %v3440_v9 = vld [vmem:[%s4669_s3 + $0x80] ss:$8 sps:$4 sm:$0xff]  }
  0xa9   :  { %1782 = vmatprep.subr.bf16.mxu0 %v3286_v7  ;;  %v3347_v7 = vld [vmem:[%s4667_s1 + $0x528] ss:$16 sps:$4 sm:$0xff]  }
  0xab   :  { %1865 = vmatpush1.bf16.msra.mxu1 %v3287_v11  ;;  %v3445_v11 = vld [vmem:[%s4669_s3 + $0x94] ss:$8 sps:$4 sm:$0xff]  }
  0xac   :  { %1783 = vmatpush1.bf16.msra.mxu0 %v3284_v10  ;;  %1866 = vmatprep.subr.bf16.mxu1 %v3295_v14  ;;  %v3352_v10 = vld [vmem:[%s4667_s1 + $0x54c] ss:$16 sps:$4 sm:$0xff]   ;;  %v3443_v14 = vld [vmem:[%s4669_s3 + $0x90] ss:$8 sps:$4 sm:$0xff]  }
  0xad   :  { %1784 = vmatprep.subr.bf16.mxu0 %v3292_v12  ;;  %v3350_v12 = vld [vmem:[%s4667_s1 + $0x548] ss:$16 sps:$4 sm:$0xff]  }
  0xaf   :  { %1867 = vmatpush1.bf16.msra.mxu1 %v3293_v16  ;;  %v3448_v16 = vld [vmem:[%s4669_s3 + $0xa4] ss:$8 sps:$4 sm:$0xff]  }
  0xb0   :  { %1785 = vmatpush1.bf16.msra.mxu0 %v3290_v15  ;;  %1868 = vmatprep.subr.bf16.mxu1 %v3301_v18  ;;  %v3355_v15 = vld [vmem:[%s4667_s1 + $0x56c] ss:$16 sps:$4 sm:$0xff]   ;;  %v3446_v18 = vld [vmem:[%s4669_s3 + $0xa0] ss:$8 sps:$4 sm:$0xff]  }
  0xb1   :  { %1786 = vmatprep.subr.bf16.mxu0 %v3298_v17  ;;  %v3353_v17 = vld [vmem:[%s4667_s1 + $0x568] ss:$16 sps:$4 sm:$0xff]  }
  0xb3   :  { %1869 = vmatpush1.bf16.msra.mxu1 %v3299_v22  ;;  %v3451_v22 = vld [vmem:[%s4669_s3 + $0xb4] ss:$8 sps:$4 sm:$0xff]  }
  0xb4   :  { %1787 = vmatpush1.bf16.msra.mxu0 %v3296_v21  ;;  %1870 = vmatprep.subr.bf16.mxu1 %v3307_v24  ;;  %v3358_v21 = vld [vmem:[%s4667_s1 + $0x58c] ss:$16 sps:$4 sm:$0xff]   ;;  %v3449_v24 = vld [vmem:[%s4669_s3 + $0xb0] ss:$8 sps:$4 sm:$0xff]  }
  0xb5   :  { %1788 = vmatprep.subr.bf16.mxu0 %v3304_v23  ;;  %v3356_v23 = vld [vmem:[%s4667_s1 + $0x588] ss:$16 sps:$4 sm:$0xff]  }
  0xb7   :  { %1871 = vmatpush1.bf16.msra.mxu1 %v3305_v27  ;;  %v3454_v27 = vld [vmem:[%s4669_s3 + $0xc4] ss:$8 sps:$4 sm:$0xff]  }
  0xb8   :  { %1789 = vmatpush1.bf16.msra.mxu0 %v3302_v8  ;;  %1872 = vmatprep.subr.bf16.mxu1 %v3313_v29  ;;  %v3361_v8 = vld [vmem:[%s4667_s1 + $0x5ac] ss:$16 sps:$4 sm:$0xff]   ;;  %v3452_v29 = vld [vmem:[%s4669_s3 + $0xc0] ss:$8 sps:$4 sm:$0xff]  }
  0xb9   :  { %1790 = vmatprep.subr.bf16.mxu0 %v3310_v28  ;;  %v3359_v28 = vld [vmem:[%s4667_s1 + $0x5a8] ss:$16 sps:$4 sm:$0xff]  }
  0xbb   :  { %1873 = vmatpush1.bf16.msra.mxu1 %v3311_v30  ;;  %v3457_v30 = vld [vmem:[%s4669_s3 + $0xd4] ss:$8 sps:$4 sm:$0xff]  }
  0xbc   :  { %1791 = vmatpush1.bf16.msra.mxu0 %v3308_v49  ;;  %1874 = vmatprep.subr.bf16.mxu1 %v3319_v33  ;;  %v3364_v49 = vld [vmem:[%s4667_s1 + $0x5cc] ss:$16 sps:$4 sm:$0xff]   ;;  %v3455_v33 = vld [vmem:[%s4669_s3 + $0xd0] ss:$8 sps:$4 sm:$0xff]  }
  0xbd   :  { %1792 = vmatprep.subr.bf16.mxu0 %v3316_v32  ;;  %v3362_v32 = vld [vmem:[%s4667_s1 + $0x5c8] ss:$16 sps:$4 sm:$0xff]  }
  0xbf   :  { %1875 = vmatpush1.bf16.msra.mxu1 %v3317_v13  ;;  %v3365_v13 = vld [vmem:[%s4667_s1 + $0x5e8] ss:$16 sps:$4 sm:$0xff]  }
  0xc0   :  { %1793 = vmatpush1.bf16.msra.mxu0 %v3314_v34  ;;  %1885 = vmatprep.subr.bf16.mxu1 %v3322_v36  ;;  %v3367_v34 = vld [vmem:[%s4667_s1 + $0x5ec] ss:$16 sps:$4 sm:$0xff]  }
  0xc1   :  { %v3370_v36 = vld [vmem:[%s4667_s1 + $0x60c] ss:$16 sps:$4 sm:$0xff]  }
  0xc2   :  { %1877 = vmatmul.mubr.bf16.vlgmr.msra.gmra.mrb[4].mxu1 %v3793_v20  ;;  %v3418_v20 = vld [vmem:[%s4669_s3 + $0x4] ss:$8 sps:$4 sm:$0xff]  }
  0xc3   :  { %1795 = vmatmul.mubr.bf16.vlgmr.msra.gmra.mrb[0].mxu0 %v4200_v37  ;;  %1886 = vmatpush1.bf16.msra.mxu1 %v3320_v38  ;;  %v3368_v38 = vld [vmem:[%s4667_s1 + $0x608] ss:$16 sps:$4 sm:$0xff]  }
  0xc4   :  { %1917 = vmatprep.mubr.bf16.mxu1 %v3807_v25  ;;  %1887 = vmatprep.subr.bf16.mxu1 %v3325_v19  ;;  %v3331_v25 = vld [vmem:[%s4667_s1 + $0x46c] ss:$16 sps:$4 sm:$0xff]  }
  0xc5   :  { %2371 = vmatprep.subr.bf16.mxu0 %v3418_v20  ;;  %v3373_v19 = vld [vmem:[%s4667_s1 + $0x62c] ss:$16 sps:$4 sm:$0xff]  }
  0xc6   :  { %2372 = vmatpush1.bf16.msra.mxu0 %v3416_v40  ;;  %v3374_v40 = vld [vmem:[%s4667_s1 + $0x648] ss:$16 sps:$4 sm:$0xff]   ;;  %v3382_v20 = vld [vmem:[%s4667_s1 + $0x68c] ss:$16 sps:$4 sm:$0xff]  }
  0xc7   :  { %1888 = vmatpush1.bf16.msra.mxu1 %v3323_v26  ;;  %2373 = vmatprep.subr.bf16.mxu0 %v3421_v41  ;;  %v3371_v26 = vld [vmem:[%s4667_s1 + $0x628] ss:$16 sps:$4 sm:$0xff]  }
  0xc8   :  { %1889 = vmatprep.subr.bf16.mxu1 %v3328_v39  ;;  %v3376_v39 = vld [vmem:[%s4667_s1 + $0x64c] ss:$16 sps:$4 sm:$0xff]   ;;  %v3380_v41 = vld [vmem:[%s4667_s1 + $0x688] ss:$16 sps:$4 sm:$0xff]  }
  0xca   :  { %2374 = vmatpush1.bf16.msra.mxu0 %v3419_v42  ;;  %v3388_v42 = vld [vmem:[%s4667_s1 + $0x6cc] ss:$16 sps:$4 sm:$0xff]  }
  0xcb   :  { %1890 = vmatpush1.bf16.msra.mxu1 %v3326_v3  ;;  %2375 = vmatprep.subr.bf16.mxu0 %v3424_v44  ;;  %v3385_v3 = vld [vmem:[%s4667_s1 + $0x6ac] ss:$16 sps:$4 sm:$0xff]  }
  0xcc   :  { %1891 = vmatprep.subr.bf16.mxu1 %v3331_v25  ;;  %v3383_v25 = vld [vmem:[%s4667_s1 + $0x6a8] ss:$16 sps:$4 sm:$0xff]   ;;  %v3460_v44 = vld [vmem:[%s4669_s3 + $0xe4] ss:$8 sps:$4 sm:$0xff]  }
  0xce   :  { %2376 = vmatpush1.bf16.msra.mxu0 %v3422_v47 }
  0xcf   :  { %1892 = vmatpush1.bf16.msra.mxu1 %v3329_v45  ;;  %2377 = vmatprep.subr.bf16.mxu0 %v3427_v48 }
  0xd0   :  { %1893 = vmatprep.subr.bf16.mxu1 %v3334_v46  ;;  %v3458_v46 = vld [vmem:[%s4669_s3 + $0xe0] ss:$8 sps:$4 sm:$0xff]  }
  0xd2   :  { %2378 = vmatpush1.bf16.msra.mxu0 %v3425_v52  ;;  %v3391_v52 = vld [vmem:[%s4667_s1 + $0x6ec] ss:$16 sps:$4 sm:$0xff]  }
  0xd3   :  { %1894 = vmatpush1.bf16.msra.mxu1 %v3332_v50  ;;  %2379 = vmatprep.subr.bf16.mxu0 %v3430_v53  ;;  %v3386_v50 = vld [vmem:[%s4667_s1 + $0x6c8] ss:$16 sps:$4 sm:$0xff]   ;;  %v3463_v53 = vld [vmem:[%s4669_s3 + $0xf4] ss:$8 sps:$4 sm:$0xff]  }
  0xd4   :  { %1895 = vmatprep.subr.bf16.mxu1 %v3337_v51 }
  0xd6   :  { %2380 = vmatpush1.bf16.msra.mxu0 %v3428_v56  ;;  %v3394_v56 = vld [vmem:[%s4667_s1 + $0x70c] ss:$16 sps:$4 sm:$0xff]  }
  0xd7   :  { %1896 = vmatpush1.bf16.msra.mxu1 %v3335_v54  ;;  %2381 = vmatprep.subr.bf16.mxu0 %v3433_v57  ;;  %v3461_v54 = vld [vmem:[%s4669_s3 + $0xf0] ss:$8 sps:$4 sm:$0xff]   ;;  %v3466_v57 = vld [vmem:[%s4669_s3 + $0x104] ss:$8 sps:$4 sm:$0xff]  }
  0xd8   :  { %1897 = vmatprep.subr.bf16.mxu1 %v3340_v55  ;;  %v3389_v55 = vld [vmem:[%s4667_s1 + $0x6e8] ss:$16 sps:$4 sm:$0xff]  }
  0xda   :  { %2382 = vmatpush1.bf16.msra.mxu0 %v3431_v59  ;;  %v3397_v59 = vld [vmem:[%s4667_s1 + $0x72c] ss:$16 sps:$4 sm:$0xff]  }
  0xdb   :  { %1898 = vmatpush1.bf16.msra.mxu1 %v3338_v58  ;;  %2383 = vmatprep.subr.bf16.mxu0 %v3436_v61  ;;  %v3392_v58 = vld [vmem:[%s4667_s1 + $0x708] ss:$16 sps:$4 sm:$0xff]   ;;  %v3400_v61 = vld [vmem:[%s4667_s1 + $0x74c] ss:$16 sps:$4 sm:$0xff]  }
  0xdc   :  { %1899 = vmatprep.subr.bf16.mxu1 %v3343_v60  ;;  %v3395_v60 = vld [vmem:[%s4667_s1 + $0x728] ss:$16 sps:$4 sm:$0xff]  }
  0xde   :  { %2384 = vmatpush1.bf16.msra.mxu0 %v3434_v63  ;;  %v3403_v63 = vld [vmem:[%s4667_s1 + $0x76c] ss:$16 sps:$4 sm:$0xff]  }
  0xdf   :  { %1900 = vmatpush1.bf16.msra.mxu1 %v3341_v62  ;;  %2385 = vmatprep.subr.bf16.mxu0 %v3439_v1  ;;  %v3398_v62 = vld [vmem:[%s4667_s1 + $0x748] ss:$16 sps:$4 sm:$0xff]   ;;  %v3406_v1 = vld [vmem:[%s4667_s1 + $0x78c] ss:$16 sps:$4 sm:$0xff]  }
  0xe0   :  { %1901 = vmatprep.subr.bf16.mxu1 %v3346_v0  ;;  %v3401_v0 = vld [vmem:[%s4667_s1 + $0x768] ss:$16 sps:$4 sm:$0xff]  }
  0xe2   :  { %2386 = vmatpush1.bf16.msra.mxu0 %v3437_v4  ;;  %v3409_v4 = vld [vmem:[%s4667_s1 + $0x7ac] ss:$16 sps:$4 sm:$0xff]  }
  0xe3   :  { %1902 = vmatpush1.bf16.msra.mxu1 %v3344_v2  ;;  %2387 = vmatprep.subr.bf16.mxu0 %v3442_v6  ;;  %v3404_v2 = vld [vmem:[%s4667_s1 + $0x788] ss:$16 sps:$4 sm:$0xff]   ;;  %v3412_v6 = vld [vmem:[%s4667_s1 + $0x7cc] ss:$16 sps:$4 sm:$0xff]  }
  0xe4   :  { %1903 = vmatprep.subr.bf16.mxu1 %v3349_v5  ;;  %v3407_v5 = vld [vmem:[%s4667_s1 + $0x7a8] ss:$16 sps:$4 sm:$0xff]  }
  0xe6   :  { %2388 = vmatpush1.bf16.msra.mxu0 %v3440_v9  ;;  %v3415_v9 = vld [vmem:[%s4667_s1 + $0x7ec] ss:$16 sps:$4 sm:$0xff]  }
  0xe7   :  { %1904 = vmatpush1.bf16.msra.mxu1 %v3347_v7  ;;  %2389 = vmatprep.subr.bf16.mxu0 %v3445_v11  ;;  %v3410_v7 = vld [vmem:[%s4667_s1 + $0x7c8] ss:$16 sps:$4 sm:$0xff]   ;;  %v341_v11 = vsub.s32 0, %v3686_v43 }
  0xe8   :  { %1905 = vmatprep.subr.bf16.mxu1 %v3352_v10  ;;  %v3413_v10 = vld [vmem:[%s4667_s1 + $0x7e8] ss:$16 sps:$4 sm:$0xff]  }
  0xea   :  { %2390 = vmatpush1.bf16.msra.mxu0 %v3443_v14  ;;  %v345_v14 = vsub.s32 1, %v3686_v43 }
  0xeb   :  { %1906 = vmatpush1.bf16.msra.mxu1 %v3350_v12  ;;  %2391 = vmatprep.subr.bf16.mxu0 %v3448_v16  ;;  %v4500_v12 = vld [vmem:[%s4670_s2] sm:$0xf] }
  0xec   :  { %1907 = vmatprep.subr.bf16.mxu1 %v3355_v15  ;;  %v342_v15 = vrot.slane %v4500_v12, %v341_v11  ;;  %v346_v16 = vrot.slane %v4500_v12, %v345_v14 }
  0xee   :  { %2392 = vmatpush1.bf16.msra.mxu0 %v3446_v18 }
  0xef   :  { %1908 = vmatpush1.bf16.msra.mxu1 %v3353_v17  ;;  %2393 = vmatprep.subr.bf16.mxu0 %v3451_v22 }
  0xf0   :  { %1909 = vmatprep.subr.bf16.mxu1 %v3358_v21 }
  0xf2   :  { %2394 = vmatpush1.bf16.msra.mxu0 %v3449_v24 }
  0xf3   :  { %1910 = vmatpush1.bf16.msra.mxu1 %v3356_v23  ;;  %2395 = vmatprep.subr.bf16.mxu0 %v3454_v27 }
  0xf4   :  { %1911 = vmatprep.subr.bf16.mxu1 %v3361_v8 }
  0xf6   :  { %2396 = vmatpush1.bf16.msra.mxu0 %v3452_v29 }
  0xf7   :  { %1912 = vmatpush1.bf16.msra.mxu1 %v3359_v28  ;;  %2397 = vmatprep.subr.bf16.mxu0 %v3457_v30 }
  0xf8   :  { %1913 = vmatprep.subr.bf16.mxu1 %v3364_v49  ;;  %v3464_v49 = vld [vmem:[%s4669_s3 + $0x100] ss:$8 sps:$4 sm:$0xff]  }
  0xfa   :  { %2398 = vmatpush1.bf16.msra.mxu0 %v3455_v33  ;;  %v3467_v33 = vld [vmem:[%s4669_s3 + $0x110] ss:$8 sps:$4 sm:$0xff]  }
  0xfb   :  { %1914 = vmatpush1.bf16.msra.mxu1 %v3362_v32  ;;  %2399 = vmatprep.subr.bf16.mxu0 %v3460_v44  ;;  %v3469_v32 = vld [vmem:[%s4669_s3 + $0x114] ss:$8 sps:$4 sm:$0xff]   ;;  %v3520_v44 = vld [vmem:[%s4671_s5 + $0x60] sm:$0xff]  }
  0xfc   :  { %1915 = vmatprep.subr.bf16.mxu1 %v3367_v34  ;;  %v3472_v34 = vld [vmem:[%s4669_s3 + $0x124] ss:$8 sps:$4 sm:$0xff]  }
  0xfe   :  { %2400 = vmatpush1.bf16.msra.mxu0 %v3458_v46  ;;  %v3479_v46 = vld [vmem:[%s4669_s3 + $0x150] ss:$8 sps:$4 sm:$0xff]  }
  0xff   :  { %1916 = vmatpush1.bf16.msra.mxu1 %v3365_v13  ;;  %2401 = vmatprep.subr.bf16.mxu0 %v3463_v53  ;;  %v3512_v13 = vld [vmem:[%s4671_s5 + $0x40] sm:$0xff]   ;;  %v3485_v53 = vld [vmem:[%s4669_s3 + $0x170] ss:$8 sps:$4 sm:$0xff]  }
 0x100   :  { %1926 = vmatprep.subr.bf16.mxu1 %v3370_v36  ;;  %v3513_v36 = vld [vmem:[%s4671_s5] sm:$0xff]  }
 0x102   :  { %1918 = vmatmul.mubr.bf16.vlgmr.msra.gmra.mrb[4].mxu1 %v4001_v31  ;;  %v3379_v31 = vld [vmem:[%s4667_s1 + $0x66c] ss:$16 sps:$4 sm:$0xff]   ;;  %2402 = vmatpush1.bf16.msra.mxu0 %v3461_v54 }
 0x103   :  { %1927 = vmatpush1.bf16.msra.mxu1 %v3368_v38  ;;  %1958 = vmatprep.mubr.bf16.mxu1 %v4015_v35  ;;  %v3377_v35 = vld [vmem:[%s4667_s1 + $0x668] ss:$16 sps:$4 sm:$0xff]   ;;  %v3490_v54 = vld [vmem:[%s4669_s3 + $0x184] ss:$8 sps:$4 sm:$0xff]  }
 0x104   :  { %1928 = vmatprep.subr.bf16.mxu1 %v3373_v19  ;;  %2412 = vmatprep.subr.bf16.mxu0 %v3466_v57  ;;  %v3470_v38 = vld [vmem:[%s4669_s3 + $0x120] ss:$8 sps:$4 sm:$0xff]   ;;  %v3491_v57 = vld [vmem:[%s4669_s3 + $0x190] ss:$8 sps:$4 sm:$0xff]  }
 0x105   :  { %v3514_v19 = vld [vmem:[%s4671_s5 + $0x48] sm:$0xff]  }
 0x107   :  { %1929 = vmatpush1.bf16.msra.mxu1 %v3371_v26  ;;  %v3515_v26 = vld [vmem:[%s4671_s5 + $0x8] sm:$0xff]  }
 0x108   :  { %1930 = vmatprep.subr.bf16.mxu1 %v3376_v39  ;;  %v3516_v39 = vld [vmem:[%s4671_s5 + $0x50] sm:$0xff]  }
 0x10b   :  { %1931 = vmatpush1.bf16.msra.mxu1 %v3374_v40  ;;  %v3475_v40 = vld [vmem:[%s4669_s3 + $0x134] ss:$8 sps:$4 sm:$0xff]  }
 0x10c   :  { %1932 = vmatprep.subr.bf16.mxu1 %v3379_v31  ;;  %v3473_v31 = vld [vmem:[%s4669_s3 + $0x130] ss:$8 sps:$4 sm:$0xff]  }
 0x10f   :  { %1933 = vmatpush1.bf16.msra.mxu1 %v3377_v35  ;;  %v3517_v35 = vld [vmem:[%s4671_s5 + $0x10] sm:$0xff]  }
 0x110   :  { %1934 = vmatprep.subr.bf16.mxu1 %v3382_v20  ;;  %v3518_v20 = vld [vmem:[%s4671_s5 + $0x58] sm:$0xff]  }
 0x113   :  { %1935 = vmatpush1.bf16.msra.mxu1 %v3380_v41  ;;  %v3478_v41 = vld [vmem:[%s4669_s3 + $0x144] ss:$8 sps:$4 sm:$0xff]  }
 0x114   :  { %1936 = vmatprep.subr.bf16.mxu1 %v3385_v3  ;;  %v3476_v3 = vld [vmem:[%s4669_s3 + $0x140] ss:$8 sps:$4 sm:$0xff]  }
 0x115   :  { %v1673_v45 = vpop.f32.mrb[0].mxu1 }
 0x116   :  { %v1675_v47 = vpop.f32.mrb[1].mxu1  ;;  %v1674_v17 = vadd.f32 %v1673_v45, %v342_v15  ;;  %v3521_v45 = vld [vmem:[%s4671_s5 + $0x20] sm:$0xff]  }
 0x117   :  { %v1677_v48 = vpop.f32.mrb[2].mxu1  ;;  %1937 = vmatpush1.bf16.msra.mxu1 %v3383_v25  ;;  %v1676_v18 = vadd.f32 %v1675_v47, %v346_v16  ;;  %v3481_v25 = vld [vmem:[%s4669_s3 + $0x154] ss:$8 sps:$4 sm:$0xff]   ;;  %v3522_v47 = vld [vmem:[%s4671_s5 + $0x68] sm:$0xff]  }
 0x118   :  { %v1678_v51 = vpop.f32.mrb[3].mxu1  ;;  %1938 = vmatprep.subr.bf16.mxu1 %v3388_v42  ;;  %v3519_v42 = vld [vmem:[%s4671_s5 + $0x18] sm:$0xff]   ;;  %v3484_v48 = vld [vmem:[%s4669_s3 + $0x164] ss:$8 sps:$4 sm:$0xff]  }
 0x119   :  { %v3482_v51 = vld [vmem:[%s4669_s3 + $0x160] ss:$8 sps:$4 sm:$0xff]  }
 0x11b   :  { %1939 = vmatpush1.bf16.msra.mxu1 %v3386_v50  ;;  %v3523_v50 = vld [vmem:[%s4671_s5 + $0x28] sm:$0xff]  }
 0x11c   :  { %1940 = vmatprep.subr.bf16.mxu1 %v3391_v52  ;;  %v3487_v52 = vld [vmem:[%s4669_s3 + $0x174] ss:$8 sps:$4 sm:$0xff]  }
 0x11f   :  { %1941 = vmatpush1.bf16.msra.mxu1 %v3389_v55  ;;  %v3488_v55 = vld [vmem:[%s4669_s3 + $0x180] ss:$8 sps:$4 sm:$0xff]  }
 0x120   :  { %1942 = vmatprep.subr.bf16.mxu1 %v3394_v56  ;;  %v3493_v56 = vld [vmem:[%s4669_s3 + $0x194] ss:$8 sps:$4 sm:$0xff]  }
 0x123   :  { %1943 = vmatpush1.bf16.msra.mxu1 %v3392_v58  ;;  %v3496_v58 = vld [vmem:[%s4669_s3 + $0x1a4] ss:$8 sps:$4 sm:$0xff]  }
 0x124   :  { %1944 = vmatprep.subr.bf16.mxu1 %v3397_v59  ;;  %v3494_v59 = vld [vmem:[%s4669_s3 + $0x1a0] ss:$8 sps:$4 sm:$0xff]  }
 0x127   :  { %1945 = vmatpush1.bf16.msra.mxu1 %v3395_v60  ;;  %v3499_v60 = vld [vmem:[%s4669_s3 + $0x1b4] ss:$8 sps:$4 sm:$0xff]  }
 0x128   :  { %1946 = vmatprep.subr.bf16.mxu1 %v3400_v61  ;;  %v3497_v61 = vld [vmem:[%s4669_s3 + $0x1b0] ss:$8 sps:$4 sm:$0xff]  }
 0x12b   :  { %1947 = vmatpush1.bf16.msra.mxu1 %v3398_v62  ;;  %v3502_v62 = vld [vmem:[%s4669_s3 + $0x1c4] ss:$8 sps:$4 sm:$0xff]  }
 0x12c   :  { %1948 = vmatprep.subr.bf16.mxu1 %v3403_v63  ;;  %v3500_v63 = vld [vmem:[%s4669_s3 + $0x1c0] ss:$8 sps:$4 sm:$0xff]  }
 0x12f   :  { %1949 = vmatpush1.bf16.msra.mxu1 %v3401_v0  ;;  %v3505_v0 = vld [vmem:[%s4669_s3 + $0x1d4] ss:$8 sps:$4 sm:$0xff]  }
 0x130   :  { %1950 = vmatprep.subr.bf16.mxu1 %v3406_v1  ;;  %v3503_v1 = vld [vmem:[%s4669_s3 + $0x1d0] ss:$8 sps:$4 sm:$0xff]  }
 0x133   :  { %1951 = vmatpush1.bf16.msra.mxu1 %v3404_v2  ;;  %v3508_v2 = vld [vmem:[%s4669_s3 + $0x1e4] ss:$8 sps:$4 sm:$0xff]  }
 0x134   :  { %1952 = vmatprep.subr.bf16.mxu1 %v3409_v4  ;;  %v3506_v4 = vld [vmem:[%s4669_s3 + $0x1e0] ss:$8 sps:$4 sm:$0xff]  }
 0x137   :  { %1953 = vmatpush1.bf16.msra.mxu1 %v3407_v5  ;;  %v3511_v5 = vld [vmem:[%s4669_s3 + $0x1f4] ss:$8 sps:$4 sm:$0xff]  }
 0x138   :  { %1954 = vmatprep.subr.bf16.mxu1 %v3412_v6  ;;  %v3509_v6 = vld [vmem:[%s4669_s3 + $0x1f0] ss:$8 sps:$4 sm:$0xff]  }
 0x13b   :  { %1955 = vmatpush1.bf16.msra.mxu1 %v3410_v7  ;;  %v349_v7 = vsub.s32 2, %v3686_v43 }
 0x13c   :  { %1956 = vmatprep.subr.bf16.mxu1 %v3415_v9  ;;  %v353_v9 = vsub.s32 3, %v3686_v43 }
 0x13e   :  { %v354_v15 = vrot.slane %v4500_v12, %v353_v9 }
 0x13f   :  { %1957 = vmatpush1.bf16.msra.mxu1 %v3413_v10  ;;  %v350_v10 = vrot.slane %v4500_v12, %v349_v7  ;;  %v3525_v12 = vld [vmem:[%s4671_s5 + $0x30] sm:$0xff]  }
 0x140   :  { %2975 = vmatprep.subr.bf16.mxu1 %v3512_v13 }
 0x142   :  { %1959 = vmatmul.mubr.bf16.vlgmr.msra.gmra.mrb[4].mxu1 %v4200_v37 }
 0x143   :  { %2976 = vmatpush3.bf16.msra.mxu1 %v3513_v36 }
 0x144   :  { %2977 = vmatprep.subr.bf16.mxu1 %v3514_v19 }
 0x147   :  { %2978 = vmatpush3.bf16.msra.mxu1 %v3515_v26 }
 0x148   :  { %2979 = vmatprep.subr.bf16.mxu1 %v3516_v39 }
 0x14b   :  { %2980 = vmatpush3.bf16.msra.mxu1 %v3517_v35 }
 0x14c   :  { %2981 = vmatprep.subr.bf16.mxu1 %v3518_v20 }
 0x14f   :  { %2982 = vmatpush3.bf16.msra.mxu1 %v3519_v42 }
 0x150   :  { %2983 = vmatprep.subr.bf16.mxu1 %v3520_v44 }
 0x153   :  { %2984 = vmatpush3.bf16.msra.mxu1 %v3521_v45 }
 0x154   :  { %2985 = vmatprep.subr.bf16.mxu1 %v3522_v47 }
 0x157   :  { %2986 = vmatpush3.bf16.msra.mxu1 %v3523_v50 }
 0x196   :  { %v1796_v37 = vpop.f32.mrb[0].mxu0 }
 0x197   :  { %v2998_v21 = vadd.f32 %v1796_v37, %v1674_v17  ;;  %v1798_v22 = vpop.f32.mrb[1].mxu0 }
 0x198   :  { %v3000_v23 = vadd.f32 %v1798_v22, %v1676_v18  ;;  %v1800_v24 = vpop.f32.mrb[2].mxu0 }
 0x199   :  { %v1967_v8 = vmax.f32 %v2998_v21, 0.0  ;;  %v1801_v27 = vpop.f32.mrb[3].mxu0 }
 0x19a   :  { %v1968_v28 = vmax.f32 %v3000_v23, 0.0 }
 0x19b   :  { %v1971_v30 = vpack.c.bf16 %v1967_v8, %v1967_v8 }
 0x19c   :  { %v1972_v29 = vpack.c.bf16 %v1968_v28, %v1968_v28  ;;  %v3524_v28 = vld [vmem:[%s4671_s5 + $0x70] sm:$0xff]  }
 0x19d   :  { %2987 = vmatprep.subr.bf16.mxu1 %v3524_v28 }
 0x19e   :  { %2403 = vmatprep.mubr.bf16.mxu0 %v1972_v29  ;;  %2988 = vmatpush3.bf16.msra.mxu1 %v3525_v12  ;;  %v3526_v29 = vld [vmem:[%s4671_s5 + $0x78] sm:$0xff]  }
 0x19f   :  { %2404 = vmatmul.mubr.bf16.vlgmr.msra.gmra.mrb[4].mxu0 %v1971_v30  ;;  %2989 = vmatprep.subr.bf16.mxu1 %v3526_v29  ;;  %v2039_v30 = vld [vmem:[%s4672_s4] sm:$0x3] }
 0x1a0   :  { %2413 = vmatpush1.bf16.msra.mxu0 %v3464_v49  ;;  %v3527_v49 = vld [vmem:[%s4671_s5 + $0x38] sm:$0xff]  }
 0x1a1   :  { %2414 = vmatprep.subr.bf16.mxu0 %v3469_v32  ;;  %v2044_v32 = vrot.slane %v2039_v30, %v341_v11  ;;  %v2958_v11 = vld [vmem:[%s4673_s6] ss:$0 sm:$0xff] }
 0x1a2   :  { %2990 = vmatpush3.bf16.msra.mxu1 %v3527_v49 }
 0x1a4   :  { %2415 = vmatpush1.bf16.msra.mxu0 %v3467_v33  ;;  %v2048_v33 = vrot.slane %v2039_v30, %v345_v14 }
 0x1a5   :  { %2416 = vmatprep.subr.bf16.mxu0 %v3472_v34 }
 0x1a8   :  { %2417 = vmatpush1.bf16.msra.mxu0 %v3470_v38 }
 0x1a9   :  { %2418 = vmatprep.subr.bf16.mxu0 %v3475_v40 }
 0x1ac   :  { %2419 = vmatpush1.bf16.msra.mxu0 %v3473_v31 }
 0x1ad   :  { %2420 = vmatprep.subr.bf16.mxu0 %v3478_v41 }
 0x1b0   :  { %2421 = vmatpush1.bf16.msra.mxu0 %v3476_v3 }
 0x1b1   :  { %2422 = vmatprep.subr.bf16.mxu0 %v3481_v25 }
 0x1b4   :  { %2423 = vmatpush1.bf16.msra.mxu0 %v3479_v46 }
 0x1b5   :  { %2424 = vmatprep.subr.bf16.mxu0 %v3484_v48 }
 0x1b8   :  { %2425 = vmatpush1.bf16.msra.mxu0 %v3482_v51 }
 0x1b9   :  { %2426 = vmatprep.subr.bf16.mxu0 %v3487_v52 }
 0x1bc   :  { %2427 = vmatpush1.bf16.msra.mxu0 %v3485_v53 }
 0x1bd   :  { %2428 = vmatprep.subr.bf16.mxu0 %v3490_v54 }
 0x1c0   :  { %2429 = vmatpush1.bf16.msra.mxu0 %v3488_v55 }
 0x1c1   :  { %2430 = vmatprep.subr.bf16.mxu0 %v3493_v56 }
 0x1c4   :  { %2431 = vmatpush1.bf16.msra.mxu0 %v3491_v57 }
 0x1c5   :  { %2432 = vmatprep.subr.bf16.mxu0 %v3496_v58 }
 0x1c8   :  { %2433 = vmatpush1.bf16.msra.mxu0 %v3494_v59 }
 0x1c9   :  { %2434 = vmatprep.subr.bf16.mxu0 %v3499_v60 }
 0x1cc   :  { %2435 = vmatpush1.bf16.msra.mxu0 %v3497_v61 }
 0x1cd   :  { %2436 = vmatprep.subr.bf16.mxu0 %v3502_v62 }
 0x1d0   :  { %2437 = vmatpush1.bf16.msra.mxu0 %v3500_v63 }
 0x1d1   :  { %2438 = vmatprep.subr.bf16.mxu0 %v3505_v0 }
 0x1d4   :  { %2439 = vmatpush1.bf16.msra.mxu0 %v3503_v1 }
 0x1d5   :  { %2440 = vmatprep.subr.bf16.mxu0 %v3508_v2 }
 0x1d8   :  { %2441 = vmatpush1.bf16.msra.mxu0 %v3506_v4 }
 0x1d9   :  { %2442 = vmatprep.subr.bf16.mxu0 %v3511_v5 }
 0x1dc   :  { %2443 = vmatpush1.bf16.msra.mxu0 %v3509_v6 }
 0x215   :  { %v1960_v16 = vpop.f32.mrb[4].mxu1 }
 0x216   :  { %v3001_v17 = vadd.f32 %v1960_v16, %v350_v10  ;;  %v1962_v18 = vpop.f32.mrb[5].mxu1 }
 0x217   :  { %v3002_v37 = vadd.f32 %v1962_v18, %v354_v15  ;;  %v1964_v21 = vpop.f32.mrb[6].mxu1 }
 0x218   :  { %v1969_v22 = vmax.f32 %v3001_v17, 0.0  ;;  %v1965_v23 = vpop.f32.mrb[7].mxu1 }
 0x219   :  { %v1970_v24 = vmax.f32 %v3002_v37, 0.0 }
 0x21a   :  { %v1973_v27 = vpack.c.bf16 %v1969_v22, %v1969_v22 }
 0x21b   :  { %v1974_v8 = vpack.c.bf16 %v1970_v24, %v1970_v24 }
 0x21d   :  { %2444 = vmatprep.mubr.bf16.mxu0 %v1974_v8 }
 0x21e   :  { %2445 = vmatmul.mubr.bf16.vlgmr.msra.gmra.mrb[4].mxu0 %v1973_v27 }
 0x2f1   :  { %v2446_v34 = vpop.f32.mrb[4].mxu0 }
 0x2f2   :  { %v3003_v13 = vadd.f32 %v2446_v34, %v2044_v32  ;;  %v2448_v36 = vpop.f32.mrb[5].mxu0 }
 0x2f3   :  { %v3004_v38 = vadd.f32 %v2448_v36, %v2048_v33  ;;  %v2450_v19 = vpop.f32.mrb[6].mxu0 }
 0x2f4   :  { %v2453_v26 = vmax.f32 %v3003_v13, 0.0  ;;  %v2451_v39 = vpop.f32.mrb[7].mxu0 }
 0x2f5   :  { %v2454_v40 = vmax.f32 %v3004_v38, 0.0 }
 0x2f6   :  { %v2455_v35 = vpack.c.bf16 %v2453_v26, %v2453_v26 }
 0x2f7   :  { %v2456_v31 = vpack.c.bf16 %v2454_v40, %v2454_v40 }
 0x2f9   :  { %2624 = vmatprep.mubr.bf16.mxu1 %v2456_v31 }
 0x2fa   :  { %2625 = vmatmul.mubr.bf16.vlgmr.msra.gmra.mrb[8].mxu1 %v2455_v35 }
 0x3cd   :  { %v2991_v20 = vpop.f32.mrb[8].mxu1 }
 0x3ce   :  { %v2992_v41 = vpop.f32.mrb[9].mxu1 }
 0x3cf   :  { %v2993_v43 = vadd.f32 %v2992_v41, %v2991_v20  ;;  %v2994_v14 = vpop.f32.mrb[10].mxu1 }
 0x3d0   :  { %v2995_v3 = vpop.f32.mrb[11].mxu1 }
 0x3d1   :  { %v2627_v25 = vadd.f32 %v2993_v43, %v2958_v11 }
 0x3d3   :  { %2633 = vst.msk [vmem:[%s4674_s7] sm:$0x3] %vm2632_vm0, %v2627_v25 }

// kernel: pointnetfeat_forward.5
= control target key start
LH: loop header
LB: loop body
LE: loop exit
PB: predicated region body
PF: predicated region fallthrough
CT: control target
= control target key end

     0   :  { %s2529_s27 = smov 0   ;;  %s3381_s0 = inlined_call_operand.vmem [shape: bf16[2,128,3], index: 0, kind: input, shape index: {}]   ;;  %s3382_s1 = inlined_call_operand.vmem [shape: f32[2,3,3], index: 1, kind: input, shape index: {}]   ;;  %s3383_s2 = inlined_call_operand.vmem [shape: bf16[3,64], index: 2, kind: input, shape index: {}]   ;;  %s3384_s3 = inlined_call_operand.vmem [shape: f32[1,64], index: 3, kind: input, shape index: {}]   ;;  %s3385_s4 = inlined_call_operand.vmem [shape: bf16[64,128], index: 4, kind: input, shape index: {}]   ;;  %s3386_s5 = inlined_call_operand.vmem [shape: f32[1,128], index: 5, kind: input, shape index: {}]   ;;  %s3387_s6 = inlined_call_operand.vmem [shape: bf16[128,1024], index: 6, kind: input, shape index: {}]   ;;  %s3388_s7 = inlined_call_operand.vmem [shape: f32[1,1024], index: 7, kind: input, shape index: {}]   ;;  %s3389_s8 = inlined_call_operand.vmem [shape: f32[2,1,1024], index: 8, kind: output, shape index: {}]  }
   0x1 LB: > { %s2137_s28 = sadd.s32 4294967295, %s2476_s27   ;;  %p2141_p0 = scmp.ge.s32.totalorder %s2476_s27, 1  ;;  %s2476_s27 = sphi %s2529_s27, %s18_s27  }
   0x2   : > { %p271_p1 = scmp.lt.s32.totalorder %s2476_s27, 3 }
   0x4   : > { %p272_p2 = pnand %p2141_p0, %p271_p1 }
   0x5   : > { %v339_v0 = vld [vmem:[%s3383_s2] sm:$0x3] (!%p272_p2)  ;;  %vm345_vm0 = vcmask (!%p272_p2), 1042432   ;;  %p308_p3 = scmp.lt.s32.totalorder (!%p272_p2), %s2137_s28, 1  ;;  %v2478_v1 = vmov (!%p272_p2), 0.0   ;;  %vm2479_vm1 = vmmov (!%p272_p2), 0  }
   0x6   : > { %275 = sbr.rel (%p272_p2) target bundleno = 832 (0x340), region = 52  ;;  %2282 = vmatprep.subr.mxu0 (!%p272_p2), %v2478_v1  ;;  %v340_v2 = vunpack.c.l.bf16 (!%p272_p2), %v339_v0  ;;  %2284 = vmatprep.mubr.msk.f32.mxu0 (!%p272_p2), %vm2479_vm1, %v2478_v1  ;;  %vm341_vm2 = vcmask (!%p272_p2), 23552   ;;  %v3390_v3 = vmov (!%p272_p2), 0   ;;  %v2481_v13 = vmov (!%p272_p2), 1   ;;  %v2466_v39 = vld [vmem:[%s3385_s4] sm:$0xff] (!%p272_p2)   ;;  %v2467_v40 = vld [vmem:[%s3385_s4 + $0x8] sm:$0xff] (!%p272_p2)  }
   0x7   : > { %2337 = vset.pattern.permute.xlu1 (!%p272_p2), %v3390_v3  ;;  %2325 = vset.pattern.permute.xlu0 (!%p272_p2), %v3390_v3  ;;  %v2482_v18 = vmov (!%p272_p2), 2   ;;  %v2468_v41 = vld [vmem:[%s3385_s4 + $0x10] sm:$0xff] (!%p272_p2)   ;;  %v2469_v42 = vld [vmem:[%s3385_s4 + $0x18] sm:$0xff] (!%p272_p2)   ;;  %v967_v44 = vld [vmem:[%s3387_s6] sm:$0xff] (!%p272_p2)  ;;  %vm821_vm3 = vcmask (!%p272_p2), 523264  }
   0x8   : > { %2283 = vmatpush3.msk.msra.mxu0 (!%p272_p2), %vm345_vm0, %v340_v2  ;;  %2287 = vmatprep.subr.bf16.mxu1 (!%p272_p2), %v2466_v39  ;;  %v971_v45 = vld [vmem:[%s3387_s6 + $0x20] sm:$0xff] (!%p272_p2)  ;;  %v2592_v46 = vld [vmem:[%s3387_s6 + $0x8] sm:$0xff] (!%p272_p2) }
   0x9   : > { %2288 = vmatpush3.bf16.msra.mxu1 (!%p272_p2), %v2466_v39  ;;  %v2597_v47 = vld [vmem:[%s3387_s6 + $0x28] sm:$0xff] (!%p272_p2)  ;;  %v975_v48 = vld [vmem:[%s3387_s6 + $0x40] sm:$0xff] (!%p272_p2)  ;;  %v2162_v50 = vcombine.low (!%p272_p2), %v967_v44, %v971_v45  ;;  %v2163_v51 = vcombine.high (!%p272_p2), %v967_v44, %v971_v45 }
   0xa   : > { %2289 = vmatprep.subr.bf16.mxu1 (!%p272_p2), %v2467_v40  ;;  %v979_v49 = vld [vmem:[%s3387_s6 + $0x60] sm:$0xff] (!%p272_p2)  ;;  %v2165_v53 = vcombine.high (!%p272_p2), %v2592_v46, %v2597_v47  ;;  %v2705_v39 = vld [vmem:[%s3387_s6 + $0xe8] sm:$0xff] (!%p272_p2) }
   0xb   : > { %v2171_v54 = vcombine.high (!%p272_p2), %v975_v48, %v979_v49  ;;  %v983_v55 = vld [vmem:[%s3387_s6 + $0x80] sm:$0xff] (!%p272_p2)  ;;  %1393 = vmatprep.subr.bf16.mxu0 (!%p272_p2), %v2163_v51  ;;  %v2170_v58 = vcombine.low (!%p272_p2), %v975_v48, %v979_v49 }
   0xc   : > { %v987_v56 = vld [vmem:[%s3387_s6 + $0xa0] sm:$0xff] (!%p272_p2) }
   0xd   : > { %s3427_s28 = smov (!%p308_p3, %s2137_s28), 1  ;;  %2290 = vmatpush3.bf16.msra.mxu1 %v2467_v40  ;;  %v2179_v59 = vcombine.high %v983_v55, %v987_v56  ;;  %v991_v60 = vld [vmem:[%s3387_s6 + $0xc0] sm:$0xff]  ;;  %v2178_v62 = vcombine.low %v983_v55, %v987_v56 }
   0xe   : > { %s2228_s9 = sshll.u32 %s3427_s28, 6  ;;  %s2144_s10 = sshll.u32 %s3427_s28, 2  ;;  %2291 = vmatprep.subr.bf16.mxu1 %v2468_v41  ;;  %v995_v61 = vld [vmem:[%s3387_s6 + $0xe0] sm:$0xff] }
   0xf   : > { %s2549_s13 = scalar_lea.vmem %s3381_s0, %s2228_s9  ;;  %s316_s16 = scalar_lea.vmem %s3382_s1, %s2144_s10  ;;  %v2187_v0 = vcombine.high %v991_v60, %v995_v61  ;;  %v999_v1 = vld [vmem:[%s3387_s6 + $0x100] sm:$0xff] }
  0x10   : > { %v338_v4 = vld [vmem:[%s316_s16] sm:$0x7]  ;;  %v2261_v5 = vld [vmem:[%s2549_s13 + $0x8] sm:$0xff]   ;;  %v2262_v14 = vld [vmem:[%s2549_s13 + $0x10] sm:$0xff]   ;;  %s2145_s19 = sshll.u32 %s3427_s28, 3 }
  0x11   : > { %v2230_v6 = vld [vmem:[%s2549_s13] sm:$0xff]   ;;  %2285 = vmatmul.mubr.msk.f32.vlgmr.msra.gmra.mrb[0].mxu0 %vm341_vm2, %v338_v4  ;;  %v2235_v7 = vunpack.c.l.bf16 %v2261_v5  ;;  %v2236_v8 = vunpack.c.h.bf16 %v2261_v5  ;;  %v2263_v15 = vld [vmem:[%s2549_s13 + $0x18] sm:$0xff]   ;;  %v2239_v16 = vunpack.c.l.bf16 %v2262_v14  ;;  %v2240_v17 = vunpack.c.h.bf16 %v2262_v14  ;;  %v2265_v23 = vld [vmem:[%s2549_s13 + $0x28] sm:$0xff]   ;;  %2292 = vmatpush3.bf16.msra.mxu1 %v2468_v41  ;;  %s320_s22 = scalar_lea.vmem %s3389_s8, %s2145_s19 }
  0x12   : > { %v2231_v9 = vunpack.c.l.bf16 %v2230_v6  ;;  %v2232_v10 = vunpack.c.h.bf16 %v2230_v6  ;;  %1425 = vmatprep.mubr.bf16.mxu0 %v3390_v3  ;;  %v2243_v19 = vunpack.c.l.bf16 %v2263_v15  ;;  %v2244_v20 = vunpack.c.h.bf16 %v2263_v15  ;;  %v2264_v27 = vld [vmem:[%s2549_s13 + $0x20] sm:$0xff]   ;;  %v2267_v28 = vld [vmem:[%s2549_s13 + $0x38] sm:$0xff]   ;;  %v2266_v35 = vld [vmem:[%s2549_s13 + $0x30] sm:$0xff]   ;;  %2293 = vmatprep.subr.bf16.mxu1 %v2469_v42 }
  0x13   : > { %v2338_v11 = vpack.i.bf16 %v2236_v8, %v2235_v7  ;;  %v2362_v21 = vpack.i.bf16 %v2240_v17, %v2239_v16  ;;  %v2251_v24 = vunpack.c.l.bf16 %v2265_v23  ;;  %v2252_v25 = vunpack.c.h.bf16 %v2265_v23  ;;  %1394 = vmatpush1.bf16.msra.mxu0 %v2162_v50  ;;  %v1003_v2 = vld [vmem:[%s3387_s6 + $0x120] sm:$0xff] }
  0x14   : > { %v2326_v12 = vpack.i.bf16 %v2232_v10, %v2231_v9  ;;  %v2374_v22 = vpack.i.bf16 %v2244_v20, %v2243_v19  ;;  %v2247_v29 = vunpack.c.l.bf16 %v2264_v27  ;;  %v2248_v30 = vunpack.c.h.bf16 %v2264_v27  ;;  %1395 = vmatprep.subr.bf16.mxu0 %v2171_v54  ;;  %v1007_v7 = vld [vmem:[%s3387_s6 + $0x140] sm:$0xff] }
  0x15   : > { %2339 = vperm.xlu1 %2337, %v2338_v11   ;;  %v2409_v26 = vpack.i.bf16 %v2252_v25, %v2251_v24  ;;  %v2259_v31 = vunpack.c.l.bf16 %v2267_v28  ;;  %v2260_v32 = vunpack.c.h.bf16 %v2267_v28  ;;  %v2255_v36 = vunpack.c.l.bf16 %v2266_v35  ;;  %2294 = vmatpush3.bf16.msra.mxu1 %v2469_v42  ;;  %v1011_v8 = vld [vmem:[%s3387_s6 + $0x160] sm:$0xff] }
  0x16   : > { %2327 = vperm.xlu0 %2325, %v2326_v12   ;;  %v2397_v33 = vpack.i.bf16 %v2248_v30, %v2247_v29  ;;  %v2256_v37 = vunpack.c.h.bf16 %v2266_v35  ;;  %1506 = vmatprep.subr.bf16.mxu1 %v2165_v53  ;;  %v2186_v4 = vcombine.low %v991_v60, %v995_v61  ;;  %v2195_v5 = vcombine.high %v999_v1, %v1003_v2  ;;  %v2676_v30 = vld [vmem:[%s3387_s6 + $0x48] sm:$0xff] }
  0x17   : > { %v2444_v34 = vpack.i.bf16 %v2260_v32, %v2259_v31  ;;  %1396 = vmatpush1.bf16.msra.mxu0 %v2170_v58  ;;  %v2194_v9 = vcombine.low %v999_v1, %v1003_v2  ;;  %v2203_v10 = vcombine.high %v1007_v7, %v1011_v8  ;;  %v2681_v31 = vld [vmem:[%s3387_s6 + $0x68] sm:$0xff] }
  0x18   : > { %v2432_v38 = vpack.i.bf16 %v2256_v37, %v2255_v36  ;;  %1397 = vmatprep.subr.bf16.mxu0 %v2179_v59  ;;  %v2686_v32 = vld [vmem:[%s3387_s6 + $0x88] sm:$0xff] }
  0x19   : > { %2343 = vset.pattern.permute.xlu1 %v2481_v13 }
  0x1a   : > { %2331 = vset.pattern.permute.xlu0 %v2481_v13  ;;  %2345 = vperm.xlu1 %2343, %v2338_v11  }
  0x1b   : > { %2333 = vperm.xlu0 %2331, %v2326_v12   ;;  %1398 = vmatpush1.bf16.msra.mxu0 %v2178_v62 }
  0x1c   : > { %1399 = vmatprep.subr.bf16.mxu0 %v2187_v0 }
  0x1e   : > { %2349 = vset.pattern.permute.xlu1 %v2482_v18 }
  0x1f   : > { %2355 = vset.pattern.permute.xlu0 %v2482_v18  ;;  %2351 = vperm.xlu1 %2349, %v2326_v12   ;;  %v2202_v12 = vcombine.low %v1007_v7, %v1011_v8 }
  0x20   : > { %2357 = vperm.xlu0 %2355, %v2338_v11   ;;  %1400 = vmatpush1.bf16.msra.mxu0 %v2186_v4 }
  0x21   : > { %1401 = vmatprep.subr.bf16.mxu0 %v2195_v5 }
  0x23   : > { %2361 = vset.pattern.permute.xlu1 %v3390_v3 }
  0x24   : > { %2373 = vset.pattern.permute.xlu0 %v3390_v3  ;;  %2363 = vperm.xlu1 %2361, %v2362_v21  }
  0x25   : > { %2375 = vperm.xlu0 %2373, %v2374_v22   ;;  %1402 = vmatpush1.bf16.msra.mxu0 %v2194_v9 }
  0x26   : > { %1403 = vmatprep.subr.bf16.mxu0 %v2203_v10 }
  0x28   : > { %2367 = vset.pattern.permute.xlu1 %v2481_v13 }
  0x29   : > { %2390 = vset.pattern.permute.xlu0 %v2482_v18  ;;  %2369 = vperm.xlu1 %2367, %v2362_v21  }
  0x2a   : > { %2392 = vperm.xlu0 %2390, %v2374_v22   ;;  %1404 = vmatpush1.bf16.msra.mxu0 %v2202_v12 }
  0x2d   : > { %2380 = vperm.xlu1 %2367, %v2374_v22  }
  0x2e   : > { %2408 = vset.pattern.permute.xlu0 %v3390_v3 }
  0x2f   : > { %2410 = vperm.xlu0 %2408, %v2409_v26  }
  0x31   : > { %2384 = vset.pattern.permute.xlu1 %v2482_v18 }
  0x32   : > { %2386 = vperm.xlu1 %2384, %v2362_v21  }
  0x33   : > { %2425 = vset.pattern.permute.xlu0 %v2482_v18 }
  0x34   : > { %2427 = vperm.xlu0 %2425, %v2409_v26  }
  0x36   : > { %2396 = vset.pattern.permute.xlu1 %v3390_v3 }
  0x37   : > { %2398 = vperm.xlu1 %2396, %v2397_v33  }
  0x38   : > { %2443 = vset.pattern.permute.xlu0 %v3390_v3 }
  0x39   : > { %2445 = vperm.xlu0 %2443, %v2444_v34  }
  0x3b   : > { %2402 = vset.pattern.permute.xlu1 %v2481_v13 }
  0x3c   : > { %2404 = vperm.xlu1 %2402, %v2397_v33  }
  0x3d   : > { %2460 = vset.pattern.permute.xlu0 %v2482_v18 }
  0x3e   : > { %2462 = vperm.xlu0 %2460, %v2444_v34  }
  0x40   : > { %2415 = vperm.xlu1 %2402, %v2409_v26   ;;  %v516_v26 = vlaneseq }
  0x42   : > { %v2669_v28 = vshrl.u32 %v516_v26, 7 }
  0x44   : > { %2419 = vset.pattern.permute.xlu1 %v2482_v18  ;;  %v3392_v35 = vsub.s32 0, %v2669_v28  ;;  %v3393_v36 = vsub.s32 1, %v2669_v28  ;;  %v3394_v37 = vsub.s32 2, %v2669_v28 }
  0x45   : > { %2421 = vperm.xlu1 %2419, %v2397_v33   ;;  %v2691_v33 = vld [vmem:[%s3387_s6 + $0xa8] sm:$0xff] }
  0x49   : > { %2431 = vset.pattern.permute.xlu1 %v3390_v3 }
  0x4a   : > { %2433 = vperm.xlu1 %2431, %v2432_v38  }
  0x4e   : > { %2437 = vset.pattern.permute.xlu1 %v2481_v13 }
  0x4f   : > { %2439 = vperm.xlu1 %2437, %v2432_v38  }
  0x53   : > { %2450 = vperm.xlu1 %2437, %v2444_v34  }
  0x57   : > { %2454 = vset.pattern.permute.xlu1 %v2482_v18 }
  0x58   : > { %2456 = vperm.xlu1 %2454, %v2432_v38   ;;  %v2700_v38 = vld [vmem:[%s3387_s6 + $0xc8] sm:$0xff] }
  0x94   : > { %v2581_v43 = vpop.permute.xlu1 %2339 }
  0x95   : > { %v2643_v14 = vpop.permute.xlu0 %2327  ;;  %v2342_v34 = vunpack.i.h.bf16 %v2581_v43  ;;  %v2341_v40 = vunpack.i.l.bf16 %v2581_v43 }
  0x96   : > { %v2330_v41 = vunpack.i.h.bf16 %v2643_v14  ;;  %v2329_v42 = vunpack.i.l.bf16 %v2643_v14 }
  0x99   : > { %v2615_v57 = vpop.permute.xlu1 %2345 }
  0x9a   : > { %v2647_v16 = vpop.permute.xlu0 %2333  ;;  %v2348_v45 = vunpack.i.h.bf16 %v2615_v57  ;;  %v2347_v53 = vunpack.i.l.bf16 %v2615_v57 }
  0x9b   : > { %v2336_v54 = vunpack.i.h.bf16 %v2647_v16  ;;  %v2335_v55 = vunpack.i.l.bf16 %v2647_v16 }
  0x9e   : > { %v2623_v63 = vpop.permute.xlu1 %2351 }
  0x9f   : > { %v2651_v18 = vpop.permute.xlu0 %2357  ;;  %v2354_v59 = vunpack.i.h.bf16 %v2623_v63  ;;  %v2353_v60 = vunpack.i.l.bf16 %v2623_v63 }
  0xa0   : > { %v2360_v61 = vunpack.i.h.bf16 %v2651_v18  ;;  %v2359_v62 = vunpack.i.l.bf16 %v2651_v18 }
  0xa3   : > { %v2631_v6 = vpop.permute.xlu1 %2363 }
  0xa4   : > { %v2655_v20 = vpop.permute.xlu0 %2375  ;;  %v2366_v0 = vunpack.i.h.bf16 %v2631_v6  ;;  %v2365_v1 = vunpack.i.l.bf16 %v2631_v6 }
  0xa8   : > { %v2639_v11 = vpop.permute.xlu1 %2369 }
  0xa9   : > { %v2659_v22 = vpop.permute.xlu0 %2392  ;;  %v3396_v18 = vunpack.i.h.bf16 %v2639_v11 }
  0xac   : > { %v2641_v13 = vpop.permute.xlu1 %2380 }
  0xae   : > { %v2663_v24 = vpop.permute.xlu0 %2410 }
  0xb1   : > { %v2645_v15 = vpop.permute.xlu1 %2386 }
  0xb2   : > { %v3398_v6 = vunpack.i.h.bf16 %v2645_v15 }
  0xb3   : > { %v2667_v27 = vpop.permute.xlu0 %2427 }
  0xb6   : > { %v2649_v17 = vpop.permute.xlu1 %2398 }
  0xb8   : > { %v2713_v48 = vpop.permute.xlu0 %2445 }
  0xb9   : > { %v2447_v26 = vunpack.i.l.bf16 %v2713_v48 }
  0xbb   : > { %v2653_v19 = vpop.permute.xlu1 %2404 }
  0xbd   : > { %v2748_v44 = vpop.permute.xlu0 %2462 }
  0xbf   : > { %v2657_v21 = vpop.permute.xlu1 %2415 }
  0xc4   : > { %v2661_v23 = vpop.permute.xlu1 %2421 }
  0xc9   : > { %v2665_v25 = vpop.permute.xlu1 %2433 }
  0xca   : > { %v2436_v58 = vunpack.i.h.bf16 %v2665_v25  ;;  %v2435_v50 = vunpack.i.l.bf16 %v2665_v25 }
  0xce   : > { %v2671_v29 = vpop.permute.xlu1 %2439 }
  0xcf   : > { %v2442_v49 = vunpack.i.h.bf16 %v2671_v29  ;;  %v2441_v52 = vunpack.i.l.bf16 %v2671_v29 }
  0xd2   : > { %v2724_v56 = vpop.permute.xlu1 %2450 }
  0xd7   : > { %v2457_v8 = vpop.permute.xlu1 %2456 }
  0xd8   : > { %v2458_v10 = vunpack.i.l.bf16 %v2457_v8 }
  0xe4   : > { %v415_v51 = vpop.f32.mrb[0].mxu0 }
  0xe5   : > { %v2754_v14 = vrot.slane %v415_v51, %v3392_v35  ;;  %v2758_v16 = vrot.slane %v415_v51, %v3393_v36  ;;  %v2286_v9 = vpop.f32.mrb[1].mxu0  ;;  %v2448_v35 = vunpack.i.h.bf16 %v2713_v48  ;;  %v2770_v36 = vrot.slane %v415_v51, %v3394_v37 }
  0xe6   : > { %v2459_v9 = vunpack.i.h.bf16 %v2457_v8  ;;  %v2424_v8 = vunpack.i.h.bf16 %v2661_v23  ;;  %v2453_v37 = vunpack.i.h.bf16 %v2724_v56 }
  0xe7   : > { %v532_v12 = vmul.f32 %v2435_v50, %v2754_v14  ;;  %v533_v2 = vmul.f32 %v2436_v58, %v2754_v14  ;;  %v616_v29 = vmul.f32 %v2441_v52, %v2758_v16  ;;  %v617_v4 = vmul.f32 %v2442_v49, %v2758_v16 }
  0xe8   : > { %v520_v5 = vmul.f32 %v2329_v42, %v2754_v14  ;;  %v521_v51 = vmul.f32 %v2330_v41, %v2754_v14  ;;  %v2452_v50 = vunpack.i.l.bf16 %v2724_v56  ;;  %v604_v58 = vmul.f32 %v2335_v55, %v2758_v16  ;;  %v2793_v56 = vld [vmem:[%s3384_s3] ss:$0 sm:$0xff] }
  0xe9   : > { %v2423_v52 = vunpack.i.l.bf16 %v2661_v23  ;;  %v717_v49 = vmul.f32 %v2459_v9, %v2770_v36  ;;  %v716_v25 = vmul.f32 %v2458_v10, %v2770_v36  ;;  %v605_v3 = vmul.f32 %v2336_v54, %v2758_v16 }
  0xea   : > { %v632_v48 = vadd.f32 %v616_v29, %v532_v12  ;;  %v633_v42 = vadd.f32 %v617_v4, %v533_v2  ;;  %v620_v7 = vadd.f32 %v604_v58, %v520_v5  ;;  %v704_v41 = vmul.f32 %v2353_v60, %v2770_v36 }
  0xeb   : > { %v621_v55 = vadd.f32 %v605_v3, %v521_v51  ;;  %v705_v9 = vmul.f32 %v2354_v59, %v2770_v36  ;;  %v522_v54 = vmul.f32 %v2341_v40, %v2754_v14  ;;  %v523_v2 = vmul.f32 %v2342_v34, %v2754_v14 }
  0xec   : > { %v2805_v60 = vmul.f32 %v2452_v50, %v2758_v16  ;;  %v2808_v4 = vmul.f32 %v2453_v37, %v2758_v16  ;;  %v2811_v3 = vmul.f32 %v2447_v26, %v2754_v14  ;;  %v720_v5 = vadd.f32 %v704_v41, %v620_v7 }
  0xed   : > { %v2814_v63 = vmul.f32 %v2448_v35, %v2754_v14  ;;  %v721_v59 = vadd.f32 %v705_v9, %v621_v55  ;;  %v606_v40 = vmul.f32 %v2347_v53, %v2758_v16  ;;  %v607_v43 = vmul.f32 %v2348_v45, %v2758_v16 }
  0xee   : > { %v2822_v34 = vadd.f32 %v716_v25, %v632_v48  ;;  %v2824_v37 = vadd.f32 %v717_v49, %v633_v42  ;;  %v742_v10 = vadd.f32 %v2793_v56, %v720_v5  ;;  %v706_v35 = vmul.f32 %v2359_v62, %v2770_v36 }
  0xef   : > { %v743_v7 = vadd.f32 %v2793_v56, %v721_v59  ;;  %v622_v12 = vadd.f32 %v606_v40, %v522_v54  ;;  %v623_v26 = vadd.f32 %v607_v43, %v523_v2  ;;  %v707_v53 = vmul.f32 %v2360_v61, %v2770_v36 }
  0xf0   : > { %v758_v57 = vmax.f32 %v742_v10, 0.0  ;;  %v524_v45 = vmul.f32 %v2365_v1, %v2754_v14  ;;  %v525_v25 = vmul.f32 %v2366_v0, %v2754_v14  ;;  %v3395_v62 = vunpack.i.l.bf16 %v2639_v11 }
  0xf1   : > { %v759_v48 = vmax.f32 %v743_v7, 0.0  ;;  %v722_v51 = vadd.f32 %v706_v35, %v622_v12  ;;  %v723_v50 = vadd.f32 %v707_v53, %v623_v26  ;;  %v609_v61 = vmul.f32 %v3396_v18, %v2758_v16 }
  0xf2   : > { %v608_v29 = vmul.f32 %v3395_v62, %v2758_v16  ;;  %v3397_v49 = vunpack.i.l.bf16 %v2645_v15  ;;  %v709_v0 = vmul.f32 %v3398_v6, %v2770_v36  ;;  %v3399_v42 = vunpack.i.l.bf16 %v2655_v20 }
  0xf3   : > { %v774_v55 = vpack.c.bf16 %v759_v48, %v758_v57  ;;  %v744_v9 = vadd.f32 %v2793_v56, %v722_v51  ;;  %v745_v54 = vadd.f32 %v2793_v56, %v723_v50  ;;  %v625_v11 = vadd.f32 %v609_v61, %v525_v25 }
  0xf4   : > { %v624_v58 = vadd.f32 %v608_v29, %v524_v45  ;;  %v708_v1 = vmul.f32 %v3397_v49, %v2770_v36  ;;  %v526_v41 = vmul.f32 %v3399_v42, %v2754_v14  ;;  %v3400_v5 = vunpack.i.h.bf16 %v2655_v20 }
  0xf5   : > { %v3401_v40 = vunpack.i.l.bf16 %v2641_v13  ;;  %v3402_v43 = vunpack.i.h.bf16 %v2641_v13  ;;  %2295 = vmatprep.mubr.msk.bf16.mxu1 %vm821_vm3, %v774_v55  ;;  %v760_v35 = vmax.f32 %v744_v9, 0.0  ;;  %v761_v7 = vmax.f32 %v745_v54, 0.0 }
  0xf6   : > { %v724_v2 = vadd.f32 %v708_v1, %v624_v58  ;;  %v527_v59 = vmul.f32 %v3400_v5, %v2754_v14  ;;  %v725_v12 = vadd.f32 %v709_v0, %v625_v11  ;;  %v3403_v26 = vunpack.i.l.bf16 %v2659_v22 }
  0xf7   : > { %v610_v15 = vmul.f32 %v3401_v40, %v2758_v16  ;;  %v611_v10 = vmul.f32 %v3402_v43, %v2758_v16  ;;  %v3404_v25 = vunpack.i.h.bf16 %v2659_v22  ;;  %v775_v29 = vpack.c.bf16 %v761_v7, %v760_v35 }
  0xf8   : > { %v710_v53 = vmul.f32 %v3403_v26, %v2770_v36  ;;  %v746_v20 = vadd.f32 %v2793_v56, %v724_v2  ;;  %v747_v13 = vadd.f32 %v2793_v56, %v725_v12  ;;  %v3405_v48 = vunpack.i.l.bf16 %v2649_v17 }
  0xf9   : > { %v626_v57 = vadd.f32 %v610_v15, %v526_v41  ;;  %v627_v45 = vadd.f32 %v611_v10, %v527_v59  ;;  %v711_v62 = vmul.f32 %v3404_v25, %v2770_v36  ;;  %v3406_v50 = vunpack.i.h.bf16 %v2649_v17  ;;  %2296 = vmatmul.mubr.msk.bf16.vlgmr.msra.gmra.mrb[0].mxu1 %vm821_vm3, %v775_v29 }
  0xfa   : > { %v528_v51 = vmul.f32 %v3405_v48, %v2754_v14  ;;  %v762_v61 = vmax.f32 %v746_v20, 0.0  ;;  %v3407_v1 = vunpack.i.l.bf16 %v2653_v19  ;;  %v763_v22 = vmax.f32 %v747_v13, 0.0 }
  0xfb   : > { %v529_v18 = vmul.f32 %v3406_v50, %v2754_v14  ;;  %v726_v58 = vadd.f32 %v710_v53, %v626_v57  ;;  %v727_v49 = vadd.f32 %v711_v62, %v627_v45  ;;  %v3408_v0 = vunpack.i.h.bf16 %v2653_v19 }
  0xfc   : > { %v612_v6 = vmul.f32 %v3407_v1, %v2758_v16  ;;  %v712_v41 = vmul.f32 %v2423_v52, %v2770_v36  ;;  %v713_v17 = vmul.f32 %v2424_v8, %v2770_v36  ;;  %v3409_v11 = vunpack.i.l.bf16 %v2663_v24 }
  0xfd   : > { %v613_v42 = vmul.f32 %v3408_v0, %v2758_v16  ;;  %v748_v55 = vadd.f32 %v2793_v56, %v726_v58  ;;  %v749_v9 = vadd.f32 %v2793_v56, %v727_v49  ;;  %v3410_v19 = vcombine.low %v2592_v46, %v2597_v47 }
  0xfe   : > { %v628_v54 = vadd.f32 %v612_v6, %v528_v51  ;;  %v530_v2 = vmul.f32 %v3409_v11, %v2754_v14  ;;  %v776_v5 = vpack.c.bf16 %v763_v22, %v762_v61  ;;  %v3411_v52 = vunpack.i.h.bf16 %v2663_v24 }
  0xff   : > { %1507 = vmatpush1.bf16.msra.mxu1 %v3410_v19  ;;  %v629_v59 = vadd.f32 %v613_v42, %v529_v18  ;;  %v3412_v8 = vunpack.i.l.bf16 %v2657_v21  ;;  %v3413_v15 = vcombine.high %v2676_v30, %v2681_v31  ;;  %v764_v43 = vmax.f32 %v748_v55, 0.0 }
 0x100   : > { %v531_v23 = vmul.f32 %v3411_v52, %v2754_v14  ;;  %v765_v10 = vmax.f32 %v749_v9, 0.0  ;;  %v728_v35 = vadd.f32 %v712_v41, %v628_v54  ;;  %v3414_v46 = vunpack.i.h.bf16 %v2657_v21  ;;  %2299 = vmatprep.mubr.msk.bf16.mxu1 %vm821_vm3, %v776_v5  ;;  %v1019_v52 = vld [vmem:[%s3387_s6 + $0x1a0] sm:$0xff] }
 0x101   : > { %v614_v40 = vmul.f32 %v3412_v8, %v2758_v16  ;;  %1508 = vmatprep.subr.bf16.mxu1 %v3413_v15  ;;  %v2464_v7 = vunpack.i.l.bf16 %v2748_v44  ;;  %v729_v24 = vadd.f32 %v713_v17, %v629_v59  ;;  %v3415_v12 = vunpack.i.l.bf16 %v2667_v27  ;;  %v1020_v15 = vld [vmem:[%s3387_s6 + $0x1a8] sm:$0xff] }
 0x102   : > { %v615_v47 = vmul.f32 %v3414_v46, %v2758_v16  ;;  %v634_v53 = vadd.f32 %v2805_v60, %v2811_v3  ;;  %v750_v20 = vadd.f32 %v2793_v56, %v728_v35  ;;  %v3416_v21 = vunpack.i.h.bf16 %v2667_v27  ;;  %v1000_v27 = vld [vmem:[%s3387_s6 + $0x108] sm:$0xff]  ;;  %v1023_v35 = vld [vmem:[%s3387_s6 + $0x1c0] sm:$0xff] }
 0x103   : > { %v630_v14 = vadd.f32 %v614_v40, %v530_v2  ;;  %v714_v26 = vmul.f32 %v3415_v12, %v2770_v36  ;;  %v3417_v45 = vcombine.low %v2676_v30, %v2681_v31  ;;  %v635_v25 = vadd.f32 %v2808_v4, %v2814_v63  ;;  %v1004_v30 = vld [vmem:[%s3387_s6 + $0x128] sm:$0xff]  ;;  %v1027_v46 = vld [vmem:[%s3387_s6 + $0x1e0] sm:$0xff] }
 0x104   : > { %v631_v57 = vadd.f32 %v615_v47, %v531_v23  ;;  %v715_v16 = vmul.f32 %v3416_v21, %v2770_v36  ;;  %v777_v62 = vpack.c.bf16 %v765_v10, %v764_v43  ;;  %v751_v29 = vadd.f32 %v2793_v56, %v729_v24  ;;  %v1016_v23 = vld [vmem:[%s3387_s6 + $0x188] sm:$0xff] }
 0x105   : > { %1509 = vmatpush1.bf16.msra.mxu1 %v3417_v45  ;;  %v730_v13 = vadd.f32 %v714_v26, %v630_v14  ;;  %v3418_v60 = vcombine.high %v2686_v32, %v2691_v33  ;;  %v754_v31 = vadd.f32 %v2793_v56, %v2822_v34  ;;  %v755_v4 = vadd.f32 %v2793_v56, %v2824_v37  ;;  %v1024_v47 = vld [vmem:[%s3387_s6 + $0x1c8] sm:$0xff]  ;;  %v974_v45 = vld [vmem:[%s3387_s6 + $0x38] sm:$0xff] }
 0x106   : > { %v766_v3 = vmax.f32 %v750_v20, 0.0  ;;  %v731_v63 = vadd.f32 %v715_v16, %v631_v57  ;;  %v3419_v48 = vunpack.i.h.bf16 %v2748_v44  ;;  %v718_v50 = vmul.f32 %v2464_v7, %v2770_v36  ;;  %2300 = vmatmul.mubr.msk.bf16.gmra.mrb[4].mxu1 %vm821_vm3, %v777_v62  ;;  %v1028_v14 = vld [vmem:[%s3387_s6 + $0x1e8] sm:$0xff]  ;;  %v973_v20 = vld [vmem:[%s3387_s6 + $0x30] sm:$0xff]  ;;  %v970_v57 = vld [vmem:[%s3387_s6 + $0x18] sm:$0xff] }
 0x107   : > { %1510 = vmatprep.subr.bf16.mxu1 %v3418_v60  ;;  %v767_v18 = vmax.f32 %v751_v29, 0.0  ;;  %v752_v61 = vadd.f32 %v2793_v56, %v730_v13  ;;  %v3420_v34 = vcombine.low %v2686_v32, %v2691_v33  ;;  %v2188_v37 = vcombine.low %v2700_v38, %v2705_v39  ;;  %v1008_v32 = vld [vmem:[%s3387_s6 + $0x148] sm:$0xff]  ;;  %v3011_v29 = vld [vmem:[%s3386_s5] ss:$0 sm:$0xff] }
 0x108   : > { %v719_v51 = vmul.f32 %v3419_v48, %v2770_v36  ;;  %v753_v58 = vadd.f32 %v2793_v56, %v731_v63  ;;  %v2197_v49 = vcombine.high %v1000_v27, %v1004_v30  ;;  %v734_v1 = vadd.f32 %v718_v50, %v634_v53  ;;  %v1012_v33 = vld [vmem:[%s3387_s6 + $0x168] sm:$0xff]  ;;  %v969_v53 = vld [vmem:[%s3387_s6 + $0x10] sm:$0xff] }
 0x109   : > { %1511 = vmatpush1.bf16.msra.mxu1 %v3420_v34  ;;  %v778_v6 = vpack.c.bf16 %v767_v18, %v766_v3  ;;  %v768_v22 = vmax.f32 %v752_v61, 0.0  ;;  %v3421_v36 = vcombine.high %v2700_v38, %v2705_v39  ;;  %v770_v0 = vmax.f32 %v754_v31, 0.0  ;;  %v977_v50 = vld [vmem:[%s3387_s6 + $0x50] sm:$0xff]  ;;  %v978_v34 = vld [vmem:[%s3387_s6 + $0x58] sm:$0xff] }
 0x10a   : > { %v735_v44 = vadd.f32 %v719_v51, %v635_v25  ;;  %v771_v42 = vmax.f32 %v755_v4, 0.0  ;;  %v769_v41 = vmax.f32 %v753_v58, 0.0  ;;  %v2196_v17 = vcombine.low %v1000_v27, %v1004_v30  ;;  %v981_v58 = vld [vmem:[%s3387_s6 + $0x70] sm:$0xff] }
 0x10b   : > { %1512 = vmatprep.subr.bf16.mxu1 %v3421_v36  ;;  %2303 = vmatprep.mubr.msk.bf16.mxu1 %vm821_vm3, %v778_v6  ;;  %v756_v55 = vadd.f32 %v2793_v56, %v734_v1  ;;  %v2205_v9 = vcombine.high %v1008_v32, %v1012_v33  ;;  %v2204_v11 = vcombine.low %v1008_v32, %v1012_v33  ;;  %v3422_v59 = vmov 0   ;;  %v985_v6 = vld [vmem:[%s3387_s6 + $0x90] sm:$0xff]  ;;  %v986_v32 = vld [vmem:[%s3387_s6 + $0x98] sm:$0xff] }
 0x10c   : > { %v757_v38 = vadd.f32 %v2793_v56, %v735_v44  ;;  %v779_v39 = vpack.c.bf16 %v769_v41, %v768_v22  ;;  %v780_v54 = vpack.c.bf16 %v771_v42, %v770_v0  ;;  %v1015_v56 = vld [vmem:[%s3387_s6 + $0x180] sm:$0xff]  ;;  %v2212_v43 = vcombine.low %v1016_v23, %v1020_v15  ;;  %v989_v41 = vld [vmem:[%s3387_s6 + $0xb0] sm:$0xff]  ;;  %v990_v33 = vld [vmem:[%s3387_s6 + $0xb8] sm:$0xff] }
 0x10d   : > { %1513 = vmatpush1.bf16.msra.mxu1 %v2188_v37  ;;  %v772_v2 = vmax.f32 %v756_v55, 0.0  ;;  %v2210_v8 = vcombine.low %v1015_v56, %v1019_v52  ;;  %v2211_v40 = vcombine.high %v1015_v56, %v1019_v52  ;;  %v2213_v10 = vcombine.high %v1016_v23, %v1020_v15  ;;  %v982_v37 = vld [vmem:[%s3387_s6 + $0x78] sm:$0xff]  ;;  %v993_v52 = vld [vmem:[%s3387_s6 + $0xd0] sm:$0xff] }
 0x10e   : > { %1514 = vmatprep.subr.bf16.mxu1 %v2197_v49  ;;  %2304 = vmatmul.mubr.msk.bf16.gmra.mrb[8].mxu1 %vm821_vm3, %v779_v39  ;;  %v773_v19 = vmax.f32 %v757_v38, 0.0  ;;  %v2218_v7 = vcombine.low %v1023_v35, %v1027_v46  ;;  %v2219_v24 = vcombine.high %v1023_v35, %v1027_v46  ;;  %v2220_v12 = vcombine.low %v1024_v47, %v1028_v14  ;;  %v994_v15 = vld [vmem:[%s3387_s6 + $0xd8] sm:$0xff] }
 0x10f   : > { %2307 = vmatprep.mubr.msk.bf16.mxu1 %vm821_vm3, %v780_v54  ;;  %1405 = vmatprep.subr.bf16.mxu0 %v2211_v40  ;;  %v2221_v26 = vcombine.high %v1024_v47, %v1028_v14  ;;  %v2166_v21 = vcombine.low %v969_v53, %v973_v20  ;;  %v2167_v16 = vcombine.high %v969_v53, %v973_v20  ;;  %v997_v40 = vld [vmem:[%s3387_s6 + $0xf0] sm:$0xff] }
 0x110   : > { %v781_v5 = vpack.c.bf16 %v773_v19, %v772_v2  ;;  %1406 = vmatpush1.bf16.msra.mxu0 %v2210_v8  ;;  %v2168_v25 = vcombine.low %v970_v57, %v974_v45  ;;  %v2169_v62 = vcombine.high %v970_v57, %v974_v45  ;;  %v2175_v0 = vcombine.high %v977_v50, %v981_v58  ;;  %v1001_v53 = vld [vmem:[%s3387_s6 + $0x110] sm:$0xff]  ;;  %v1006_v45 = vld [vmem:[%s3387_s6 + $0x138] sm:$0xff] }
 0x111   : > { %1515 = vmatpush1.bf16.msra.mxu1 %v2196_v17  ;;  %1407 = vmatprep.subr.bf16.mxu0 %v2219_v24  ;;  %v2177_v42 = vcombine.high %v978_v34, %v982_v37  ;;  %v2176_v54 = vcombine.low %v978_v34, %v982_v37  ;;  %v2183_v2 = vcombine.high %v985_v6, %v989_v41 }
 0x112   : > { %1516 = vmatprep.subr.bf16.mxu1 %v2205_v9  ;;  %v2174_v9 = vcombine.low %v977_v50, %v981_v58  ;;  %v2185_v19 = vcombine.high %v986_v32, %v990_v33  ;;  %v2182_v47 = vcombine.low %v985_v6, %v989_v41  ;;  %v1013_v50 = vld [vmem:[%s3387_s6 + $0x170] sm:$0xff] }
 0x113   : > { %v1017_v41 = vld [vmem:[%s3387_s6 + $0x190] sm:$0xff] }
 0x114   : > { %1408 = vmatpush1.bf16.msra.mxu0 %v2218_v7  ;;  %v2184_v7 = vcombine.low %v986_v32, %v990_v33 }
 0x115   : > { %1517 = vmatpush1.bf16.msra.mxu1 %v2204_v11  ;;  %1619 = vmatprep.subr.bf16.mxu0 %v2167_v16  ;;  %v1002_v16 = vld [vmem:[%s3387_s6 + $0x118] sm:$0xff] }
 0x116   : > { %2308 = vmatmul.mubr.msk.bf16.gmra.mrb[12].mxu1 %vm821_vm3, %v781_v5  ;;  %1518 = vmatprep.subr.bf16.mxu1 %v2213_v10  ;;  %v2200_v6 = vcombine.low %v1002_v16, %v1006_v45 }
 0x117   : > { %1538 = vmatprep.mubr.bf16.mxu1 %v3422_v59 }
 0x119   : > { %1519 = vmatpush1.bf16.msra.mxu1 %v2212_v43  ;;  %v998_v43 = vld [vmem:[%s3387_s6 + $0xf8] sm:$0xff] }
 0x11a   : > { %1520 = vmatprep.subr.bf16.mxu1 %v2221_v26  ;;  %v2193_v26 = vcombine.high %v994_v15, %v998_v43 }
 0x11d   : > { %1521 = vmatpush1.bf16.msra.mxu1 %v2220_v12  ;;  %v2191_v12 = vcombine.high %v993_v52, %v997_v40 }
 0x11e   : > { %1732 = vmatprep.subr.bf16.mxu1 %v2169_v62 }
 0x1cc   : > { %v2297_v13 = vpop.f32.mrb[0].mxu1 }
 0x1cd   : > { %v889_v60 = vadd.f32 %v2297_v13, %v3011_v29  ;;  %v880_v27 = vpop.f32.mrb[1].mxu1 }
 0x1ce   : > { %v881_v30 = vadd.f32 %v3011_v29, %v880_v27  ;;  %v2298_v31 = vpop.f32.mrb[2].mxu1  ;;  %v2192_v27 = vcombine.low %v994_v15, %v998_v43  ;;  %v1026_v15 = vld [vmem:[%s3387_s6 + $0x1d8] sm:$0xff] }
 0x1cf   : > { %v892_v4 = vadd.f32 %v2298_v31, %v3011_v29  ;;  %v883_v3 = vpop.f32.mrb[3].mxu1  ;;  %v945_v48 = vmax.f32 %v889_v60, 0.0  ;;  %v2190_v60 = vcombine.low %v993_v52, %v997_v40  ;;  %v1030_v43 = vld [vmem:[%s3387_s6 + $0x1f8] sm:$0xff] }
 0x1d0   : > { %v884_v63 = vadd.f32 %v3011_v29, %v883_v3  ;;  %v943_v18 = vmax.f32 %v881_v30, 0.0  ;;  %v2201_v3 = vcombine.high %v1002_v16, %v1006_v45 }
 0x1d1   : > { %v946_v51 = vmax.f32 %v892_v4, 0.0 }
 0x1d2   : > { %v944_v61 = vmax.f32 %v884_v63, 0.0  ;;  %v1009_v63 = vld [vmem:[%s3387_s6 + $0x150] sm:$0xff] }
 0x1d3   : > { %v3029_v49 = vpack.c.bf16 %v946_v51, %v945_v48 }
 0x1d4   : > { %v3031_v1 = vpack.c.bf16 %v944_v61, %v943_v18  ;;  %v1010_v18 = vld [vmem:[%s3387_s6 + $0x158] sm:$0xff] }
 0x1d5   : > { %v1014_v61 = vld [vmem:[%s3387_s6 + $0x178] sm:$0xff] }
 0x1d6   : > { %1426 = vmatmul.mubr.bf16.vlgmr.msra.gmra.mrb[4].mxu0 %v3031_v1  ;;  %1539 = vmatmul.mubr.bf16.vlgmr.msra.gmra.mrb[16].mxu1 %v3031_v1 }
 0x1d7   : > { %1620 = vmatpush1.bf16.msra.mxu0 %v2166_v21  ;;  %1733 = vmatpush1.bf16.msra.mxu1 %v2168_v25  ;;  %v1005_v21 = vld [vmem:[%s3387_s6 + $0x130] sm:$0xff] }
 0x1d8   : > { %1435 = vmatprep.mubr.bf16.mxu0 %v3422_v59  ;;  %1548 = vmatprep.mubr.bf16.mxu1 %v3422_v59  ;;  %v2199_v4 = vcombine.high %v1001_v53, %v1005_v21 }
 0x1d9   : > { %v2301_v44 = vpop.f32.mrb[4].mxu1  ;;  %1621 = vmatprep.subr.bf16.mxu0 %v2175_v0  ;;  %1734 = vmatprep.subr.bf16.mxu1 %v2177_v42  ;;  %v2207_v0 = vcombine.high %v1009_v63, %v1013_v50  ;;  %v2209_v42 = vcombine.high %v1010_v18, %v1014_v61 }
 0x1da   : > { %v905_v22 = vadd.f32 %v2301_v44, %v3011_v29  ;;  %v896_v36 = vpop.f32.mrb[5].mxu1  ;;  %v2198_v44 = vcombine.low %v1001_v53, %v1005_v21  ;;  %v2224_v53 = vcombine.low %v1026_v15, %v1030_v43 }
 0x1db   : > { %v897_v17 = vadd.f32 %v3011_v29, %v896_v36  ;;  %v2302_v55 = vpop.f32.mrb[6].mxu1  ;;  %1622 = vmatpush1.bf16.msra.mxu0 %v2174_v9  ;;  %1735 = vmatpush1.bf16.msra.mxu1 %v2176_v54 }
 0x1dc   : > { %v908_v38 = vadd.f32 %v2302_v55, %v3011_v29  ;;  %v899_v39 = vpop.f32.mrb[7].mxu1  ;;  %v949_v5 = vmax.f32 %v905_v22, 0.0  ;;  %1623 = vmatprep.subr.bf16.mxu0 %v2183_v2  ;;  %1736 = vmatprep.subr.bf16.mxu1 %v2185_v19  ;;  %v1018_v55 = vld [vmem:[%s3387_s6 + $0x198] sm:$0xff]  ;;  %v2208_v2 = vcombine.low %v1010_v18, %v1014_v61 }
 0x1dd   : > { %v900_v11 = vadd.f32 %v3011_v29, %v899_v39  ;;  %v947_v23 = vmax.f32 %v897_v17, 0.0  ;;  %v1021_v17 = vld [vmem:[%s3387_s6 + $0x1b0] sm:$0xff] }
 0x1de   : > { %v950_v56 = vmax.f32 %v908_v38, 0.0  ;;  %1436 = vmatmul.mubr.bf16.gmra.mrb[8].mxu0 %v3029_v49  ;;  %1549 = vmatmul.mubr.bf16.gmra.mrb[20].mxu1 %v3029_v49  ;;  %v1022_v38 = vld [vmem:[%s3387_s6 + $0x1b8] sm:$0xff] }
 0x1df   : > { %v948_v8 = vmax.f32 %v900_v11, 0.0  ;;  %1445 = vmatprep.mubr.bf16.mxu0 %v3422_v59  ;;  %1558 = vmatprep.mubr.bf16.mxu1 %v3422_v59  ;;  %v2206_v11 = vcombine.low %v1009_v63, %v1013_v50  ;;  %v2217_v52 = vcombine.high %v1018_v55, %v1022_v38 }
 0x1e0   : > { %v3065_v10 = vpack.c.bf16 %v950_v56, %v949_v5  ;;  %1624 = vmatpush1.bf16.msra.mxu0 %v2182_v47  ;;  %1737 = vmatpush1.bf16.msra.mxu1 %v2184_v7  ;;  %v2215_v56 = vcombine.high %v1017_v41, %v1021_v17  ;;  %v2214_v7 = vcombine.low %v1017_v41, %v1021_v17 }
 0x1e1   : > { %v3067_v35 = vpack.c.bf16 %v948_v8, %v947_v23  ;;  %v2305_v46 = vpop.f32.mrb[8].mxu1  ;;  %1625 = vmatprep.subr.bf16.mxu0 %v2191_v12  ;;  %1738 = vmatprep.subr.bf16.mxu1 %v2193_v26  ;;  %v1025_v23 = vld [vmem:[%s3387_s6 + $0x1d0] sm:$0xff]  ;;  %v2225_v12 = vcombine.high %v1026_v15, %v1030_v43 }
 0x1e2   : > { %v921_v24 = vadd.f32 %v2305_v46, %v3011_v29  ;;  %v912_v14 = vpop.f32.mrb[9].mxu1 }
 0x1e3   : > { %v913_v20 = vadd.f32 %v3011_v29, %v912_v14  ;;  %v2306_v57 = vpop.f32.mrb[10].mxu1 }
 0x1e4   : > { %v924_v25 = vadd.f32 %v2306_v57, %v3011_v29  ;;  %v915_v62 = vpop.f32.mrb[11].mxu1  ;;  %v953_v30 = vmax.f32 %v921_v24, 0.0  ;;  %1626 = vmatpush1.bf16.msra.mxu0 %v2190_v60  ;;  %1739 = vmatpush1.bf16.msra.mxu1 %v2192_v27  ;;  %v2216_v24 = vcombine.low %v1018_v55, %v1022_v38  ;;  %v3425_v57 = vsub.s32 1, %v2669_v28 }
 0x1e5   : > { %v916_v13 = vadd.f32 %v3011_v29, %v915_v62  ;;  %v951_v48 = vmax.f32 %v913_v20, 0.0  ;;  %1627 = vmatprep.subr.bf16.mxu0 %v2199_v4  ;;  %1740 = vmatprep.subr.bf16.mxu1 %v2201_v3  ;;  %v3424_v20 = vsub.s32 2, %v2669_v28 }
 0x1e6   : > { %v954_v31 = vmax.f32 %v924_v25, 0.0  ;;  %1446 = vmatmul.mubr.bf16.gmra.mrb[12].mxu0 %v3067_v35  ;;  %1559 = vmatmul.mubr.bf16.gmra.mrb[24].mxu1 %v3067_v35 }
 0x1e7   : > { %v952_v51 = vmax.f32 %v916_v13, 0.0  ;;  %1455 = vmatprep.mubr.bf16.mxu0 %v3422_v59  ;;  %1568 = vmatprep.mubr.bf16.mxu1 %v3422_v59 }
 0x1e8   : > { %v3101_v58 = vpack.c.bf16 %v954_v31, %v953_v30  ;;  %1628 = vmatpush1.bf16.msra.mxu0 %v2198_v44  ;;  %1741 = vmatpush1.bf16.msra.mxu1 %v2200_v6 }
 0x1e9   : > { %v3103_v34 = vpack.c.bf16 %v952_v51, %v951_v48  ;;  %v2309_v37 = vpop.f32.mrb[12].mxu1  ;;  %1629 = vmatprep.subr.bf16.mxu0 %v2207_v0  ;;  %1742 = vmatprep.subr.bf16.mxu1 %v2209_v42 }
 0x1ea   : > { %v937_v22 = vadd.f32 %v2309_v37, %v3011_v29  ;;  %v928_v36 = vpop.f32.mrb[13].mxu1 }
 0x1eb   : > { %v929_v32 = vadd.f32 %v3011_v29, %v928_v36  ;;  %v2310_v33 = vpop.f32.mrb[14].mxu1 }
 0x1ec   : > { %v940_v39 = vadd.f32 %v2310_v33, %v3011_v29  ;;  %v931_v9 = vpop.f32.mrb[15].mxu1  ;;  %v957_v19 = vmax.f32 %v937_v22, 0.0  ;;  %1630 = vmatpush1.bf16.msra.mxu0 %v2206_v11  ;;  %1743 = vmatpush1.bf16.msra.mxu1 %v2208_v2 }
 0x1ed   : > { %v932_v54 = vadd.f32 %v3011_v29, %v931_v9  ;;  %v955_v8 = vmax.f32 %v929_v32, 0.0  ;;  %v1029_v29 = vld [vmem:[%s3387_s6 + $0x1f0] sm:$0xff]  ;;  %1631 = vmatprep.subr.bf16.mxu0 %v2215_v56  ;;  %1744 = vmatprep.subr.bf16.mxu1 %v2217_v52 }
 0x1ee   : > { %v958_v5 = vmax.f32 %v940_v39, 0.0  ;;  %v2223_v14 = vcombine.high %v1025_v23, %v1029_v29  ;;  %1456 = vmatmul.mubr.bf16.gmra.mrb[16].mxu0 %v3065_v10  ;;  %1569 = vmatmul.mubr.bf16.gmra.mrb[28].mxu1 %v3065_v10  ;;  %v2222_v26 = vcombine.low %v1025_v23, %v1029_v29 }
 0x1ef   : > { %v956_v40 = vmax.f32 %v932_v54, 0.0  ;;  %1465 = vmatprep.mubr.bf16.mxu0 %v3422_v59  ;;  %1578 = vmatprep.mubr.bf16.mxu1 %v3422_v59 }
 0x1f0   : > { %v3137_v46 = vpack.c.bf16 %v958_v5, %v957_v19  ;;  %1632 = vmatpush1.bf16.msra.mxu0 %v2214_v7  ;;  %1745 = vmatpush1.bf16.msra.mxu1 %v2216_v24 }
 0x1f1   : > { %v965_v47 = vpack.c.bf16 %v956_v40, %v955_v8  ;;  %1633 = vmatprep.subr.bf16.mxu0 %v2223_v14  ;;  %1746 = vmatprep.subr.bf16.mxu1 %v2225_v12 }
 0x1f4   : > { %1634 = vmatpush1.bf16.msra.mxu0 %v2222_v26  ;;  %1747 = vmatpush1.bf16.msra.mxu1 %v2224_v53 }
 0x1f6   : > { %1466 = vmatmul.mubr.bf16.gmra.mrb[20].mxu0 %v3103_v34  ;;  %1579 = vmatmul.mubr.bf16.gmra.mrb[32].mxu1 %v3103_v34 }
 0x1f7   : > { %1475 = vmatprep.mubr.bf16.mxu0 %v3422_v59  ;;  %1588 = vmatprep.mubr.bf16.mxu1 %v3422_v59 }
 0x1fe   : > { %1476 = vmatmul.mubr.bf16.gmra.mrb[24].mxu0 %v3101_v58  ;;  %1589 = vmatmul.mubr.bf16.gmra.mrb[36].mxu1 %v3101_v58 }
 0x1ff   : > { %1485 = vmatprep.mubr.bf16.mxu0 %v3422_v59  ;;  %1598 = vmatprep.mubr.bf16.mxu1 %v3422_v59 }
 0x206   : > { %1486 = vmatmul.mubr.bf16.gmra.mrb[28].mxu0 %v965_v47  ;;  %1599 = vmatmul.mubr.bf16.gmra.mrb[40].mxu1 %v965_v47 }
 0x207   : > { %1495 = vmatprep.mubr.bf16.mxu0 %v3422_v59  ;;  %1608 = vmatprep.mubr.bf16.mxu1 %v3422_v59 }
 0x20e   : > { %1496 = vmatmul.mubr.bf16.gmra.mrb[32].mxu0 %v3137_v46  ;;  %1609 = vmatmul.mubr.bf16.gmra.mrb[44].mxu1 %v3137_v46 }
 0x20f   : > { %1651 = vmatprep.mubr.bf16.mxu0 %v3422_v59  ;;  %1764 = vmatprep.mubr.bf16.mxu1 %v3422_v59 }
 0x216   : > { %1652 = vmatmul.mubr.bf16.vlgmr.msra.gmra.mrb[36].mxu0 %v3031_v1  ;;  %1765 = vmatmul.mubr.bf16.vlgmr.msra.gmra.mrb[48].mxu1 %v3031_v1  ;;  %v1047_v1 = vsub.s32 3, %v2669_v28 }
 0x217   : > { %1661 = vmatprep.mubr.bf16.mxu0 %v3422_v59  ;;  %1774 = vmatprep.mubr.bf16.mxu1 %v3422_v59 }
 0x21e   : > { %1662 = vmatmul.mubr.bf16.gmra.mrb[40].mxu0 %v3029_v49  ;;  %1775 = vmatmul.mubr.bf16.gmra.mrb[52].mxu1 %v3029_v49  ;;  %v3188_v49 = vld [vmem:[%s3388_s7] sm:$0xff] }
 0x21f   : > { %1671 = vmatprep.mubr.bf16.mxu0 %v3422_v59  ;;  %1784 = vmatprep.mubr.bf16.mxu1 %v3422_v59  ;;  %v3204_v21 = vrot.slane %v3188_v49, %v3425_v57  ;;  %v3207_v25 = vrot.slane %v3188_v49, %v1047_v1 }
 0x226   : > { %1672 = vmatmul.mubr.bf16.gmra.mrb[44].mxu0 %v3067_v35  ;;  %1785 = vmatmul.mubr.bf16.gmra.mrb[56].mxu1 %v3067_v35 }
 0x227   : > { %1681 = vmatprep.mubr.bf16.mxu0 %v3422_v59  ;;  %1794 = vmatprep.mubr.bf16.mxu1 %v3422_v59 }
 0x22e   : > { %1682 = vmatmul.mubr.bf16.gmra.mrb[48].mxu0 %v3065_v10  ;;  %1795 = vmatmul.mubr.bf16.gmra.mrb[60].mxu1 %v3065_v10  ;;  %v3423_v10 = vsub.s32 0, %v2669_v28 }
 0x22f   : > { %1691 = vmatprep.mubr.bf16.mxu0 %v3422_v59  ;;  %1804 = vmatprep.mubr.bf16.mxu1 %v3422_v59 }
 0x230   : > { %v3194_v35 = vrot.slane %v3188_v49, %v3423_v10 }
 0x236   : > { %1692 = vmatmul.mubr.bf16.gmra.mrb[52].mxu0 %v3103_v34  ;;  %1805 = vmatmul.mubr.bf16.gmra.mrb[64].mxu1 %v3103_v34 }
 0x237   : > { %1701 = vmatprep.mubr.bf16.mxu0 %v3422_v59  ;;  %1814 = vmatprep.mubr.bf16.mxu1 %v3422_v59 }
 0x23e   : > { %1702 = vmatmul.mubr.bf16.gmra.mrb[56].mxu0 %v3101_v58  ;;  %1815 = vmatmul.mubr.bf16.gmra.mrb[68].mxu1 %v3101_v58 }
 0x23f   : > { %1711 = vmatprep.mubr.bf16.mxu0 %v3422_v59  ;;  %1824 = vmatprep.mubr.bf16.mxu1 %v3422_v59 }
 0x246   : > { %1712 = vmatmul.mubr.bf16.gmra.mrb[60].mxu0 %v965_v47  ;;  %1825 = vmatmul.mubr.bf16.gmra.mrb[72].mxu1 %v965_v47 }
 0x247   : > { %1721 = vmatprep.mubr.bf16.mxu0 %v3422_v59  ;;  %1834 = vmatprep.mubr.bf16.mxu1 %v3422_v59  ;;  %v3199_v59 = vrot.slane %v3188_v49, %v3424_v20 }
 0x24e   : > { %1722 = vmatmul.mubr.bf16.gmra.mrb[64].mxu0 %v3137_v46  ;;  %1835 = vmatmul.mubr.bf16.gmra.mrb[76].mxu1 %v3137_v46 }
 0x2a9   : > { %v1427_v16 = vpop.f32.mrb[4].mxu0  ;;  %v1540_v45 = vpop.f32.mrb[16].mxu1 }
 0x2aa   : > { %v1429_v62 = vpop.f32.mrb[5].mxu0  ;;  %v1542_v13 = vpop.f32.mrb[17].mxu1  ;;  %v1428_v30 = vadd.f32 %v1427_v16, %v3194_v35  ;;  %v1541_v31 = vadd.f32 %v1540_v45, %v3199_v59 }
 0x2ab   : > { %v1431_v60 = vpop.f32.mrb[6].mxu0  ;;  %v1544_v27 = vpop.f32.mrb[18].mxu1  ;;  %v1430_v51 = vadd.f32 %v1429_v62, %v3204_v21  ;;  %v1543_v50 = vadd.f32 %v1542_v13, %v3207_v25 }
 0x2ac   : > { %v1432_v4 = vadd.f32 %v1431_v60, %v3194_v35  ;;  %v1545_v3 = vadd.f32 %v1544_v27, %v3199_v59  ;;  %v1433_v63 = vpop.f32.mrb[7].mxu0  ;;  %v1546_v48 = vpop.f32.mrb[19].mxu1 }
 0x2ad   : > { %v1434_v18 = vadd.f32 %v1433_v63, %v3204_v21  ;;  %v1547_v61 = vadd.f32 %v1546_v48, %v3207_v25 }
 0x2ae   : > { %v1845_v58 = vmax.f32 %v1428_v30, %v1432_v4  ;;  %v1887_v34 = vmax.f32 %v1541_v31, %v1545_v3 }
 0x2af   : > { %v1866_v37 = vmax.f32 %v1430_v51, %v1434_v18  ;;  %v1908_v44 = vmax.f32 %v1543_v50, %v1547_v61 }
 0x2b1   : > { %v1437_v6 = vpop.f32.mrb[8].mxu0  ;;  %v1550_v22 = vpop.f32.mrb[20].mxu1 }
 0x2b2   : > { %v1438_v36 = vadd.f32 %v1437_v6, %v3194_v35  ;;  %v1551_v0 = vadd.f32 %v1550_v22, %v3199_v59  ;;  %v1439_v42 = vpop.f32.mrb[9].mxu0  ;;  %v1552_v41 = vpop.f32.mrb[21].mxu1 }
 0x2b3   : > { %v1440_v32 = vadd.f32 %v1439_v42, %v3204_v21  ;;  %v1553_v33 = vadd.f32 %v1552_v41, %v3207_v25  ;;  %v1441_v17 = vpop.f32.mrb[10].mxu0  ;;  %v1554_v55 = vpop.f32.mrb[22].mxu1 }
 0x2b4   : > { %v1846_v38 = vmax.f32 %v1845_v58, %v1438_v36  ;;  %v1888_v39 = vmax.f32 %v1887_v34, %v1551_v0  ;;  %v1442_v9 = vadd.f32 %v1441_v17, %v3194_v35  ;;  %v1555_v54 = vadd.f32 %v1554_v55, %v3199_v59  ;;  %v1443_v11 = vpop.f32.mrb[11].mxu0  ;;  %v1556_v2 = vpop.f32.mrb[23].mxu1 }
 0x2b5   : > { %v1867_v19 = vmax.f32 %v1866_v37, %v1440_v32  ;;  %v1909_v5 = vmax.f32 %v1908_v44, %v1553_v33  ;;  %v1444_v56 = vadd.f32 %v1443_v11, %v3204_v21  ;;  %v1557_v52 = vadd.f32 %v1556_v2, %v3207_v25 }
 0x2b6   : > { %v1847_v23 = vmax.f32 %v1846_v38, %v1442_v9  ;;  %v1889_v8 = vmax.f32 %v1888_v39, %v1555_v54 }
 0x2b7   : > { %v1868_v40 = vmax.f32 %v1867_v19, %v1444_v56  ;;  %v1910_v29 = vmax.f32 %v1909_v5, %v1557_v52 }
 0x2b9   : > { %v1447_v15 = vpop.f32.mrb[12].mxu0  ;;  %v1560_v43 = vpop.f32.mrb[24].mxu1 }
 0x2ba   : > { %v1448_v46 = vadd.f32 %v1447_v15, %v3194_v35  ;;  %v1561_v47 = vadd.f32 %v1560_v43, %v3199_v59  ;;  %v1449_v7 = vpop.f32.mrb[13].mxu0  ;;  %v1562_v24 = vpop.f32.mrb[25].mxu1 }
 0x2bb   : > { %v1450_v14 = vadd.f32 %v1449_v7, %v3204_v21  ;;  %v1563_v12 = vadd.f32 %v1562_v24, %v3207_v25  ;;  %v1451_v26 = vpop.f32.mrb[14].mxu0  ;;  %v1564_v53 = vpop.f32.mrb[26].mxu1 }
 0x2bc   : > { %v1848_v1 = vmax.f32 %v1847_v23, %v1448_v46  ;;  %v1890_v10 = vmax.f32 %v1889_v8, %v1561_v47  ;;  %v1452_v20 = vadd.f32 %v1451_v26, %v3194_v35  ;;  %v1565_v57 = vadd.f32 %v1564_v53, %v3199_v59  ;;  %v1453_v16 = vpop.f32.mrb[15].mxu0  ;;  %v1566_v45 = vpop.f32.mrb[27].mxu1 }
 0x2bd   : > { %v1869_v62 = vmax.f32 %v1868_v40, %v1450_v14  ;;  %v1911_v13 = vmax.f32 %v1910_v29, %v1563_v12  ;;  %v1454_v60 = vadd.f32 %v1453_v16, %v3204_v21  ;;  %v1567_v27 = vadd.f32 %v1566_v45, %v3207_v25 }
 0x2be   : > { %v1849_v30 = vmax.f32 %v1848_v1, %v1452_v20  ;;  %v1891_v31 = vmax.f32 %v1890_v10, %v1565_v57 }
 0x2bf   : > { %v1870_v4 = vmax.f32 %v1869_v62, %v1454_v60  ;;  %v1912_v3 = vmax.f32 %v1911_v13, %v1567_v27 }
 0x2c1   : > { %v1457_v63 = vpop.f32.mrb[16].mxu0  ;;  %v1570_v48 = vpop.f32.mrb[28].mxu1 }
 0x2c2   : > { %v1458_v51 = vadd.f32 %v1457_v63, %v3194_v35  ;;  %v1571_v50 = vadd.f32 %v1570_v48, %v3199_v59  ;;  %v1459_v18 = vpop.f32.mrb[17].mxu0  ;;  %v1572_v61 = vpop.f32.mrb[29].mxu1 }
 0x2c3   : > { %v1460_v58 = vadd.f32 %v1459_v18, %v3204_v21  ;;  %v1573_v34 = vadd.f32 %v1572_v61, %v3207_v25  ;;  %v1461_v37 = vpop.f32.mrb[18].mxu0  ;;  %v1574_v44 = vpop.f32.mrb[30].mxu1 }
 0x2c4   : > { %v1850_v6 = vmax.f32 %v1849_v30, %v1458_v51  ;;  %v1892_v22 = vmax.f32 %v1891_v31, %v1571_v50  ;;  %v1462_v36 = vadd.f32 %v1461_v37, %v3194_v35  ;;  %v1575_v0 = vadd.f32 %v1574_v44, %v3199_v59  ;;  %v1463_v42 = vpop.f32.mrb[19].mxu0  ;;  %v1576_v41 = vpop.f32.mrb[31].mxu1 }
 0x2c5   : > { %v1871_v32 = vmax.f32 %v1870_v4, %v1460_v58  ;;  %v1913_v33 = vmax.f32 %v1912_v3, %v1573_v34  ;;  %v1464_v17 = vadd.f32 %v1463_v42, %v3204_v21  ;;  %v1577_v55 = vadd.f32 %v1576_v41, %v3207_v25 }
 0x2c6   : > { %v1851_v38 = vmax.f32 %v1850_v6, %v1462_v36  ;;  %v1893_v39 = vmax.f32 %v1892_v22, %v1575_v0 }
 0x2c7   : > { %v1872_v9 = vmax.f32 %v1871_v32, %v1464_v17  ;;  %v1914_v54 = vmax.f32 %v1913_v33, %v1577_v55 }
 0x2c9   : > { %v1467_v11 = vpop.f32.mrb[20].mxu0  ;;  %v1580_v2 = vpop.f32.mrb[32].mxu1 }
 0x2ca   : > { %v1468_v19 = vadd.f32 %v1467_v11, %v3194_v35  ;;  %v1581_v5 = vadd.f32 %v1580_v2, %v3199_v59  ;;  %v1469_v56 = vpop.f32.mrb[21].mxu0  ;;  %v1582_v52 = vpop.f32.mrb[33].mxu1 }
 0x2cb   : > { %v1470_v23 = vadd.f32 %v1469_v56, %v3204_v21  ;;  %v1583_v8 = vadd.f32 %v1582_v52, %v3207_v25  ;;  %v1471_v40 = vpop.f32.mrb[22].mxu0  ;;  %v1584_v29 = vpop.f32.mrb[34].mxu1 }
 0x2cc   : > { %v1852_v15 = vmax.f32 %v1851_v38, %v1468_v19  ;;  %v1894_v43 = vmax.f32 %v1893_v39, %v1581_v5  ;;  %v1472_v46 = vadd.f32 %v1471_v40, %v3194_v35  ;;  %v1585_v47 = vadd.f32 %v1584_v29, %v3199_v59  ;;  %v1473_v7 = vpop.f32.mrb[23].mxu0  ;;  %v1586_v24 = vpop.f32.mrb[35].mxu1 }
 0x2cd   : > { %v1873_v14 = vmax.f32 %v1872_v9, %v1470_v23  ;;  %v1915_v12 = vmax.f32 %v1914_v54, %v1583_v8  ;;  %v1474_v26 = vadd.f32 %v1473_v7, %v3204_v21  ;;  %v1587_v53 = vadd.f32 %v1586_v24, %v3207_v25 }
 0x2ce   : > { %v1853_v1 = vmax.f32 %v1852_v15, %v1472_v46  ;;  %v1895_v10 = vmax.f32 %v1894_v43, %v1585_v47 }
 0x2cf   : > { %v1874_v20 = vmax.f32 %v1873_v14, %v1474_v26  ;;  %v1916_v57 = vmax.f32 %v1915_v12, %v1587_v53  ;;  %v2483_v14 = vmov 1966171168  }
 0x2d0   : > { %v3265_v12 = vunpack.c.l.s4 %v2483_v14 }
 0x2d1   : > { %v1477_v16 = vpop.f32.mrb[24].mxu0  ;;  %v1590_v45 = vpop.f32.mrb[36].mxu1 }
 0x2d2   : > { %v1478_v62 = vadd.f32 %v1477_v16, %v3194_v35  ;;  %v1591_v13 = vadd.f32 %v1590_v45, %v3199_v59  ;;  %v1479_v60 = vpop.f32.mrb[25].mxu0  ;;  %v1592_v27 = vpop.f32.mrb[37].mxu1 }
 0x2d3   : > { %v1480_v30 = vadd.f32 %v1479_v60, %v3204_v21  ;;  %v1593_v31 = vadd.f32 %v1592_v27, %v3207_v25  ;;  %v1481_v4 = vpop.f32.mrb[26].mxu0  ;;  %v1594_v3 = vpop.f32.mrb[38].mxu1  ;;  %v1055_v60 = vsub.s32 5, %v2669_v28  ;;  %v1063_v27 = vsub.s32 7, %v2669_v28 }
 0x2d4   : > { %v1854_v63 = vmax.f32 %v1853_v1, %v1478_v62  ;;  %v1896_v48 = vmax.f32 %v1895_v10, %v1591_v13  ;;  %v1482_v51 = vadd.f32 %v1481_v4, %v3194_v35  ;;  %v1595_v50 = vadd.f32 %v1594_v3, %v3199_v59  ;;  %v1483_v18 = vpop.f32.mrb[27].mxu0  ;;  %v1596_v61 = vpop.f32.mrb[39].mxu1 }
 0x2d5   : > { %v1875_v58 = vmax.f32 %v1874_v20, %v1480_v30  ;;  %v1917_v34 = vmax.f32 %v1916_v57, %v1593_v31  ;;  %v1484_v37 = vadd.f32 %v1483_v18, %v3204_v21  ;;  %v1597_v44 = vadd.f32 %v1596_v61, %v3207_v25 }
 0x2d6   : > { %v1855_v6 = vmax.f32 %v1854_v63, %v1482_v51  ;;  %v1897_v22 = vmax.f32 %v1896_v48, %v1595_v50  ;;  %v1051_v20 = vsub.s32 4, %v2669_v28  ;;  %v1059_v57 = vsub.s32 6, %v2669_v28 }
 0x2d7   : > { %v1876_v36 = vmax.f32 %v1875_v58, %v1484_v37  ;;  %v1918_v0 = vmax.f32 %v1917_v34, %v1597_v44 }
 0x2d8   : > { %v3280_v37 = vrot.slane %v3188_v49, %v1051_v20  ;;  %v3283_v44 = vrot.slane %v3188_v49, %v1059_v57 }
 0x2d9   : > { %v1487_v42 = vpop.f32.mrb[28].mxu0  ;;  %v1600_v41 = vpop.f32.mrb[40].mxu1 }
 0x2da   : > { %v1488_v32 = vadd.f32 %v1487_v42, %v3194_v35  ;;  %v1601_v33 = vadd.f32 %v1600_v41, %v3199_v59  ;;  %v1489_v17 = vpop.f32.mrb[29].mxu0  ;;  %v1602_v55 = vpop.f32.mrb[41].mxu1 }
 0x2db   : > { %v1490_v38 = vadd.f32 %v1489_v17, %v3204_v21  ;;  %v1603_v39 = vadd.f32 %v1602_v55, %v3207_v25  ;;  %v1491_v9 = vpop.f32.mrb[30].mxu0  ;;  %v1604_v54 = vpop.f32.mrb[42].mxu1 }
 0x2dc   : > { %v1856_v11 = vmax.f32 %v1855_v6, %v1488_v32  ;;  %v1898_v2 = vmax.f32 %v1897_v22, %v1601_v33  ;;  %v1492_v19 = vadd.f32 %v1491_v9, %v3194_v35  ;;  %v1605_v5 = vadd.f32 %v1604_v54, %v3199_v59  ;;  %v1493_v56 = vpop.f32.mrb[31].mxu0  ;;  %v1606_v52 = vpop.f32.mrb[43].mxu1 }
 0x2dd   : > { %v1877_v23 = vmax.f32 %v1876_v36, %v1490_v38  ;;  %v1919_v8 = vmax.f32 %v1918_v0, %v1603_v39  ;;  %v1494_v40 = vadd.f32 %v1493_v56, %v3204_v21  ;;  %v1607_v29 = vadd.f32 %v1606_v52, %v3207_v25 }
 0x2de   : > { %v1857_v15 = vmax.f32 %v1856_v11, %v1492_v19  ;;  %v1899_v43 = vmax.f32 %v1898_v2, %v1605_v5  ;;  %v3289_v22 = vrot.slane %v3188_v49, %v1063_v27 }
 0x2df   : > { %v1878_v46 = vmax.f32 %v1877_v23, %v1494_v40  ;;  %v1920_v47 = vmax.f32 %v1919_v8, %v1607_v29 }
 0x2e1   : > { %v1497_v7 = vpop.f32.mrb[32].mxu0  ;;  %v1610_v24 = vpop.f32.mrb[44].mxu1 }
 0x2e2   : > { %v1498_v26 = vadd.f32 %v1497_v7, %v3194_v35  ;;  %v1611_v53 = vadd.f32 %v1610_v24, %v3199_v59  ;;  %v1499_v1 = vpop.f32.mrb[33].mxu0  ;;  %v1612_v10 = vpop.f32.mrb[45].mxu1 }
 0x2e3   : > { %v1500_v16 = vadd.f32 %v1499_v1, %v3204_v21  ;;  %v1613_v45 = vadd.f32 %v1612_v10, %v3207_v25  ;;  %v1501_v62 = vpop.f32.mrb[34].mxu0  ;;  %v1614_v13 = vpop.f32.mrb[46].mxu1 }
 0x2e4   : > { %v1858_v30 = vmax.f32 %v1857_v15, %v1498_v26  ;;  %v1900_v31 = vmax.f32 %v1899_v43, %v1611_v53  ;;  %v1502_v4 = vadd.f32 %v1501_v62, %v3194_v35  ;;  %v1615_v3 = vadd.f32 %v1614_v13, %v3199_v59  ;;  %v1503_v63 = vpop.f32.mrb[35].mxu0  ;;  %v1616_v48 = vpop.f32.mrb[47].mxu1 }
 0x2e5   : > { %v1879_v51 = vmax.f32 %v1878_v46, %v1500_v16  ;;  %v1921_v50 = vmax.f32 %v1920_v47, %v1613_v45  ;;  %v1504_v18 = vadd.f32 %v1503_v63, %v3204_v21  ;;  %v1617_v61 = vadd.f32 %v1616_v48, %v3207_v25 }
 0x2e6   : > { %v1859_v58 = vmax.f32 %v1858_v30, %v1502_v4  ;;  %v1901_v34 = vmax.f32 %v1900_v31, %v1615_v3  ;;  %v3286_v59 = vrot.slane %v3188_v49, %v1055_v60  ;;  %v2027_v25 = vunpack.c.0.s8 %v3265_v12 }
 0x2e7   : > { %v1880_v6 = vmax.f32 %v1879_v51, %v1504_v18  ;;  %v1922_v35 = vmax.f32 %v1921_v50, %v1617_v61 }
 0x2e8   : > { %v1860_v36 = vrot.slane %v1859_v58, 4  ;;  %v1902_v21 = vrot.slane %v1901_v34, 4  ;;  %v3301_v45 = vsub.s32 %v2027_v25, %v2669_v28 }
 0x2e9   : > { %v1881_v0 = vrot.slane %v1880_v6, 4  ;;  %v1923_v42 = vrot.slane %v1922_v35, 4  ;;  %v1653_v41 = vpop.f32.mrb[36].mxu0  ;;  %v1766_v32 = vpop.f32.mrb[48].mxu1 }
 0x2ea   : > { %v1861_v33 = vmax.f32 %v1859_v58, %v1860_v36  ;;  %v1903_v17 = vmax.f32 %v1901_v34, %v1902_v21  ;;  %v1654_v55 = vadd.f32 %v1653_v41, %v3280_v37  ;;  %v1767_v38 = vadd.f32 %v1766_v32, %v3283_v44  ;;  %v1655_v39 = vpop.f32.mrb[37].mxu0  ;;  %v1768_v9 = vpop.f32.mrb[49].mxu1 }
 0x2eb   : > { %v1882_v54 = vmax.f32 %v1880_v6, %v1881_v0  ;;  %v1924_v11 = vmax.f32 %v1922_v35, %v1923_v42  ;;  %v1656_v49 = vadd.f32 %v1655_v39, %v3286_v59  ;;  %v1769_v2 = vadd.f32 %v1768_v9, %v3289_v22  ;;  %v1657_v19 = vpop.f32.mrb[38].mxu0  ;;  %v1770_v5 = vpop.f32.mrb[50].mxu1 }
 0x2ec   : > { %v1862_v56 = vrot.slane %v1861_v33, 2  ;;  %v1904_v52 = vrot.slane %v1903_v17, 2  ;;  %v1658_v23 = vadd.f32 %v1657_v19, %v3280_v37  ;;  %v1771_v8 = vadd.f32 %v1770_v5, %v3283_v44  ;;  %v1659_v40 = vpop.f32.mrb[39].mxu0  ;;  %v1772_v29 = vpop.f32.mrb[51].mxu1 }
 0x2ed   : > { %v1883_v15 = vrot.slane %v1882_v54, 2  ;;  %v1925_v43 = vrot.slane %v1924_v11, 2  ;;  %v1660_v46 = vadd.f32 %v1659_v40, %v3286_v59  ;;  %v1773_v47 = vadd.f32 %v1772_v29, %v3289_v22 }
 0x2ee   : > { %v1863_v7 = vmax.f32 %v1861_v33, %v1862_v56  ;;  %v1905_v24 = vmax.f32 %v1903_v17, %v1904_v52  ;;  %v1929_v14 = vmax.f32 %v1654_v55, %v1658_v23  ;;  %v1971_v12 = vmax.f32 %v1767_v38, %v1771_v8 }
 0x2ef   : > { %v1884_v26 = vmax.f32 %v1882_v54, %v1883_v15  ;;  %v1926_v53 = vmax.f32 %v1924_v11, %v1925_v43  ;;  %v1950_v1 = vmax.f32 %v1656_v49, %v1660_v46  ;;  %v1992_v10 = vmax.f32 %v1769_v2, %v1773_v47 }
 0x2f0   : > { %v1864_v20 = vrot.slane %v1863_v7, 1  ;;  %v1906_v57 = vrot.slane %v1905_v24, 1 }
 0x2f1   : > { %v1885_v16 = vrot.slane %v1884_v26, 1  ;;  %v1927_v62 = vrot.slane %v1926_v53, 1  ;;  %v1663_v13 = vpop.f32.mrb[40].mxu0  ;;  %v1776_v60 = vpop.f32.mrb[52].mxu1 }
 0x2f2   : > { %v1865_v27 = vmax.f32 %v1863_v7, %v1864_v20  ;;  %v1907_v30 = vmax.f32 %v1905_v24, %v1906_v57  ;;  %v1664_v31 = vadd.f32 %v1663_v13, %v3280_v37  ;;  %v1777_v4 = vadd.f32 %v1776_v60, %v3283_v44  ;;  %v1665_v3 = vpop.f32.mrb[41].mxu0  ;;  %v1778_v63 = vpop.f32.mrb[53].mxu1 }
 0x2f3   : > { %v1886_v48 = vmax.f32 %v1884_v26, %v1885_v16  ;;  %v1928_v51 = vmax.f32 %v1926_v53, %v1927_v62  ;;  %v1666_v50 = vadd.f32 %v1665_v3, %v3286_v59  ;;  %v1779_v18 = vadd.f32 %v1778_v63, %v3289_v22  ;;  %v1667_v61 = vpop.f32.mrb[42].mxu0  ;;  %v1780_v28 = vpop.f32.mrb[54].mxu1 }
 0x2f4   : > { %v1930_v58 = vmax.f32 %v1929_v14, %v1664_v31  ;;  %v1972_v34 = vmax.f32 %v1971_v12, %v1777_v4  ;;  %v1668_v6 = vadd.f32 %v1667_v61, %v3280_v37  ;;  %v1781_v35 = vadd.f32 %v1780_v28, %v3283_v44  ;;  %v1669_v36 = vpop.f32.mrb[43].mxu0  ;;  %v1782_v21 = vpop.f32.mrb[55].mxu1 }
 0x2f5   : > { %v2021_v0 = vcombine.low %v1865_v27, %v1886_v48  ;;  %v2022_v25 = vcombine.low %v1907_v30, %v1928_v51  ;;  %v1951_v42 = vmax.f32 %v1950_v1, %v1666_v50  ;;  %v1993_v41 = vmax.f32 %v1992_v10, %v1779_v18 }
 0x2f6   : > { %v1931_v32 = vmax.f32 %v1930_v58, %v1668_v6  ;;  %v1973_v33 = vmax.f32 %v1972_v34, %v1781_v35  ;;  %v1670_v17 = vadd.f32 %v1669_v36, %v3286_v59  ;;  %v1783_v55 = vadd.f32 %v1782_v21, %v3289_v22 }
 0x2f7   : > { %v3312_v38 = vrot.slane %v2021_v0, %v3301_v45  ;;  %v3315_v39 = vrot.slane %v2022_v25, %v3301_v45 }
 0x2f8   : > { %v1952_v9 = vmax.f32 %v1951_v42, %v1670_v17  ;;  %v1994_v54 = vmax.f32 %v1993_v41, %v1783_v55 }
 0x2f9   : > { %v2053_v11 = vcombine.low %v3312_v38, %v3315_v39  ;;  %v1673_v49 = vpop.f32.mrb[44].mxu0  ;;  %v1786_v2 = vpop.f32.mrb[56].mxu1 }
 0x2fa   : > { %v1674_v19 = vadd.f32 %v1673_v49, %v3280_v37  ;;  %v1787_v5 = vadd.f32 %v1786_v2, %v3283_v44  ;;  %v1675_v56 = vpop.f32.mrb[45].mxu0  ;;  %v1788_v52 = vpop.f32.mrb[57].mxu1 }
 0x2fb   : > { %v1676_v23 = vadd.f32 %v1675_v56, %v3286_v59  ;;  %v1789_v8 = vadd.f32 %v1788_v52, %v3289_v22  ;;  %v1677_v40 = vpop.f32.mrb[46].mxu0  ;;  %v1790_v29 = vpop.f32.mrb[58].mxu1 }
 0x2fc   : > { %v1932_v15 = vmax.f32 %v1931_v32, %v1674_v19  ;;  %v1974_v43 = vmax.f32 %v1973_v33, %v1787_v5  ;;  %v1678_v46 = vadd.f32 %v1677_v40, %v3280_v37  ;;  %v1791_v47 = vadd.f32 %v1790_v29, %v3283_v44  ;;  %v1679_v7 = vpop.f32.mrb[47].mxu0  ;;  %v1792_v24 = vpop.f32.mrb[59].mxu1 }
 0x2fd   : > { %v1953_v14 = vmax.f32 %v1952_v9, %v1676_v23  ;;  %v1995_v12 = vmax.f32 %v1994_v54, %v1789_v8  ;;  %v1680_v26 = vadd.f32 %v1679_v7, %v3286_v59  ;;  %v1793_v53 = vadd.f32 %v1792_v24, %v3289_v22 }
 0x2fe   : > { %v1933_v1 = vmax.f32 %v1932_v15, %v1678_v46  ;;  %v1975_v10 = vmax.f32 %v1974_v43, %v1791_v47 }
 0x2ff   : > { %v1954_v20 = vmax.f32 %v1953_v14, %v1680_v26  ;;  %v1996_v57 = vmax.f32 %v1995_v12, %v1793_v53 }
 0x301   : > { %v1683_v16 = vpop.f32.mrb[48].mxu0  ;;  %v1796_v62 = vpop.f32.mrb[60].mxu1 }
 0x302   : > { %v1684_v13 = vadd.f32 %v1683_v16, %v3280_v37  ;;  %v1797_v60 = vadd.f32 %v1796_v62, %v3283_v44  ;;  %v1685_v27 = vpop.f32.mrb[49].mxu0  ;;  %v1798_v30 = vpop.f32.mrb[61].mxu1 }
 0x303   : > { %v1686_v31 = vadd.f32 %v1685_v27, %v3286_v59  ;;  %v1799_v4 = vadd.f32 %v1798_v30, %v3289_v22  ;;  %v1687_v3 = vpop.f32.mrb[50].mxu0  ;;  %v1800_v63 = vpop.f32.mrb[62].mxu1 }
 0x304   : > { %v1934_v48 = vmax.f32 %v1933_v1, %v1684_v13  ;;  %v1976_v51 = vmax.f32 %v1975_v10, %v1797_v60  ;;  %v1688_v50 = vadd.f32 %v1687_v3, %v3280_v37  ;;  %v1801_v18 = vadd.f32 %v1800_v63, %v3283_v44  ;;  %v1689_v61 = vpop.f32.mrb[51].mxu0  ;;  %v1802_v28 = vpop.f32.mrb[63].mxu1 }
 0x305   : > { %v1955_v58 = vmax.f32 %v1954_v20, %v1686_v31  ;;  %v1997_v34 = vmax.f32 %v1996_v57, %v1799_v4  ;;  %v1690_v6 = vadd.f32 %v1689_v61, %v3286_v59  ;;  %v1803_v35 = vadd.f32 %v1802_v28, %v3289_v22 }
 0x306   : > { %v1935_v36 = vmax.f32 %v1934_v48, %v1688_v50  ;;  %v1977_v21 = vmax.f32 %v1976_v51, %v1801_v18 }
 0x307   : > { %v1956_v0 = vmax.f32 %v1955_v58, %v1690_v6  ;;  %v1998_v25 = vmax.f32 %v1997_v34, %v1803_v35 }
 0x309   : > { %v1693_v42 = vpop.f32.mrb[52].mxu0  ;;  %v1806_v41 = vpop.f32.mrb[64].mxu1 }
 0x30a   : > { %v1694_v32 = vadd.f32 %v1693_v42, %v3280_v37  ;;  %v1807_v33 = vadd.f32 %v1806_v41, %v3283_v44  ;;  %v1695_v17 = vpop.f32.mrb[53].mxu0  ;;  %v1808_v55 = vpop.f32.mrb[65].mxu1 }
 0x30b   : > { %v1696_v9 = vadd.f32 %v1695_v17, %v3286_v59  ;;  %v1809_v54 = vadd.f32 %v1808_v55, %v3289_v22  ;;  %v1697_v49 = vpop.f32.mrb[54].mxu0  ;;  %v1810_v2 = vpop.f32.mrb[66].mxu1 }
 0x30c   : > { %v1936_v19 = vmax.f32 %v1935_v36, %v1694_v32  ;;  %v1978_v5 = vmax.f32 %v1977_v21, %v1807_v33  ;;  %v1698_v56 = vadd.f32 %v1697_v49, %v3280_v37  ;;  %v1811_v52 = vadd.f32 %v1810_v2, %v3283_v44  ;;  %v1699_v23 = vpop.f32.mrb[55].mxu0  ;;  %v1812_v8 = vpop.f32.mrb[67].mxu1 }
 0x30d   : > { %v1957_v40 = vmax.f32 %v1956_v0, %v1696_v9  ;;  %v1999_v29 = vmax.f32 %v1998_v25, %v1809_v54  ;;  %v1700_v15 = vadd.f32 %v1699_v23, %v3286_v59  ;;  %v1813_v43 = vadd.f32 %v1812_v8, %v3289_v22 }
 0x30e   : > { %v1937_v46 = vmax.f32 %v1936_v19, %v1698_v56  ;;  %v1979_v47 = vmax.f32 %v1978_v5, %v1811_v52 }
 0x30f   : > { %v1958_v7 = vmax.f32 %v1957_v40, %v1700_v15  ;;  %v2000_v24 = vmax.f32 %v1999_v29, %v1813_v43 }
 0x311   : > { %v1703_v14 = vpop.f32.mrb[56].mxu0  ;;  %v1816_v12 = vpop.f32.mrb[68].mxu1 }
 0x312   : > { %v1704_v26 = vadd.f32 %v1703_v14, %v3280_v37  ;;  %v1817_v53 = vadd.f32 %v1816_v12, %v3283_v44  ;;  %v1705_v1 = vpop.f32.mrb[57].mxu0  ;;  %v1818_v10 = vpop.f32.mrb[69].mxu1 }
 0x313   : > { %v1706_v20 = vadd.f32 %v1705_v1, %v3286_v59  ;;  %v1819_v57 = vadd.f32 %v1818_v10, %v3289_v22  ;;  %v1707_v16 = vpop.f32.mrb[58].mxu0  ;;  %v1820_v62 = vpop.f32.mrb[70].mxu1 }
 0x314   : > { %v1938_v13 = vmax.f32 %v1937_v46, %v1704_v26  ;;  %v1980_v60 = vmax.f32 %v1979_v47, %v1817_v53  ;;  %v1708_v27 = vadd.f32 %v1707_v16, %v3280_v37  ;;  %v1821_v30 = vadd.f32 %v1820_v62, %v3283_v44  ;;  %v1709_v31 = vpop.f32.mrb[59].mxu0  ;;  %v1822_v4 = vpop.f32.mrb[71].mxu1 }
 0x315   : > { %v1959_v3 = vmax.f32 %v1958_v7, %v1706_v20  ;;  %v2001_v63 = vmax.f32 %v2000_v24, %v1819_v57  ;;  %v1710_v48 = vadd.f32 %v1709_v31, %v3286_v59  ;;  %v1823_v51 = vadd.f32 %v1822_v4, %v3289_v22 }
 0x316   : > { %v1939_v50 = vmax.f32 %v1938_v13, %v1708_v27  ;;  %v1981_v18 = vmax.f32 %v1980_v60, %v1821_v30 }
 0x317   : > { %v1960_v61 = vmax.f32 %v1959_v3, %v1710_v48  ;;  %v2002_v28 = vmax.f32 %v2001_v63, %v1823_v51 }
 0x319   : > { %v1713_v58 = vpop.f32.mrb[60].mxu0  ;;  %v1826_v34 = vpop.f32.mrb[72].mxu1 }
 0x31a   : > { %v1714_v6 = vadd.f32 %v1713_v58, %v3280_v37  ;;  %v1827_v35 = vadd.f32 %v1826_v34, %v3283_v44  ;;  %v1715_v36 = vpop.f32.mrb[61].mxu0  ;;  %v1828_v21 = vpop.f32.mrb[73].mxu1 }
 0x31b   : > { %v1716_v0 = vadd.f32 %v1715_v36, %v3286_v59  ;;  %v1829_v25 = vadd.f32 %v1828_v21, %v3289_v22  ;;  %v1717_v42 = vpop.f32.mrb[62].mxu0  ;;  %v1830_v41 = vpop.f32.mrb[74].mxu1 }
 0x31c   : > { %v1940_v32 = vmax.f32 %v1939_v50, %v1714_v6  ;;  %v1982_v33 = vmax.f32 %v1981_v18, %v1827_v35  ;;  %v1718_v17 = vadd.f32 %v1717_v42, %v3280_v37  ;;  %v1831_v55 = vadd.f32 %v1830_v41, %v3283_v44  ;;  %v1719_v9 = vpop.f32.mrb[63].mxu0  ;;  %v1832_v54 = vpop.f32.mrb[75].mxu1 }
 0x31d   : > { %v1961_v49 = vmax.f32 %v1960_v61, %v1716_v0  ;;  %v2003_v2 = vmax.f32 %v2002_v28, %v1829_v25  ;;  %v1720_v19 = vadd.f32 %v1719_v9, %v3286_v59  ;;  %v1833_v5 = vadd.f32 %v1832_v54, %v3289_v22 }
 0x31e   : > { %v1941_v56 = vmax.f32 %v1940_v32, %v1718_v17  ;;  %v1983_v52 = vmax.f32 %v1982_v33, %v1831_v55 }
 0x31f   : > { %v1962_v23 = vmax.f32 %v1961_v49, %v1720_v19  ;;  %v2004_v8 = vmax.f32 %v2003_v2, %v1833_v5  ;;  %v2061_v2 = vrot.slane %v2053_v11, %v3301_v45 }
 0x321   : > { %v1723_v40 = vpop.f32.mrb[64].mxu0  ;;  %v1836_v29 = vpop.f32.mrb[76].mxu1 }
 0x322   : > { %v1724_v15 = vadd.f32 %v1723_v40, %v3280_v37  ;;  %v1837_v43 = vadd.f32 %v1836_v29, %v3283_v44  ;;  %v1725_v46 = vpop.f32.mrb[65].mxu0  ;;  %v1838_v47 = vpop.f32.mrb[77].mxu1 }
 0x323   : > { %v1726_v7 = vadd.f32 %v1725_v46, %v3286_v59  ;;  %v1839_v24 = vadd.f32 %v1838_v47, %v3289_v22  ;;  %v1727_v14 = vpop.f32.mrb[66].mxu0  ;;  %v1840_v12 = vpop.f32.mrb[78].mxu1 }
 0x324   : > { %v1942_v26 = vmax.f32 %v1941_v56, %v1724_v15  ;;  %v1984_v53 = vmax.f32 %v1983_v52, %v1837_v43  ;;  %v1728_v1 = vadd.f32 %v1727_v14, %v3280_v37  ;;  %v1841_v10 = vadd.f32 %v1840_v12, %v3283_v44  ;;  %v1729_v20 = vpop.f32.mrb[67].mxu0  ;;  %v1842_v57 = vpop.f32.mrb[79].mxu1 }
 0x325   : > { %v1963_v16 = vmax.f32 %v1962_v23, %v1726_v7  ;;  %v2005_v62 = vmax.f32 %v2004_v8, %v1839_v24  ;;  %v1730_v13 = vadd.f32 %v1729_v20, %v3286_v59  ;;  %v1843_v60 = vadd.f32 %v1842_v57, %v3289_v22 }
 0x326   : > { %v1943_v27 = vmax.f32 %v1942_v26, %v1728_v1  ;;  %v1985_v30 = vmax.f32 %v1984_v53, %v1841_v10 }
 0x327   : > { %v1964_v31 = vmax.f32 %v1963_v16, %v1730_v13  ;;  %v2006_v4 = vmax.f32 %v2005_v62, %v1843_v60 }
 0x328   : > { %v1944_v3 = vrot.slane %v1943_v27, 4  ;;  %v1986_v63 = vrot.slane %v1985_v30, 4 }
 0x329   : > { %v1965_v48 = vrot.slane %v1964_v31, 4  ;;  %v2007_v51 = vrot.slane %v2006_v4, 4 }
 0x32a   : > { %v1945_v50 = vmax.f32 %v1943_v27, %v1944_v3  ;;  %v1987_v37 = vmax.f32 %v1985_v30, %v1986_v63 }
 0x32b   : > { %v1966_v18 = vmax.f32 %v1964_v31, %v1965_v48  ;;  %v2008_v44 = vmax.f32 %v2006_v4, %v2007_v51 }
 0x32c   : > { %v1946_v61 = vrot.slane %v1945_v50, 2  ;;  %v1988_v28 = vrot.slane %v1987_v37, 2 }
 0x32d   : > { %v1967_v58 = vrot.slane %v1966_v18, 2  ;;  %v2009_v34 = vrot.slane %v2008_v44, 2 }
 0x32e   : > { %v1947_v6 = vmax.f32 %v1945_v50, %v1946_v61  ;;  %v1989_v59 = vmax.f32 %v1987_v37, %v1988_v28 }
 0x32f   : > { %v1968_v22 = vmax.f32 %v1966_v18, %v1967_v58  ;;  %v2010_v35 = vmax.f32 %v2008_v44, %v2009_v34 }
 0x330   : > { %v1948_v36 = vrot.slane %v1947_v6, 1  ;;  %v1990_v21 = vrot.slane %v1989_v59, 1 }
 0x331   : > { %v1969_v0 = vrot.slane %v1968_v22, 1  ;;  %v2011_v25 = vrot.slane %v2010_v35, 1 }
 0x332   : > { %v1949_v42 = vmax.f32 %v1947_v6, %v1948_v36  ;;  %v1991_v41 = vmax.f32 %v1989_v59, %v1990_v21 }
 0x333   : > { %v1970_v32 = vmax.f32 %v1968_v22, %v1969_v0  ;;  %v2012_v33 = vmax.f32 %v2010_v35, %v2011_v25 }
 0x335   : > { %v2023_v17 = vcombine.low %v1949_v42, %v1970_v32  ;;  %v2024_v55 = vcombine.low %v1991_v41, %v2012_v33 }
 0x337   : > { %v2045_v9 = vrot.slane %v2023_v17, %v3301_v45  ;;  %v2052_v54 = vrot.slane %v2024_v55, %v3301_v45 }
 0x339   : > { %v2054_v49 = vcombine.low %v2045_v9, %v2052_v54 }
 0x33b   : > { %v2068_v19 = vrot.slane %v2054_v49, %v3301_v45 }
 0x33d   : > { %v2069_v5 = vcombine.low %v2061_v2, %v2068_v19 }
 0x33f   : > { %2071 = vst [vmem:[%s320_s22] sm:$0xff] %v2069_v5 }
 0x340 PF: > { %s18_s27 = sadd.s32 1, %s2476_s27  }
 0x341   : > { %p15_p4 = scmp.ge.s32.totalorder %s18_s27, 4  }
 0x343   :  { %17 = sbr.rel (!%p15_p4) target bundleno = 1 (0x1), region = 85 }

</bundles_post_ra>
